<compile_context>
chip_gen: v5e
topology: v5e:2x2
jax: 0.10.0
libtpu: 0.0.40
codegen_flags: <defaults>
</compile_context>

<pallas_src>
import functools
import math

import jax
import jax.numpy as jnp
import numpy as np
from jax.experimental import pallas as pl
from jax.experimental.pallas import tpu as pltpu

_BN_EPS = 1e-5
_LANE = 128


def _round_up(x, m):
    return (x + m - 1) // m * m


# ----------------------------- Pallas kernel ------------------------------ #
def _conv3x3_bn_act_kernel(x_ref, w_ref, scale_ref, bias_ref, *rest,
                           stride, h_out, w_out, relu, skip_mode):
    """out = act( conv3x3(x) * scale + bias [+ skip | + skip @ w_skip] ).

    x_ref     : (1, s*s, Hph, Wph, Cin_p)  bf16   phase-split, spatially padded
    w_ref     : (3, 3, Cin_p, Cout_p)      bf16
    scale/bias: (1, Cout_p)                f32    folded BN affine
    skip_mode : "none" -> rest = (o_ref,)
                "add"  -> rest = (skip_ref, o_ref)
                "proj" -> rest = (skip_ref, wskip_ref, o_ref)
    """
    if skip_mode == "none":
        (o_ref,) = rest
        skip_ref = wskip_ref = None
    elif skip_mode == "add":
        skip_ref, o_ref = rest
        wskip_ref = None
    else:  # "proj"
        skip_ref, wskip_ref, o_ref = rest

    c_out = o_ref.shape[-1]
    m = h_out * w_out

    # 3x3 conv as 9 shifted matmuls on the MXU, f32 accumulation.
    acc = jnp.zeros((m, c_out), jnp.float32)
    for i in range(3):
        for j in range(3):
            ph = (i % stride) * stride + (j % stride)
            di, dj = i // stride, j // stride
            xs = x_ref[0, ph, di:di + h_out, dj:dj + w_out, :]
            xs = xs.reshape(m, xs.shape[-1])
            acc = acc + jnp.dot(xs, w_ref[i, j],
                                preferred_element_type=jnp.float32)

    # Fused f32 epilogue: BN affine, residual, activation.
    acc = acc * scale_ref[...] + bias_ref[...]
    if skip_mode == "add":
        acc = acc + skip_ref[0].reshape(m, c_out).astype(jnp.float32)
    elif skip_mode == "proj":
        sk = skip_ref[0]
        sk = sk.reshape(m, sk.shape[-1])
        acc = acc + jnp.dot(sk, wskip_ref[...],
                            preferred_element_type=jnp.float32)
    if relu:
        acc = jnp.maximum(acc, 0.0)
    o_ref[0] = acc.reshape(h_out, w_out, c_out).astype(o_ref.dtype)


# ------------------------------- JAX glue ---------------------------------- #
def _phase_split(x_nhwc, stride):
    """Pad spatially by 1 and split into stride*stride phases.

    Tap (i, j) of the 3x3 kernel then reads
      phases[:, (i%s)*s + (j%s), i//s : i//s+Ho, j//s : j//s+Wo, :]
    which is a contiguous (non-strided) in-kernel slice.
    """
    xp = jnp.pad(x_nhwc, ((0, 0), (1, 1), (1, 1), (0, 0)))
    if stride == 1:
        return xp[:, None]                              # (N, 1, Hp, Wp, C)
    n, hp, wp, c = xp.shape
    xp = jnp.pad(xp, ((0, 0), (0, hp % 2), (0, wp % 2), (0, 0)))
    phases = [xp[:, p::2, q::2, :] for p in range(2) for q in range(2)]
    return jnp.stack(phases, axis=1)                    # (N, 4, Hp/2, Wp/2, C)


def _conv3x3_bn_act(x_nhwc, w_hwio, scale, bias, *, stride, relu,
                    skip=None, w_skip=None, out_dtype=jnp.float32):
    """Fused conv3x3(pad=1, stride s) + BN + (skip add | fused 1x1 proj) + act.

    `x_nhwc` may already carry trailing zero-padded channels.  Returns the
    channel-padded NHWC output (N, Ho, Wo, Cout_p) with Cout_p a multiple of
    128 (extra channels are exactly zero).
    """
    n, h, w, c_in = x_nhwc.shape
    kh, kw, wc_in, c_out = w_hwio.shape
    assert (kh, kw) == (3, 3) and wc_in <= c_in
    h_out = (h + 2 - 3) // stride + 1
    w_out = (w + 2 - 3) // stride + 1
    cin_p = _round_up(c_in, _LANE)
    cout_p = _round_up(c_out, _LANE)
    out_itemsize = np.dtype(out_dtype).itemsize

    # bf16 matmul inputs (f32 accumulation happens in-kernel).
    xb = x_nhwc.astype(jnp.bfloat16)
    if cin_p > c_in:
        xb = jnp.pad(xb, ((0, 0), (0, 0), (0, 0), (0, cin_p - c_in)))
    phases = _phase_split(xb, stride)                  # (N, s*s, Hph, Wph, Cin_p)
    sps, hph, wph = phases.shape[1], phases.shape[2], phases.shape[3]

    wb = jnp.pad(w_hwio.astype(jnp.bfloat16),
                 ((0, 0), (0, 0), (0, cin_p - wc_in), (0, cout_p - c_out)))
    scale_p = jnp.pad(scale.astype(jnp.float32),
                      (0, cout_p - c_out)).reshape(1, cout_p)
    bias_p = jnp.pad(bias.astype(jnp.float32),
                     (0, cout_p - c_out)).reshape(1, cout_p)

    in_specs = [
        pl.BlockSpec((1, sps, hph, wph, cin_p), lambda b: (b, 0, 0, 0, 0)),
        pl.BlockSpec((3, 3, cin_p, cout_p), lambda b: (0, 0, 0, 0)),
        pl.BlockSpec((1, cout_p), lambda b: (0, 0)),
        pl.BlockSpec((1, cout_p), lambda b: (0, 0)),
    ]
    args = [phases, wb, scale_p, bias_p]

    if skip is None:
        skip_mode = "none"
    else:
        sc = skip.shape[-1]
        sc_p = _round_up(sc, _LANE)
        skip_b = skip.astype(jnp.bfloat16)
        if sc_p > sc:
            skip_b = jnp.pad(skip_b, ((0, 0), (0, 0), (0, 0), (0, sc_p - sc)))
        in_specs.append(
            pl.BlockSpec((1, h_out, w_out, sc_p), lambda b: (b, 0, 0, 0)))
        args.append(skip_b)
        if w_skip is None:
            skip_mode = "add"
            assert sc_p == cout_p
        else:
            skip_mode = "proj"
            wsk = jnp.pad(w_skip.astype(jnp.bfloat16),
                          ((0, sc_p - w_skip.shape[0]),
                           (0, cout_p - w_skip.shape[1])))
            in_specs.append(pl.BlockSpec((sc_p, cout_p), lambda b: (0, 0)))
            args.append(wsk)

    out_spec = pl.BlockSpec((1, h_out, w_out, cout_p), lambda b: (b, 0, 0, 0))
    out_shape = jax.ShapeDtypeStruct((n, h_out, w_out, cout_p), out_dtype)

    # --- VMEM budget (double-buffered per-step blocks + resident operands) ---
    blk_bytes = (sps * hph * wph * cin_p * 2
                 + h_out * w_out * cout_p * out_itemsize)
    if skip is not None:
        blk_bytes += h_out * w_out * args[4].shape[-1] * 2
    resident_bytes = sum(math.prod(a.shape) * np.dtype(a.dtype).itemsize
                         for a in args[1:4])
    if skip_mode == "proj":
        resident_bytes += math.prod(args[-1].shape) * 2
    vmem_limit = int(min(64 * 2 ** 20,
                         max(32 * 2 ** 20, 4 * blk_bytes + resident_bytes)))

    # --- Cost estimate (helps XLA schedule around the custom call) ---
    flops = 2 * n * h_out * w_out * 9 * cin_p * cout_p
    if skip_mode == "proj":
        flops += 2 * n * h_out * w_out * args[4].shape[-1] * cout_p
    bytes_accessed = (sum(math.prod(a.shape) * np.dtype(a.dtype).itemsize
                          for a in args)
                      + n * h_out * w_out * cout_p * out_itemsize)

    kernel = functools.partial(
        _conv3x3_bn_act_kernel, stride=stride, h_out=h_out, w_out=w_out,
        relu=relu, skip_mode=skip_mode)

    return pl.pallas_call(
        kernel,
        out_shape=out_shape,
        grid_spec=pltpu.PrefetchScalarGridSpec(
            num_scalar_prefetch=0,
            grid=(n,),
            in_specs=in_specs,
            out_specs=out_spec),
        compiler_params=pltpu.CompilerParams(
            dimension_semantics=("parallel",),
            vmem_limit_bytes=vmem_limit),
        cost_estimate=pl.CostEstimate(
            flops=int(flops), transcendentals=0,
            bytes_accessed=int(bytes_accessed)),
    )(*args)


def _fold_bn(gamma, beta, mean, var):
    scale = gamma * jax.lax.rsqrt(var + _BN_EPS)
    bias = beta - mean * scale
    return scale, bias


def init_resnet_block_params(key, c_in, c_out, subsample):
    ks = jax.random.split(key, 11)

    def conv_w(k, kh, kw, ci, co):
        fan_in = kh * kw * ci
        return (jax.random.normal(k, (kh, kw, ci, co), jnp.float32)
                / jnp.sqrt(float(fan_in)))

    p = {
        "w1": conv_w(ks[0], 3, 3, c_in, c_out),
        "w2": conv_w(ks[1], 3, 3, c_out, c_out),
        "bn1_gamma": 1.0 + 0.1 * jax.random.normal(ks[2], (c_out,), jnp.float32),
        "bn1_beta": 0.1 * jax.random.normal(ks[3], (c_out,), jnp.float32),
        "bn1_mean": 0.1 * jax.random.normal(ks[4], (c_out,), jnp.float32),
        "bn1_var": 0.5 + jnp.abs(jax.random.normal(ks[5], (c_out,), jnp.float32)),
        "bn2_gamma": 1.0 + 0.1 * jax.random.normal(ks[6], (c_out,), jnp.float32),
        "bn2_beta": 0.1 * jax.random.normal(ks[7], (c_out,), jnp.float32),
        "bn2_mean": 0.1 * jax.random.normal(ks[8], (c_out,), jnp.float32),
        "bn2_var": 0.5 + jnp.abs(jax.random.normal(ks[9], (c_out,), jnp.float32)),
    }
    if subsample:
        p["w_skip"] = conv_w(ks[10], 1, 1, c_in, c_out)
    return p


def resnet_block_forward(params, x_nchw, *, subsample):
    x = jnp.transpose(x_nchw, (0, 2, 3, 1)).astype(jnp.float32)  # NCHW -> NHWC
    c_out = params["w1"].shape[-1]
    stride = 2 if subsample else 1

    s1, b1 = _fold_bn(params["bn1_gamma"], params["bn1_beta"],
                      params["bn1_mean"], params["bn1_var"])
    s2, b2 = _fold_bn(params["bn2_gamma"], params["bn2_beta"],
                      params["bn2_mean"], params["bn2_var"])

    # conv1 (3x3, stride s) + BN1 + ReLU -- one fused Pallas call, bf16 out
    z_p = _conv3x3_bn_act(x, params["w1"], s1, b1, stride=stride, relu=True,
                          out_dtype=jnp.bfloat16)        # (N, Ho, Wo, Cout_p)

    # conv2 (3x3, stride 1) + BN2 + residual (+ fused 1x1 shortcut) + ReLU
    if subsample:
        x_sub = x[:, ::2, ::2, :]                        # stride-2 sample of x
        out_p = _conv3x3_bn_act(z_p, params["w2"], s2, b2, stride=1, relu=True,
                                skip=x_sub, w_skip=params["w_skip"][0, 0],
                                out_dtype=jnp.float32)
    else:
        out_p = _conv3x3_bn_act(z_p, params["w2"], s2, b2, stride=1, relu=True,
                                skip=x, out_dtype=jnp.float32)

    out = out_p[..., :c_out]                             # drop channel padding
    return jnp.transpose(out, (0, 3, 1, 2))              # NHWC -> NCHW


# ------------------------ plain-JAX reference check ------------------------ #
def _reference_forward(params, x_nchw, *, subsample):
    x = jnp.transpose(x_nchw, (0, 2, 3, 1)).astype(jnp.float32)

    def conv(inp, w, strides, pad):
        return jax.lax.conv_general_dilated(
            inp, w, strides, pad, dimension_numbers=("NHWC", "HWIO", "NHWC"))

    def bn(inp, g, b, m, v):
        return (inp - m) * (g * jax.lax.rsqrt(v + _BN_EPS)) + b

    stride = (2, 2) if subsample else (1, 1)
    z = conv(x, params["w1"], stride, ((1, 1), (1, 1)))
    z = jnp.maximum(bn(z, params["bn1_gamma"], params["bn1_beta"],
                       params["bn1_mean"], params["bn1_var"]), 0.0)
    z = conv(z, params["w2"], (1, 1), ((1, 1), (1, 1)))
    z = bn(z, params["bn2_gamma"], params["bn2_beta"],
           params["bn2_mean"], params["bn2_var"])
    xs = conv(x, params["w_skip"], (2, 2), ((0, 0), (0, 0))) if subsample else x
    out = jnp.maximum(xs + z, 0.0)
    return jnp.transpose(out, (0, 3, 1, 2))


if __name__ == "__main__":
    key = jax.random.PRNGKey(0)
    k_x, k_p1, k_p2 = jax.random.split(key, 3)

    # Config 1: subsample block, c_in=4 -> c_out=8, input NCHW (2, 4, 16, 16).
    x = jax.random.normal(k_x, (2, 4, 16, 16), jnp.float32)
    params_sub = init_resnet_block_params(k_p1, 4, 8, True)
    fwd_sub = jax.jit(functools.partial(resnet_block_forward, subsample=True))
    y_sub = jax.block_until_ready(fwd_sub(params_sub, x))
    assert y_sub.shape == (2, 8, 8, 8), y_sub.shape
    ref_sub = _reference_forward(params_sub, x, subsample=True)
    assert jnp.allclose(y_sub, ref_sub, atol=5e-2, rtol=5e-2), \
        float(jnp.max(jnp.abs(y_sub - ref_sub)))

    # Config 2: identity-shortcut block, c_in = c_out = 8, input (2, 8, 16, 16).
    x2 = jax.random.normal(k_x, (2, 8, 16, 16), jnp.float32)
    params_id = init_resnet_block_params(k_p2, 8, 8, False)
    fwd_id = jax.jit(functools.partial(resnet_block_forward, subsample=False))
    y_id = jax.block_until_ready(fwd_id(params_id, x2))
    assert y_id.shape == (2, 8, 16, 16), y_id.shape
    ref_id = _reference_forward(params_id, x2, subsample=False)
    assert jnp.allclose(y_id, ref_id, atol=5e-2, rtol=5e-2), \
        float(jnp.max(jnp.abs(y_id - ref_id)))

    print("KERNEL_OK")
</pallas_src>

<mosaic_0001>
module attributes {stable_mosaic.version = 11 : i64} {
  func.func @_conv3x3_bn_act_kernel(%arg0: i32, %arg1: memref<1x4x9x9x128xbf16, #tpu.memory_space<vmem>>, %arg2: memref<3x3x128x128xbf16, #tpu.memory_space<vmem>>, %arg3: memref<1x128xf32, #tpu.memory_space<vmem>>, %arg4: memref<1x128xf32, #tpu.memory_space<vmem>>, %arg5: memref<1x8x8x128xbf16, #tpu.memory_space<vmem>>) attributes {dimension_semantics = [#tpu.dimension_semantics<parallel>], iteration_bounds = array<i64: 2>, scalar_prefetch = 0 : i64, scratch_operands = 0 : i64, tpu.core_type = #tpu.core_type<tc>, window_params = [{transform_indices = @transform_0, window_bounds = array<i64: 1, 4, 9, 9, 128>}, {pipeline_mode = #tpu.pipeline_mode<synchronous>, transform_indices = @transform_1, window_bounds = array<i64: 3, 3, 128, 128>}, {pipeline_mode = #tpu.pipeline_mode<synchronous>, transform_indices = @transform_2, window_bounds = array<i64: 1, 128>}, {pipeline_mode = #tpu.pipeline_mode<synchronous>, transform_indices = @transform_3, window_bounds = array<i64: 1, 128>}, {transform_indices = @transform_4, window_bounds = array<i64: 1, 8, 8, 128>}]} {
    %cst = arith.constant 0.000000e+00 : f32
    %0 = vector.broadcast %cst : f32 to vector<64x128xf32>
    %c0 = arith.constant 0 : index
    %c0_0 = arith.constant 0 : index
    %c0_1 = arith.constant 0 : index
    %c0_2 = arith.constant 0 : index
    %c0_3 = arith.constant 0 : index
    %1 = vector.load %arg1[%c0, %c0_0, %c0_1, %c0_2, %c0_3] : memref<1x4x9x9x128xbf16, #tpu.memory_space<vmem>>, vector<1x1x8x8x128xbf16>
    %2 = vector.shape_cast %1 : vector<1x1x8x8x128xbf16> to vector<8x8x128xbf16>
    %3 = vector.shape_cast %2 : vector<8x8x128xbf16> to vector<64x128xbf16>
    %c0_4 = arith.constant 0 : index
    %c0_5 = arith.constant 0 : index
    %c0_6 = arith.constant 0 : index
    %c0_7 = arith.constant 0 : index
    %4 = vector.load %arg2[%c0_4, %c0_5, %c0_6, %c0_7] : memref<3x3x128x128xbf16, #tpu.memory_space<vmem>>, vector<1x1x128x128xbf16>
    %5 = vector.shape_cast %4 : vector<1x1x128x128xbf16> to vector<128x128xbf16>
    %cst_8 = arith.constant dense<0.000000e+00> : vector<64x128xf32>
    %6 = tpu.matmul %3, %5, %cst_8 {dimension_numbers = #tpu.dot_dimension_numbers<[1], [0], [0], [1], [0, 0, 1, 1], [], []>} : vector<64x128xbf16>, vector<128x128xbf16>, vector<64x128xf32> -> vector<64x128xf32>
    %7 = arith.addf %0, %6 : vector<64x128xf32>
    %c0_9 = arith.constant 0 : index
    %c1 = arith.constant 1 : index
    %c0_10 = arith.constant 0 : index
    %c0_11 = arith.constant 0 : index
    %c0_12 = arith.constant 0 : index
    %8 = vector.load %arg1[%c0_9, %c1, %c0_10, %c0_11, %c0_12] : memref<1x4x9x9x128xbf16, #tpu.memory_space<vmem>>, vector<1x1x8x8x128xbf16>
    %9 = vector.shape_cast %8 : vector<1x1x8x8x128xbf16> to vector<8x8x128xbf16>
    %10 = vector.shape_cast %9 : vector<8x8x128xbf16> to vector<64x128xbf16>
    %c0_13 = arith.constant 0 : index
    %c1_14 = arith.constant 1 : index
    %c0_15 = arith.constant 0 : index
    %c0_16 = arith.constant 0 : index
    %11 = vector.load %arg2[%c0_13, %c1_14, %c0_15, %c0_16] : memref<3x3x128x128xbf16, #tpu.memory_space<vmem>>, vector<1x1x128x128xbf16>
    %12 = vector.shape_cast %11 : vector<1x1x128x128xbf16> to vector<128x128xbf16>
    %cst_17 = arith.constant dense<0.000000e+00> : vector<64x128xf32>
    %13 = tpu.matmul %10, %12, %cst_17 {dimension_numbers = #tpu.dot_dimension_numbers<[1], [0], [0], [1], [0, 0, 1, 1], [], []>} : vector<64x128xbf16>, vector<128x128xbf16>, vector<64x128xf32> -> vector<64x128xf32>
    %14 = arith.addf %7, %13 : vector<64x128xf32>
    %c0_18 = arith.constant 0 : index
    %c0_19 = arith.constant 0 : index
    %c0_20 = arith.constant 0 : index
    %c1_21 = arith.constant 1 : index
    %c0_22 = arith.constant 0 : index
    %15 = vector.load %arg1[%c0_18, %c0_19, %c0_20, %c1_21, %c0_22] : memref<1x4x9x9x128xbf16, #tpu.memory_space<vmem>>, vector<1x1x8x8x128xbf16>
    %16 = vector.shape_cast %15 : vector<1x1x8x8x128xbf16> to vector<8x8x128xbf16>
    %17 = vector.shape_cast %16 : vector<8x8x128xbf16> to vector<64x128xbf16>
    %c0_23 = arith.constant 0 : index
    %c2 = arith.constant 2 : index
    %c0_24 = arith.constant 0 : index
    %c0_25 = arith.constant 0 : index
    %18 = vector.load %arg2[%c0_23, %c2, %c0_24, %c0_25] : memref<3x3x128x128xbf16, #tpu.memory_space<vmem>>, vector<1x1x128x128xbf16>
    %19 = vector.shape_cast %18 : vector<1x1x128x128xbf16> to vector<128x128xbf16>
    %cst_26 = arith.constant dense<0.000000e+00> : vector<64x128xf32>
    %20 = tpu.matmul %17, %19, %cst_26 {dimension_numbers = #tpu.dot_dimension_numbers<[1], [0], [0], [1], [0, 0, 1, 1], [], []>} : vector<64x128xbf16>, vector<128x128xbf16>, vector<64x128xf32> -> vector<64x128xf32>
    %21 = arith.addf %14, %20 : vector<64x128xf32>
    %c0_27 = arith.constant 0 : index
    %c2_28 = arith.constant 2 : index
    %c0_29 = arith.constant 0 : index
    %c0_30 = arith.constant 0 : index
    %c0_31 = arith.constant 0 : index
    %22 = vector.load %arg1[%c0_27, %c2_28, %c0_29, %c0_30, %c0_31] : memref<1x4x9x9x128xbf16, #tpu.memory_space<vmem>>, vector<1x1x8x8x128xbf16>
    %23 = vector.shape_cast %22 : vector<1x1x8x8x128xbf16> to vector<8x8x128xbf16>
    %24 = vector.shape_cast %23 : vector<8x8x128xbf16> to vector<64x128xbf16>
    %c1_32 = arith.constant 1 : index
    %c0_33 = arith.constant 0 : index
    %c0_34 = arith.constant 0 : index
    %c0_35 = arith.constant 0 : index
    %25 = vector.load %arg2[%c1_32, %c0_33, %c0_34, %c0_35] : memref<3x3x128x128xbf16, #tpu.memory_space<vmem>>, vector<1x1x128x128xbf16>
    %26 = vector.shape_cast %25 : vector<1x1x128x128xbf16> to vector<128x128xbf16>
    %cst_36 = arith.constant dense<0.000000e+00> : vector<64x128xf32>
    %27 = tpu.matmul %24, %26, %cst_36 {dimension_numbers = #tpu.dot_dimension_numbers<[1], [0], [0], [1], [0, 0, 1, 1], [], []>} : vector<64x128xbf16>, vector<128x128xbf16>, vector<64x128xf32> -> vector<64x128xf32>
    %28 = arith.addf %21, %27 : vector<64x128xf32>
    %c0_37 = arith.constant 0 : index
    %c3 = arith.constant 3 : index
    %c0_38 = arith.constant 0 : index
    %c0_39 = arith.constant 0 : index
    %c0_40 = arith.constant 0 : index
    %29 = vector.load %arg1[%c0_37, %c3, %c0_38, %c0_39, %c0_40] : memref<1x4x9x9x128xbf16, #tpu.memory_space<vmem>>, vector<1x1x8x8x128xbf16>
    %30 = vector.shape_cast %29 : vector<1x1x8x8x128xbf16> to vector<8x8x128xbf16>
    %31 = vector.shape_cast %30 : vector<8x8x128xbf16> to vector<64x128xbf16>
    %c1_41 = arith.constant 1 : index
    %c1_42 = arith.constant 1 : index
    %c0_43 = arith.constant 0 : index
    %c0_44 = arith.constant 0 : index
    %32 = vector.load %arg2[%c1_41, %c1_42, %c0_43, %c0_44] : memref<3x3x128x128xbf16, #tpu.memory_space<vmem>>, vector<1x1x128x128xbf16>
    %33 = vector.shape_cast %32 : vector<1x1x128x128xbf16> to vector<128x128xbf16>
    %cst_45 = arith.constant dense<0.000000e+00> : vector<64x128xf32>
    %34 = tpu.matmul %31, %33, %cst_45 {dimension_numbers = #tpu.dot_dimension_numbers<[1], [0], [0], [1], [0, 0, 1, 1], [], []>} : vector<64x128xbf16>, vector<128x128xbf16>, vector<64x128xf32> -> vector<64x128xf32>
    %35 = arith.addf %28, %34 : vector<64x128xf32>
    %c0_46 = arith.constant 0 : index
    %c2_47 = arith.constant 2 : index
    %c0_48 = arith.constant 0 : index
    %c1_49 = arith.constant 1 : index
    %c0_50 = arith.constant 0 : index
    %36 = vector.load %arg1[%c0_46, %c2_47, %c0_48, %c1_49, %c0_50] : memref<1x4x9x9x128xbf16, #tpu.memory_space<vmem>>, vector<1x1x8x8x128xbf16>
    %37 = vector.shape_cast %36 : vector<1x1x8x8x128xbf16> to vector<8x8x128xbf16>
    %38 = vector.shape_cast %37 : vector<8x8x128xbf16> to vector<64x128xbf16>
    %c1_51 = arith.constant 1 : index
    %c2_52 = arith.constant 2 : index
    %c0_53 = arith.constant 0 : index
    %c0_54 = arith.constant 0 : index
    %39 = vector.load %arg2[%c1_51, %c2_52, %c0_53, %c0_54] : memref<3x3x128x128xbf16, #tpu.memory_space<vmem>>, vector<1x1x128x128xbf16>
    %40 = vector.shape_cast %39 : vector<1x1x128x128xbf16> to vector<128x128xbf16>
    %cst_55 = arith.constant dense<0.000000e+00> : vector<64x128xf32>
    %41 = tpu.matmul %38, %40, %cst_55 {dimension_numbers = #tpu.dot_dimension_numbers<[1], [0], [0], [1], [0, 0, 1, 1], [], []>} : vector<64x128xbf16>, vector<128x128xbf16>, vector<64x128xf32> -> vector<64x128xf32>
    %42 = arith.addf %35, %41 : vector<64x128xf32>
    %c0_56 = arith.constant 0 : index
    %c0_57 = arith.constant 0 : index
    %c1_58 = arith.constant 1 : index
    %c0_59 = arith.constant 0 : index
    %c0_60 = arith.constant 0 : index
    %43 = vector.load %arg1[%c0_56, %c0_57, %c1_58, %c0_59, %c0_60] : memref<1x4x9x9x128xbf16, #tpu.memory_space<vmem>>, vector<1x1x8x8x128xbf16>
    %44 = vector.shape_cast %43 : vector<1x1x8x8x128xbf16> to vector<8x8x128xbf16>
    %45 = vector.shape_cast %44 : vector<8x8x128xbf16> to vector<64x128xbf16>
    %c2_61 = arith.constant 2 : index
    %c0_62 = arith.constant 0 : index
    %c0_63 = arith.constant 0 : index
    %c0_64 = arith.constant 0 : index
    %46 = vector.load %arg2[%c2_61, %c0_62, %c0_63, %c0_64] : memref<3x3x128x128xbf16, #tpu.memory_space<vmem>>, vector<1x1x128x128xbf16>
    %47 = vector.shape_cast %46 : vector<1x1x128x128xbf16> to vector<128x128xbf16>
    %cst_65 = arith.constant dense<0.000000e+00> : vector<64x128xf32>
    %48 = tpu.matmul %45, %47, %cst_65 {dimension_numbers = #tpu.dot_dimension_numbers<[1], [0], [0], [1], [0, 0, 1, 1], [], []>} : vector<64x128xbf16>, vector<128x128xbf16>, vector<64x128xf32> -> vector<64x128xf32>
    %49 = arith.addf %42, %48 : vector<64x128xf32>
    %c0_66 = arith.constant 0 : index
    %c1_67 = arith.constant 1 : index
    %c1_68 = arith.constant 1 : index
    %c0_69 = arith.constant 0 : index
    %c0_70 = arith.constant 0 : index
    %50 = vector.load %arg1[%c0_66, %c1_67, %c1_68, %c0_69, %c0_70] : memref<1x4x9x9x128xbf16, #tpu.memory_space<vmem>>, vector<1x1x8x8x128xbf16>
    %51 = vector.shape_cast %50 : vector<1x1x8x8x128xbf16> to vector<8x8x128xbf16>
    %52 = vector.shape_cast %51 : vector<8x8x128xbf16> to vector<64x128xbf16>
    %c2_71 = arith.constant 2 : index
    %c1_72 = arith.constant 1 : index
    %c0_73 = arith.constant 0 : index
    %c0_74 = arith.constant 0 : index
    %53 = vector.load %arg2[%c2_71, %c1_72, %c0_73, %c0_74] : memref<3x3x128x128xbf16, #tpu.memory_space<vmem>>, vector<1x1x128x128xbf16>
    %54 = vector.shape_cast %53 : vector<1x1x128x128xbf16> to vector<128x128xbf16>
    %cst_75 = arith.constant dense<0.000000e+00> : vector<64x128xf32>
    %55 = tpu.matmul %52, %54, %cst_75 {dimension_numbers = #tpu.dot_dimension_numbers<[1], [0], [0], [1], [0, 0, 1, 1], [], []>} : vector<64x128xbf16>, vector<128x128xbf16>, vector<64x128xf32> -> vector<64x128xf32>
    %56 = arith.addf %49, %55 : vector<64x128xf32>
    %c0_76 = arith.constant 0 : index
    %c0_77 = arith.constant 0 : index
    %c1_78 = arith.constant 1 : index
    %c1_79 = arith.constant 1 : index
    %c0_80 = arith.constant 0 : index
    %57 = vector.load %arg1[%c0_76, %c0_77, %c1_78, %c1_79, %c0_80] : memref<1x4x9x9x128xbf16, #tpu.memory_space<vmem>>, vector<1x1x8x8x128xbf16>
    %58 = vector.shape_cast %57 : vector<1x1x8x8x128xbf16> to vector<8x8x128xbf16>
    %59 = vector.shape_cast %58 : vector<8x8x128xbf16> to vector<64x128xbf16>
    %c2_81 = arith.constant 2 : index
    %c2_82 = arith.constant 2 : index
    %c0_83 = arith.constant 0 : index
    %c0_84 = arith.constant 0 : index
    %60 = vector.load %arg2[%c2_81, %c2_82, %c0_83, %c0_84] : memref<3x3x128x128xbf16, #tpu.memory_space<vmem>>, vector<1x1x128x128xbf16>
    %61 = vector.shape_cast %60 : vector<1x1x128x128xbf16> to vector<128x128xbf16>
    %cst_85 = arith.constant dense<0.000000e+00> : vector<64x128xf32>
    %62 = tpu.matmul %59, %61, %cst_85 {dimension_numbers = #tpu.dot_dimension_numbers<[1], [0], [0], [1], [0, 0, 1, 1], [], []>} : vector<64x128xbf16>, vector<128x128xbf16>, vector<64x128xf32> -> vector<64x128xf32>
    %63 = arith.addf %56, %62 : vector<64x128xf32>
    %c0_86 = arith.constant 0 : index
    %c0_87 = arith.constant 0 : index
    %64 = vector.load %arg3[%c0_86, %c0_87] : memref<1x128xf32, #tpu.memory_space<vmem>>, vector<1x128xf32>
    %65 = vector.broadcast %64 : vector<1x128xf32> to vector<64x128xf32>
    %66 = arith.mulf %63, %65 : vector<64x128xf32>
    %c0_88 = arith.constant 0 : index
    %c0_89 = arith.constant 0 : index
    %67 = vector.load %arg4[%c0_88, %c0_89] : memref<1x128xf32, #tpu.memory_space<vmem>>, vector<1x128xf32>
    %68 = vector.broadcast %67 : vector<1x128xf32> to vector<64x128xf32>
    %69 = arith.addf %66, %68 : vector<64x128xf32>
    %cst_90 = arith.constant 0.000000e+00 : f32
    %70 = vector.broadcast %cst_90 : f32 to vector<64x128xf32>
    %71 = arith.maximumf %69, %70 : vector<64x128xf32>
    %72 = vector.shape_cast %71 : vector<64x128xf32> to vector<8x8x128xf32>
    %73 = arith.truncf %72 : vector<8x8x128xf32> to vector<8x8x128xbf16>
    %c0_91 = arith.constant 0 : index
    %c0_92 = arith.constant 0 : index
    %c0_93 = arith.constant 0 : index
    %c0_94 = arith.constant 0 : index
    %74 = vector.load %arg5[%c0_91, %c0_92, %c0_93, %c0_94] : memref<1x8x8x128xbf16, #tpu.memory_space<vmem>>, vector<1x8x8x128xbf16>
    %75 = vector.shape_cast %74 : vector<1x8x8x128xbf16> to vector<8x8x128xbf16>
    %76 = vector.shape_cast %73 : vector<8x8x128xbf16> to vector<1x8x8x128xbf16>
    tpu.vector_store %arg5[%c0_91, %c0_92, %c0_93, %c0_94], %76 {strides = array<i32>} : memref<1x8x8x128xbf16, #tpu.memory_space<vmem>>, vector<1x8x8x128xbf16>,
    return
  }
  func.func @transform_0(%arg0: i32) -> (i32, i32, i32, i32, i32) {
    %c0_i32 = arith.constant 0 : i32
    %c0_i32_0 = arith.constant 0 : i32
    %c0_i32_1 = arith.constant 0 : i32
    %c0_i32_2 = arith.constant 0 : i32
    %c0_i32_3 = arith.constant 0 : i32
    return %arg0, %c0_i32, %c0_i32_0, %c0_i32_1, %c0_i32_2 : i32, i32, i32, i32, i32
  }
  func.func @transform_1(%arg0: i32) -> (i32, i32, i32, i32) {
    %c0_i32 = arith.constant 0 : i32
    %c0_i32_0 = arith.constant 0 : i32
    %c0_i32_1 = arith.constant 0 : i32
    %c0_i32_2 = arith.constant 0 : i32
    %c0_i32_3 = arith.constant 0 : i32
    return %c0_i32, %c0_i32_0, %c0_i32_1, %c0_i32_2 : i32, i32, i32, i32
  }
  func.func @transform_2(%arg0: i32) -> (i32, i32) {
    %c0_i32 = arith.constant 0 : i32
    %c0_i32_0 = arith.constant 0 : i32
    %c0_i32_1 = arith.constant 0 : i32
    return %c0_i32, %c0_i32_0 : i32, i32
  }
  func.func @transform_3(%arg0: i32) -> (i32, i32) {
    %c0_i32 = arith.constant 0 : i32
    %c0_i32_0 = arith.constant 0 : i32
    %c0_i32_1 = arith.constant 0 : i32
    return %c0_i32, %c0_i32_0 : i32, i32
  }
  func.func @transform_4(%arg0: i32) -> (i32, i32, i32, i32) {
    %c0_i32 = arith.constant 0 : i32
    %c0_i32_0 = arith.constant 0 : i32
    %c0_i32_1 = arith.constant 0 : i32
    %c0_i32_2 = arith.constant 0 : i32
    return %arg0, %c0_i32, %c0_i32_0, %c0_i32_1 : i32, i32, i32, i32
  }
}

module attributes {stable_mosaic.version = 11 : i64} {
  func.func @_conv3x3_bn_act_kernel(%arg0: i32, %arg1: memref<1x1x10x10x128xbf16, #tpu.memory_space<vmem>>, %arg2: memref<3x3x128x128xbf16, #tpu.memory_space<vmem>>, %arg3: memref<1x128xf32, #tpu.memory_space<vmem>>, %arg4: memref<1x128xf32, #tpu.memory_space<vmem>>, %arg5: memref<1x8x8x128xbf16, #tpu.memory_space<vmem>>, %arg6: memref<128x128xbf16, #tpu.memory_space<vmem>>, %arg7: memref<1x8x8x128xf32, #tpu.memory_space<vmem>>) attributes {dimension_semantics = [#tpu.dimension_semantics<parallel>], iteration_bounds = array<i64: 2>, scalar_prefetch = 0 : i64, scratch_operands = 0 : i64, tpu.core_type = #tpu.core_type<tc>, window_params = [{transform_indices = @transform_0, window_bounds = array<i64: 1, 1, 10, 10, 128>}, {pipeline_mode = #tpu.pipeline_mode<synchronous>, transform_indices = @transform_1, window_bounds = array<i64: 3, 3, 128, 128>}, {pipeline_mode = #tpu.pipeline_mode<synchronous>, transform_indices = @transform_2, window_bounds = array<i64: 1, 128>}, {pipeline_mode = #tpu.pipeline_mode<synchronous>, transform_indices = @transform_3, window_bounds = array<i64: 1, 128>}, {transform_indices = @transform_4, window_bounds = array<i64: 1, 8, 8, 128>}, {pipeline_mode = #tpu.pipeline_mode<synchronous>, transform_indices = @transform_5, window_bounds = array<i64: 128, 128>}, {transform_indices = @transform_6, window_bounds = array<i64: 1, 8, 8, 128>}]} {
    %cst = arith.constant 0.000000e+00 : f32
    %0 = vector.broadcast %cst : f32 to vector<64x128xf32>
    %c0 = arith.constant 0 : index
    %c0_0 = arith.constant 0 : index
    %c0_1 = arith.constant 0 : index
    %c0_2 = arith.constant 0 : index
    %c0_3 = arith.constant 0 : index
    %1 = vector.load %arg1[%c0, %c0_0, %c0_1, %c0_2, %c0_3] : memref<1x1x10x10x128xbf16, #tpu.memory_space<vmem>>, vector<1x1x8x8x128xbf16>
    %2 = vector.shape_cast %1 : vector<1x1x8x8x128xbf16> to vector<8x8x128xbf16>
    %3 = vector.shape_cast %2 : vector<8x8x128xbf16> to vector<64x128xbf16>
    %c0_4 = arith.constant 0 : index
    %c0_5 = arith.constant 0 : index
    %c0_6 = arith.constant 0 : index
    %c0_7 = arith.constant 0 : index
    %4 = vector.load %arg2[%c0_4, %c0_5, %c0_6, %c0_7] : memref<3x3x128x128xbf16, #tpu.memory_space<vmem>>, vector<1x1x128x128xbf16>
    %5 = vector.shape_cast %4 : vector<1x1x128x128xbf16> to vector<128x128xbf16>
    %cst_8 = arith.constant dense<0.000000e+00> : vector<64x128xf32>
    %6 = tpu.matmul %3, %5, %cst_8 {dimension_numbers = #tpu.dot_dimension_numbers<[1], [0], [0], [1], [0, 0, 1, 1], [], []>} : vector<64x128xbf16>, vector<128x128xbf16>, vector<64x128xf32> -> vector<64x128xf32>
    %7 = arith.addf %0, %6 : vector<64x128xf32>
    %c0_9 = arith.constant 0 : index
    %c0_10 = arith.constant 0 : index
    %c0_11 = arith.constant 0 : index
    %c1 = arith.constant 1 : index
    %c0_12 = arith.constant 0 : index
    %8 = vector.load %arg1[%c0_9, %c0_10, %c0_11, %c1, %c0_12] : memref<1x1x10x10x128xbf16, #tpu.memory_space<vmem>>, vector<1x1x8x8x128xbf16>
    %9 = vector.shape_cast %8 : vector<1x1x8x8x128xbf16> to vector<8x8x128xbf16>
    %10 = vector.shape_cast %9 : vector<8x8x128xbf16> to vector<64x128xbf16>
    %c0_13 = arith.constant 0 : index
    %c1_14 = arith.constant 1 : index
    %c0_15 = arith.constant 0 : index
    %c0_16 = arith.constant 0 : index
    %11 = vector.load %arg2[%c0_13, %c1_14, %c0_15, %c0_16] : memref<3x3x128x128xbf16, #tpu.memory_space<vmem>>, vector<1x1x128x128xbf16>
    %12 = vector.shape_cast %11 : vector<1x1x128x128xbf16> to vector<128x128xbf16>
    %cst_17 = arith.constant dense<0.000000e+00> : vector<64x128xf32>
    %13 = tpu.matmul %10, %12, %cst_17 {dimension_numbers = #tpu.dot_dimension_numbers<[1], [0], [0], [1], [0, 0, 1, 1], [], []>} : vector<64x128xbf16>, vector<128x128xbf16>, vector<64x128xf32> -> vector<64x128xf32>
    %14 = arith.addf %7, %13 : vector<64x128xf32>
    %c0_18 = arith.constant 0 : index
    %c0_19 = arith.constant 0 : index
    %c0_20 = arith.constant 0 : index
    %c2 = arith.constant 2 : index
    %c0_21 = arith.constant 0 : index
    %15 = vector.load %arg1[%c0_18, %c0_19, %c0_20, %c2, %c0_21] : memref<1x1x10x10x128xbf16, #tpu.memory_space<vmem>>, vector<1x1x8x8x128xbf16>
    %16 = vector.shape_cast %15 : vector<1x1x8x8x128xbf16> to vector<8x8x128xbf16>
    %17 = vector.shape_cast %16 : vector<8x8x128xbf16> to vector<64x128xbf16>
    %c0_22 = arith.constant 0 : index
    %c2_23 = arith.constant 2 : index
    %c0_24 = arith.constant 0 : index
    %c0_25 = arith.constant 0 : index
    %18 = vector.load %arg2[%c0_22, %c2_23, %c0_24, %c0_25] : memref<3x3x128x128xbf16, #tpu.memory_space<vmem>>, vector<1x1x128x128xbf16>
    %19 = vector.shape_cast %18 : vector<1x1x128x128xbf16> to vector<128x128xbf16>
    %cst_26 = arith.constant dense<0.000000e+00> : vector<64x128xf32>
    %20 = tpu.matmul %17, %19, %cst_26 {dimension_numbers = #tpu.dot_dimension_numbers<[1], [0], [0], [1], [0, 0, 1, 1], [], []>} : vector<64x128xbf16>, vector<128x128xbf16>, vector<64x128xf32> -> vector<64x128xf32>
    %21 = arith.addf %14, %20 : vector<64x128xf32>
    %c0_27 = arith.constant 0 : index
    %c0_28 = arith.constant 0 : index
    %c1_29 = arith.constant 1 : index
    %c0_30 = arith.constant 0 : index
    %c0_31 = arith.constant 0 : index
    %22 = vector.load %arg1[%c0_27, %c0_28, %c1_29, %c0_30, %c0_31] : memref<1x1x10x10x128xbf16, #tpu.memory_space<vmem>>, vector<1x1x8x8x128xbf16>
    %23 = vector.shape_cast %22 : vector<1x1x8x8x128xbf16> to vector<8x8x128xbf16>
    %24 = vector.shape_cast %23 : vector<8x8x128xbf16> to vector<64x128xbf16>
    %c1_32 = arith.constant 1 : index
    %c0_33 = arith.constant 0 : index
    %c0_34 = arith.constant 0 : index
    %c0_35 = arith.constant 0 : index
    %25 = vector.load %arg2[%c1_32, %c0_33, %c0_34, %c0_35] : memref<3x3x128x128xbf16, #tpu.memory_space<vmem>>, vector<1x1x128x128xbf16>
    %26 = vector.shape_cast %25 : vector<1x1x128x128xbf16> to vector<128x128xbf16>
    %cst_36 = arith.constant dense<0.000000e+00> : vector<64x128xf32>
    %27 = tpu.matmul %24, %26, %cst_36 {dimension_numbers = #tpu.dot_dimension_numbers<[1], [0], [0], [1], [0, 0, 1, 1], [], []>} : vector<64x128xbf16>, vector<128x128xbf16>, vector<64x128xf32> -> vector<64x128xf32>
    %28 = arith.addf %21, %27 : vector<64x128xf32>
    %c0_37 = arith.constant 0 : index
    %c0_38 = arith.constant 0 : index
    %c1_39 = arith.constant 1 : index
    %c1_40 = arith.constant 1 : index
    %c0_41 = arith.constant 0 : index
    %29 = vector.load %arg1[%c0_37, %c0_38, %c1_39, %c1_40, %c0_41] : memref<1x1x10x10x128xbf16, #tpu.memory_space<vmem>>, vector<1x1x8x8x128xbf16>
    %30 = vector.shape_cast %29 : vector<1x1x8x8x128xbf16> to vector<8x8x128xbf16>
    %31 = vector.shape_cast %30 : vector<8x8x128xbf16> to vector<64x128xbf16>
    %c1_42 = arith.constant 1 : index
    %c1_43 = arith.constant 1 : index
    %c0_44 = arith.constant 0 : index
    %c0_45 = arith.constant 0 : index
    %32 = vector.load %arg2[%c1_42, %c1_43, %c0_44, %c0_45] : memref<3x3x128x128xbf16, #tpu.memory_space<vmem>>, vector<1x1x128x128xbf16>
    %33 = vector.shape_cast %32 : vector<1x1x128x128xbf16> to vector<128x128xbf16>
    %cst_46 = arith.constant dense<0.000000e+00> : vector<64x128xf32>
    %34 = tpu.matmul %31, %33, %cst_46 {dimension_numbers = #tpu.dot_dimension_numbers<[1], [0], [0], [1], [0, 0, 1, 1], [], []>} : vector<64x128xbf16>, vector<128x128xbf16>, vector<64x128xf32> -> vector<64x128xf32>
    %35 = arith.addf %28, %34 : vector<64x128xf32>
    %c0_47 = arith.constant 0 : index
    %c0_48 = arith.constant 0 : index
    %c1_49 = arith.constant 1 : index
    %c2_50 = arith.constant 2 : index
    %c0_51 = arith.constant 0 : index
    %36 = vector.load %arg1[%c0_47, %c0_48, %c1_49, %c2_50, %c0_51] : memref<1x1x10x10x128xbf16, #tpu.memory_space<vmem>>, vector<1x1x8x8x128xbf16>
    %37 = vector.shape_cast %36 : vector<1x1x8x8x128xbf16> to vector<8x8x128xbf16>
    %38 = vector.shape_cast %37 : vector<8x8x128xbf16> to vector<64x128xbf16>
    %c1_52 = arith.constant 1 : index
    %c2_53 = arith.constant 2 : index
    %c0_54 = arith.constant 0 : index
    %c0_55 = arith.constant 0 : index
    %39 = vector.load %arg2[%c1_52, %c2_53, %c0_54, %c0_55] : memref<3x3x128x128xbf16, #tpu.memory_space<vmem>>, vector<1x1x128x128xbf16>
    %40 = vector.shape_cast %39 : vector<1x1x128x128xbf16> to vector<128x128xbf16>
    %cst_56 = arith.constant dense<0.000000e+00> : vector<64x128xf32>
    %41 = tpu.matmul %38, %40, %cst_56 {dimension_numbers = #tpu.dot_dimension_numbers<[1], [0], [0], [1], [0, 0, 1, 1], [], []>} : vector<64x128xbf16>, vector<128x128xbf16>, vector<64x128xf32> -> vector<64x128xf32>
    %42 = arith.addf %35, %41 : vector<64x128xf32>
    %c0_57 = arith.constant 0 : index
    %c0_58 = arith.constant 0 : index
    %c2_59 = arith.constant 2 : index
    %c0_60 = arith.constant 0 : index
    %c0_61 = arith.constant 0 : index
    %43 = vector.load %arg1[%c0_57, %c0_58, %c2_59, %c0_60, %c0_61] : memref<1x1x10x10x128xbf16, #tpu.memory_space<vmem>>, vector<1x1x8x8x128xbf16>
    %44 = vector.shape_cast %43 : vector<1x1x8x8x128xbf16> to vector<8x8x128xbf16>
    %45 = vector.shape_cast %44 : vector<8x8x128xbf16> to vector<64x128xbf16>
    %c2_62 = arith.constant 2 : index
    %c0_63 = arith.constant 0 : index
    %c0_64 = arith.constant 0 : index
    %c0_65 = arith.constant 0 : index
    %46 = vector.load %arg2[%c2_62, %c0_63, %c0_64, %c0_65] : memref<3x3x128x128xbf16, #tpu.memory_space<vmem>>, vector<1x1x128x128xbf16>
    %47 = vector.shape_cast %46 : vector<1x1x128x128xbf16> to vector<128x128xbf16>
    %cst_66 = arith.constant dense<0.000000e+00> : vector<64x128xf32>
    %48 = tpu.matmul %45, %47, %cst_66 {dimension_numbers = #tpu.dot_dimension_numbers<[1], [0], [0], [1], [0, 0, 1, 1], [], []>} : vector<64x128xbf16>, vector<128x128xbf16>, vector<64x128xf32> -> vector<64x128xf32>
    %49 = arith.addf %42, %48 : vector<64x128xf32>
    %c0_67 = arith.constant 0 : index
    %c0_68 = arith.constant 0 : index
    %c2_69 = arith.constant 2 : index
    %c1_70 = arith.constant 1 : index
    %c0_71 = arith.constant 0 : index
    %50 = vector.load %arg1[%c0_67, %c0_68, %c2_69, %c1_70, %c0_71] : memref<1x1x10x10x128xbf16, #tpu.memory_space<vmem>>, vector<1x1x8x8x128xbf16>
    %51 = vector.shape_cast %50 : vector<1x1x8x8x128xbf16> to vector<8x8x128xbf16>
    %52 = vector.shape_cast %51 : vector<8x8x128xbf16> to vector<64x128xbf16>
    %c2_72 = arith.constant 2 : index
    %c1_73 = arith.constant 1 : index
    %c0_74 = arith.constant 0 : index
    %c0_75 = arith.constant 0 : index
    %53 = vector.load %arg2[%c2_72, %c1_73, %c0_74, %c0_75] : memref<3x3x128x128xbf16, #tpu.memory_space<vmem>>, vector<1x1x128x128xbf16>
    %54 = vector.shape_cast %53 : vector<1x1x128x128xbf16> to vector<128x128xbf16>
    %cst_76 = arith.constant dense<0.000000e+00> : vector<64x128xf32>
    %55 = tpu.matmul %52, %54, %cst_76 {dimension_numbers = #tpu.dot_dimension_numbers<[1], [0], [0], [1], [0, 0, 1, 1], [], []>} : vector<64x128xbf16>, vector<128x128xbf16>, vector<64x128xf32> -> vector<64x128xf32>
    %56 = arith.addf %49, %55 : vector<64x128xf32>
    %c0_77 = arith.constant 0 : index
    %c0_78 = arith.constant 0 : index
    %c2_79 = arith.constant 2 : index
    %c2_80 = arith.constant 2 : index
    %c0_81 = arith.constant 0 : index
    %57 = vector.load %arg1[%c0_77, %c0_78, %c2_79, %c2_80, %c0_81] : memref<1x1x10x10x128xbf16, #tpu.memory_space<vmem>>, vector<1x1x8x8x128xbf16>
    %58 = vector.shape_cast %57 : vector<1x1x8x8x128xbf16> to vector<8x8x128xbf16>
    %59 = vector.shape_cast %58 : vector<8x8x128xbf16> to vector<64x128xbf16>
    %c2_82 = arith.constant 2 : index
    %c2_83 = arith.constant 2 : index
    %c0_84 = arith.constant 0 : index
    %c0_85 = arith.constant 0 : index
    %60 = vector.load %arg2[%c2_82, %c2_83, %c0_84, %c0_85] : memref<3x3x128x128xbf16, #tpu.memory_space<vmem>>, vector<1x1x128x128xbf16>
    %61 = vector.shape_cast %60 : vector<1x1x128x128xbf16> to vector<128x128xbf16>
    %cst_86 = arith.constant dense<0.000000e+00> : vector<64x128xf32>
    %62 = tpu.matmul %59, %61, %cst_86 {dimension_numbers = #tpu.dot_dimension_numbers<[1], [0], [0], [1], [0, 0, 1, 1], [], []>} : vector<64x128xbf16>, vector<128x128xbf16>, vector<64x128xf32> -> vector<64x128xf32>
    %63 = arith.addf %56, %62 : vector<64x128xf32>
    %c0_87 = arith.constant 0 : index
    %c0_88 = arith.constant 0 : index
    %64 = vector.load %arg3[%c0_87, %c0_88] : memref<1x128xf32, #tpu.memory_space<vmem>>, vector<1x128xf32>
    %65 = vector.broadcast %64 : vector<1x128xf32> to vector<64x128xf32>
    %66 = arith.mulf %63, %65 : vector<64x128xf32>
    %c0_89 = arith.constant 0 : index
    %c0_90 = arith.constant 0 : index
    %67 = vector.load %arg4[%c0_89, %c0_90] : memref<1x128xf32, #tpu.memory_space<vmem>>, vector<1x128xf32>
    %68 = vector.broadcast %67 : vector<1x128xf32> to vector<64x128xf32>
    %69 = arith.addf %66, %68 : vector<64x128xf32>
    %c0_91 = arith.constant 0 : index
    %c0_92 = arith.constant 0 : index
    %c0_93 = arith.constant 0 : index
    %c0_94 = arith.constant 0 : index
    %70 = vector.load %arg5[%c0_91, %c0_92, %c0_93, %c0_94] : memref<1x8x8x128xbf16, #tpu.memory_space<vmem>>, vector<1x8x8x128xbf16>
    %71 = vector.shape_cast %70 : vector<1x8x8x128xbf16> to vector<8x8x128xbf16>
    %72 = vector.shape_cast %71 : vector<8x8x128xbf16> to vector<64x128xbf16>
    %c0_95 = arith.constant 0 : index
    %c0_96 = arith.constant 0 : index
    %73 = vector.load %arg6[%c0_95, %c0_96] : memref<128x128xbf16, #tpu.memory_space<vmem>>, vector<128x128xbf16>
    %cst_97 = arith.constant dense<0.000000e+00> : vector<64x128xf32>
    %74 = tpu.matmul %72, %73, %cst_97 {dimension_numbers = #tpu.dot_dimension_numbers<[1], [0], [0], [1], [0, 0, 1, 1], [], []>} : vector<64x128xbf16>, vector<128x128xbf16>, vector<64x128xf32> -> vector<64x128xf32>
    %75 = arith.addf %69, %74 : vector<64x128xf32>
    %cst_98 = arith.constant 0.000000e+00 : f32
    %76 = vector.broadcast %cst_98 : f32 to vector<64x128xf32>
    %77 = arith.maximumf %75, %76 : vector<64x128xf32>
    %78 = vector.shape_cast %77 : vector<64x128xf32> to vector<8x8x128xf32>
    %c0_99 = arith.constant 0 : index
    %c0_100 = arith.constant 0 : index
    %c0_101 = arith.constant 0 : index
    %c0_102 = arith.constant 0 : index
    %79 = vector.load %arg7[%c0_99, %c0_100, %c0_101, %c0_102] : memref<1x8x8x128xf32, #tpu.memory_space<vmem>>, vector<1x8x8x128xf32>
    %80 = vector.shape_cast %79 : vector<1x8x8x128xf32> to vector<8x8x128xf32>
    %81 = vector.shape_cast %78 : vector<8x8x128xf32> to vector<1x8x8x128xf32>
    tpu.vector_store %arg7[%c0_99, %c0_100, %c0_101, %c0_102], %81 {strides = array<i32>} : memref<1x8x8x128xf32, #tpu.memory_space<vmem>>, vector<1x8x8x128xf32>,
    return
  }
  func.func @transform_0(%arg0: i32) -> (i32, i32, i32, i32, i32) {
    %c0_i32 = arith.constant 0 : i32
    %c0_i32_0 = arith.constant 0 : i32
    %c0_i32_1 = arith.constant 0 : i32
    %c0_i32_2 = arith.constant 0 : i32
    %c0_i32_3 = arith.constant 0 : i32
    return %arg0, %c0_i32, %c0_i32_0, %c0_i32_1, %c0_i32_2 : i32, i32, i32, i32, i32
  }
  func.func @transform_1(%arg0: i32) -> (i32, i32, i32, i32) {
    %c0_i32 = arith.constant 0 : i32
    %c0_i32_0 = arith.constant 0 : i32
    %c0_i32_1 = arith.constant 0 : i32
    %c0_i32_2 = arith.constant 0 : i32
    %c0_i32_3 = arith.constant 0 : i32
    return %c0_i32, %c0_i32_0, %c0_i32_1, %c0_i32_2 : i32, i32, i32, i32
  }
  func.func @transform_2(%arg0: i32) -> (i32, i32) {
    %c0_i32 = arith.constant 0 : i32
    %c0_i32_0 = arith.constant 0 : i32
    %c0_i32_1 = arith.constant 0 : i32
    return %c0_i32, %c0_i32_0 : i32, i32
  }
  func.func @transform_3(%arg0: i32) -> (i32, i32) {
    %c0_i32 = arith.constant 0 : i32
    %c0_i32_0 = arith.constant 0 : i32
    %c0_i32_1 = arith.constant 0 : i32
    return %c0_i32, %c0_i32_0 : i32, i32
  }
  func.func @transform_4(%arg0: i32) -> (i32, i32, i32, i32) {
    %c0_i32 = arith.constant 0 : i32
    %c0_i32_0 = arith.constant 0 : i32
    %c0_i32_1 = arith.constant 0 : i32
    %c0_i32_2 = arith.constant 0 : i32
    return %arg0, %c0_i32, %c0_i32_0, %c0_i32_1 : i32, i32, i32, i32
  }
  func.func @transform_5(%arg0: i32) -> (i32, i32) {
    %c0_i32 = arith.constant 0 : i32
    %c0_i32_0 = arith.constant 0 : i32
    %c0_i32_1 = arith.constant 0 : i32
    return %c0_i32, %c0_i32_0 : i32, i32
  }
  func.func @transform_6(%arg0: i32) -> (i32, i32, i32, i32) {
    %c0_i32 = arith.constant 0 : i32
    %c0_i32_0 = arith.constant 0 : i32
    %c0_i32_1 = arith.constant 0 : i32
    %c0_i32_2 = arith.constant 0 : i32
    return %arg0, %c0_i32, %c0_i32_0, %c0_i32_1 : i32, i32, i32, i32
  }
}

</mosaic_0001>

<bundles_post_ra>
// kernel: resnet_block_forward.2
= control target key start
LH: loop header
LB: loop body
LE: loop exit
PB: predicated region body
PF: predicated region fallthrough
CT: control target
= control target key end

     0   :  { %s2608_s15 = smov 0   ;;  %s3060_s0 = inlined_call_operand.vmem [shape: bf16[2,4,9,9,128], index: 0, kind: input, shape index: {}]   ;;  %s3061_s1 = inlined_call_operand.vmem [shape: bf16[3,3,128,128], index: 1, kind: input, shape index: {}]   ;;  %s3062_s2 = inlined_call_operand.vmem [shape: f32[1,128], index: 2, kind: input, shape index: {}]   ;;  %s3063_s3 = inlined_call_operand.vmem [shape: f32[1,128], index: 3, kind: input, shape index: {}]   ;;  %s3064_s4 = inlined_call_operand.vmem [shape: bf16[2,8,8,128], index: 4, kind: output, shape index: {}]  }
   0x1 LB: > { %s1834_s16 = sadd.s32 4294967295, %s2581_s15   ;;  %p1838_p0 = scmp.ge.s32.totalorder %s2581_s15, 1  ;;  %s2581_s15 = sphi %s2608_s15, %s14_s15  }
   0x2   : > { %p162_p1 = scmp.lt.s32.totalorder %s2581_s15, 3 }
   0x4   : > { %p163_p2 = pnand %p1838_p0, %p162_p1 }
   0x5   : > { %p188_p3 = scmp.lt.s32.totalorder (!%p163_p2), %s1834_s16, 1 }
   0x6   : > { %166 = sbr.rel (%p163_p2) target bundleno = 338 (0x152), region = 36 }
   0xb   : > { %v2452_v0 = vld [vmem:[%s3061_s1 + $0x78] sm:$0xff]  ;;  %v2451_v2 = vld [vmem:[%s3061_s1 + $0x70] sm:$0xff]  ;;  %s3068_s16 = smov (!%p188_p3, %s1834_s16), 1  ;;  %v2450_v6 = vld [vmem:[%s3061_s1 + $0x68] sm:$0xff]  ;;  %vm466_vm0 = vsmask.f32 3328 }
   0xc   : > { %v2460_v1 = vld [vmem:[%s3061_s1 + $0xb8] sm:$0xff]  ;;  %2548 = vmatpush.bf16.msra.mxu1 %v2452_v0  ;;  %320 = vmatpush.bf16.msra.mxu0 %v2452_v0  ;;  %v2459_v3 = vld [vmem:[%s3061_s1 + $0xb0] sm:$0xff]  ;;  %s2564_s27 = smul.u32 288, %s3068_s16  ;;  %v2458_v7 = vld [vmem:[%s3061_s1 + $0xa8] sm:$0xff]  ;;  %vm467_vm1 = vsmask.f32 7440 }
   0xd   : > { %662 = vmatpush.bf16.msra.mxu2 %v2460_v1  ;;  %v2472_v4 = vld [vmem:[%s3061_s1 + $0xf8] sm:$0xff]  ;;  %v2471_v5 = vld [vmem:[%s3061_s1 + $0xf0] sm:$0xff]  ;;  %v2470_v8 = vld [vmem:[%s3061_s1 + $0xe8] sm:$0xff]  ;;  %s2428_s29 = sshll.u32 %s3068_s16, 5 }
   0xe   : > { %797 = vmatpush.bf16.msra.mxu3 %v2472_v4  ;;  %s2643_s8 = scalar_lea.vmem %s3060_s0, %s2564_s27  ;;  %v2449_v10 = vld [vmem:[%s3061_s1 + $0x60] sm:$0xff]  ;;  %v2448_v23 = vld [vmem:[%s3061_s1 + $0x58] sm:$0xff]  ;;  %v2447_v31 = vld [vmem:[%s3061_s1 + $0x50] sm:$0xff]  ;;  %s3030_s6 = scalar_lea.vmem %s3064_s4, %s2428_s29 }
   0xf   : > { %v450_v9 = vld [vmem:[%s2643_s8] sm:$0xf]  ;;  %v452_v11 = vld [vmem:[%s2643_s8 + $0x8] sm:$0xf]  ;;  %v451_v16 = vld [vmem:[%s2643_s8 + $0x4] sm:$0x1] }
  0x10   : > { %2549 = vmatpush.bf16.msra.mxu1 %v2451_v2  ;;  %321 = vmatpush.bf16.msra.mxu0 %v2451_v2  ;;  %v2457_v12 = vld [vmem:[%s3061_s1 + $0xa0] sm:$0xff]  ;;  %v470_v13 = vshrl.u32 %v450_v9, 16  ;;  %v473_v14 = vshll.u32 %v450_v9, 16  ;;  %v484_v15 = vshrl.u32 %v452_v11, 16  ;;  %v453_v17 = vld [vmem:[%s2643_s8 + $0xc] sm:$0x1]  ;;  %vm2680_vm2 = vmor %vm466_vm0, %vm467_vm1 }
  0x11   : > { %663 = vmatpush.bf16.msra.mxu2 %v2459_v3  ;;  %v487_v18 = vshll.u32 %v452_v11, 16  ;;  %v2469_v19 = vld [vmem:[%s3061_s1 + $0xe0] sm:$0xff]  ;;  %v2456_v25 = vld [vmem:[%s3061_s1 + $0x98] sm:$0xff]  ;;  %v479_v27 = vshll.u32 %v451_v16, 16  ;;  %v493_v28 = vshll.u32 %v453_v17, 16  ;;  %v2455_v32 = vld [vmem:[%s3061_s1 + $0x90] sm:$0xff] }
  0x12   : > { %798 = vmatpush.bf16.msra.mxu3 %v2471_v5  ;;  %v472_v20 = vrot.slane %v470_v13, 4  ;;  %v475_v21 = vrot.slane %v473_v14, 5  ;;  %v486_v22 = vrot.slane %v484_v15, 4  ;;  %v2468_v30 = vld [vmem:[%s3061_s1 + $0xd8] sm:$0xff]  ;;  %v454_v37 = vld [vmem:[%s2643_s8 + $0x10] sm:$0xf] }
  0x13   : > { %v489_v24 = vrot.slane %v487_v18, 5  ;;  %v481_v34 = vrot.slane %v479_v27, 5  ;;  %v495_v36 = vrot.slane %v493_v28, 5  ;;  %v456_v39 = vld [vmem:[%s2643_s8 + $0x18] sm:$0xf]  ;;  %v2467_v40 = vld [vmem:[%s3061_s1 + $0xd0] sm:$0xff] }
  0x14   : > { %2550 = vmatpush.bf16.msra.mxu1 %v2450_v6  ;;  %322 = vmatpush.bf16.msra.mxu0 %v2450_v6  ;;  %v476_v26 = vor.u32 %v475_v21, %v472_v20  ;;  %v2446_v41 = vld [vmem:[%s3061_s1 + $0x48] sm:$0xff]  ;;  %v498_v42 = vshrl.u32 %v454_v37, 16  ;;  %v501_v43 = vshll.u32 %v454_v37, 16  ;;  %v512_v47 = vshrl.u32 %v456_v39, 16  ;;  %v2445_v49 = vld [vmem:[%s3061_s1 + $0x40] sm:$0xff]  ;;  %v2440_v52 = vld [vmem:[%s3061_s1 + $0x38] sm:$0xff] }
  0x15   : > { %664 = vmatpush.bf16.msra.mxu2 %v2458_v7  ;;  %v490_v29 = vor.u32 %v489_v24, %v486_v22  ;;  %v2454_v44 = vld [vmem:[%s3061_s1 + $0x88] sm:$0xff]  ;;  %v515_v48 = vshll.u32 %v456_v39, 16  ;;  %v2443_v51 = vld [vmem:[%s2643_s8 + $0x6c] sm:$0xf0]  ;;  %v2453_v54 = vld [vmem:[%s3061_s1 + $0x80] sm:$0xff] }
  0x16   : > { %799 = vmatpush.bf16.msra.mxu3 %v2470_v8  ;;  %v477_v33 = vrot.slane %v476_v26, 4  ;;  %v1876_v50 = vld [vmem:[%s2643_s8 + $0x68] sm:$0xf]  ;;  %v2441_v56 = vld [vmem:[%s2643_s8 + $0x4c] sm:$0xf0]  ;;  %v500_v60 = vrot.slane %v498_v42, 4 }
  0x17   : > { %v491_v35 = vrot.slane %v490_v29, 4  ;;  %v2466_v53 = vld [vmem:[%s3061_s1 + $0xc8] sm:$0xff]  ;;  %v455_v59 = vld [vmem:[%s2643_s8 + $0x14] sm:$0x1]  ;;  %v503_v61 = vrot.slane %v501_v43, 5  ;;  %v514_v62 = vrot.slane %v512_v47, 4  ;;  %v1877_v3 = vor.u32 %v2443_v51, %v1876_v50 }
  0x18   : > { %2551 = vmatpush.bf16.msra.mxu1 %v2449_v10  ;;  %323 = vmatpush.bf16.msra.mxu0 %v2449_v10  ;;  %v482_v45 = vsel %vm2680_vm2, %v477_v33, %v481_v34  ;;  %v1868_v55 = vld [vmem:[%s2643_s8 + $0x48] sm:$0xf]  ;;  %v517_v63 = vrot.slane %v515_v48, 5  ;;  %v2484_v0 = vld [vmem:[%s3061_s1 + $0x138] sm:$0xff]  ;;  %v2465_v6 = vld [vmem:[%s3061_s1 + $0xc0] sm:$0xff]  ;;  %v507_v9 = vshll.u32 %v455_v59, 16 }
  0x19   : > { %665 = vmatpush.bf16.msra.mxu2 %v2457_v12  ;;  %v496_v46 = vsel %vm2680_vm2, %v491_v35, %v495_v36  ;;  %v598_v57 = vunpack.c.l.b16 %v482_v45  ;;  %v2504_v1 = vld [vmem:[%s3061_s1 + $0x1b8] sm:$0xff]  ;;  %v1869_v4 = vor.u32 %v2441_v56, %v1868_v55  ;;  %v2036_v7 = vld [vmem:[%s2643_s8 + $0x90] sm:$0xf]  ;;  %v504_v11 = vor.u32 %v503_v61, %v500_v60  ;;  %v2438_v18 = vld [vmem:[%s3061_s1 + $0x28] sm:$0xff] }
  0x1a   : > { %800 = vmatpush.bf16.msra.mxu3 %v2469_v19  ;;  %v599_v58 = vunpack.c.l.b16 %v496_v46  ;;  %v457_v2 = vld [vmem:[%s2643_s8 + $0x1c] sm:$0x1]  ;;  %v2461_v8 = vld [vmem:[%s2643_s8 + $0x94] sm:$0xf0]  ;;  %v2439_v10 = vld [vmem:[%s3061_s1 + $0x30] sm:$0xff]  ;;  %v518_v12 = vor.u32 %v517_v63, %v514_v62  ;;  %v509_v19 = vrot.slane %v507_v9, 5 }
  0x1b   : > { %v521_v13 = vshll.u32 %v457_v2, 16  ;;  %v2516_v14 = vld [vmem:[%s3061_s1 + $0x1f8] sm:$0xff]  ;;  %v2483_v15 = vld [vmem:[%s3061_s1 + $0x130] sm:$0xff]  ;;  %v2037_v17 = vor.u32 %v2461_v8, %v2036_v7  ;;  %v505_v20 = vrot.slane %v504_v11, 4  ;;  %v458_v24 = vld [vmem:[%s2643_s8 + $0x20] sm:$0xf] }
  0x1c   : > { %2552 = vmatpush.bf16.msra.mxu1 %v2448_v23  ;;  %324 = vmatpush.bf16.msra.mxu0 %v2448_v23  ;;  %v606_v5 = vpack.c.b16 %v599_v58, %v598_v57  ;;  %v2503_v16 = vld [vmem:[%s3061_s1 + $0x1b0] sm:$0xff]  ;;  %v519_v21 = vrot.slane %v518_v12, 4  ;;  %v2502_v26 = vld [vmem:[%s3061_s1 + $0x1a8] sm:$0xff]  ;;  %v526_v28 = vshrl.u32 %v458_v24, 16  ;;  %v529_v29 = vshll.u32 %v458_v24, 16  ;;  %v2481_v36 = vld [vmem:[%s3061_s1 + $0x120] sm:$0xff] }
  0x1d   : > { %666 = vmatpush.bf16.msra.mxu2 %v2456_v25  ;;  %v523_v22 = vrot.slane %v521_v13, 5  ;;  %v2515_v23 = vld [vmem:[%s3061_s1 + $0x1f0] sm:$0xff]  ;;  %v2482_v25 = vld [vmem:[%s3061_s1 + $0x128] sm:$0xff]  ;;  %v2501_v37 = vld [vmem:[%s3061_s1 + $0x1a0] sm:$0xff] }
  0x1e   : > { %801 = vmatpush.bf16.msra.mxu3 %v2468_v30  ;;  %v460_v27 = vld [vmem:[%s2643_s8 + $0x28] sm:$0xf]  ;;  %v2437_v30 = vld [vmem:[%s3061_s1 + $0x20] sm:$0xff]  ;;  %v1880_v39 = vld [vmem:[%s2643_s8 + $0x78] sm:$0xf]  ;;  %v528_v45 = vrot.slane %v526_v28, 4 }
  0x1f   : > { %v540_v33 = vshrl.u32 %v460_v27, 16  ;;  %v543_v34 = vshll.u32 %v460_v27, 16  ;;  %v2514_v35 = vld [vmem:[%s3061_s1 + $0x1e8] sm:$0xff]  ;;  %v2442_v42 = vld [vmem:[%s2643_s8 + $0x5c] sm:$0xf0]  ;;  %v531_v46 = vrot.slane %v529_v29, 5 }
  0x20   : > { %2553 = vmatpush.bf16.msra.mxu1 %v2447_v31  ;;  %325 = vmatpush.bf16.msra.mxu0 %v2447_v31  ;;  %v510_v31 = vsel %vm2680_vm2, %v505_v20, %v509_v19  ;;  %v2436_v47 = vld [vmem:[%s3061_s1 + $0x18] sm:$0xff]  ;;  %v459_v51 = vld [vmem:[%s2643_s8 + $0x24] sm:$0x1]  ;;  %v2040_v56 = vld [vmem:[%s2643_s8 + $0xa0] sm:$0xf] }
  0x21   : > { %667 = vmatpush.bf16.msra.mxu2 %v2455_v32  ;;  %v524_v32 = vsel %vm2680_vm2, %v519_v21, %v523_v22  ;;  %v600_v43 = vunpack.c.l.b16 %v510_v31  ;;  %v542_v48 = vrot.slane %v540_v33, 4  ;;  %v2480_v50 = vld [vmem:[%s3061_s1 + $0x118] sm:$0xff]  ;;  %v2462_v57 = vld [vmem:[%s2643_s8 + $0xa4] sm:$0xf0]  ;;  %v532_v58 = vor.u32 %v531_v46, %v528_v45  ;;  %v2435_v59 = vld [vmem:[%s3061_s1 + $0x10] sm:$0xff] }
  0x22   : > { %802 = vmatpush.bf16.msra.mxu3 %v2467_v40  ;;  %v2444_v40 = vld [vmem:[%s2643_s8 + $0x7c] sm:$0xf0]  ;;  %v535_v60 = vshll.u32 %v459_v51, 16  ;;  %v2479_v63 = vld [vmem:[%s3061_s1 + $0x110] sm:$0xff]  ;;  %v2434_v2 = vld [vmem:[%s3061_s1 + $0x8] sm:$0xff] }
  0x23   : > { %v2513_v7 = vld [vmem:[%s3061_s1 + $0x1e0] sm:$0xff]  ;;  %v462_v8 = vld [vmem:[%s2643_s8 + $0x30] sm:$0xf]  ;;  %v2478_v9 = vld [vmem:[%s3061_s1 + $0x108] sm:$0xff] }
  0x24   : > { %2554 = vmatpush.bf16.msra.mxu1 %v2446_v41  ;;  %326 = vmatpush.bf16.msra.mxu0 %v2446_v41  ;;  %v1872_v41 = vld [vmem:[%s2643_s8 + $0x58] sm:$0xf]  ;;  %v2499_v11 = vld [vmem:[%s3061_s1 + $0x190] sm:$0xff]  ;;  %v554_v12 = vshrl.u32 %v462_v8, 16  ;;  %v557_v13 = vshll.u32 %v462_v8, 16  ;;  %v2477_v21 = vld [vmem:[%s3061_s1 + $0x100] sm:$0xff] }
  0x25   : > { %668 = vmatpush.bf16.msra.mxu2 %v2454_v44  ;;  %v601_v44 = vunpack.c.l.b16 %v524_v32  ;;  %v2492_v20 = vld [vmem:[%s3061_s1 + $0x178] sm:$0xff]  ;;  %v1916_v22 = vld [vmem:[%s2643_s8] sm:$0xf]  ;;  %v2491_v33 = vld [vmem:[%s3061_s1 + $0x170] sm:$0xff] }
  0x26   : > { %803 = vmatpush.bf16.msra.mxu3 %v2466_v53  ;;  %v1881_v53 = vor.u32 %v2444_v40, %v1880_v39  ;;  %v2524_v24 = vld [vmem:[%s3061_s1 + $0x238] sm:$0xff]  ;;  %v556_v29 = vrot.slane %v554_v12, 4  ;;  %v2044_v40 = vld [vmem:[%s2643_s8 + $0xb0] sm:$0xf]  ;;  %v2486_v12 = vld [vmem:[%s3061_s1 + $0x148] sm:$0xff] }
  0x27   : > { %v607_v55 = vpack.c.b16 %v601_v44, %v600_v43  ;;  %v2523_v43 = vld [vmem:[%s3061_s1 + $0x230] sm:$0xff] }
  0x28   : > { %2555 = vmatpush.bf16.msra.mxu1 %v2445_v49  ;;  %327 = vmatpush.bf16.msra.mxu0 %v2445_v49  ;;  %v545_v49 = vrot.slane %v543_v34, 5  ;;  %v463_v34 = vld [vmem:[%s2643_s8 + $0x34] sm:$0x1] }
  0x29   : > { %669 = vmatpush.bf16.msra.mxu2 %v2453_v54  ;;  %v1873_v54 = vor.u32 %v2442_v42, %v1872_v41  ;;  %v2463_v41 = vld [vmem:[%s2643_s8 + $0xb4] sm:$0xf0]  ;;  %v563_v44 = vshll.u32 %v463_v34, 16  ;;  %v2364_v34 = vld [vmem:[%s2643_s8 + $0x10] sm:$0xf] }
  0x2a   : > { %804 = vmatpush.bf16.msra.mxu3 %v2465_v6  ;;  %v546_v61 = vor.u32 %v545_v49, %v542_v48  ;;  %v2498_v48 = vld [vmem:[%s3061_s1 + $0x188] sm:$0xff]  ;;  %v2045_v49 = vor.u32 %v2463_v41, %v2044_v40 }
  0x2b   : > { %338 = vmatmul.bf16.vlgmr.msra.gmra.mxu1 %v1877_v3  ;;  %328 = vmatmul.bf16.vlgmr.msra.gmra.mxu0 %v1869_v4  ;;  %v533_v3 = vrot.slane %v532_v58, 4  ;;  %v537_v4 = vrot.slane %v535_v60, 5  ;;  %v565_v51 = vrot.slane %v563_v44, 5  ;;  %v2510_v58 = vld [vmem:[%s3061_s1 + $0x1c8] sm:$0xff]  ;;  %v1928_v44 = vld [vmem:[%s2643_s8 + $0x30] sm:$0xf] }
  0x2c   : > { %421 = vmatpush.bf16.msrb.mxu1 %v2440_v52  ;;  %932 = vmatpush.bf16.msrb.mxu0 %v2484_v0  ;;  %v461_v52 = vld [vmem:[%s2643_s8 + $0x2c] sm:$0x1]  ;;  %v2041_v0 = vor.u32 %v2462_v57, %v2040_v56  ;;  %v2489_v57 = vld [vmem:[%s3061_s1 + $0x160] sm:$0xff] }
  0x2d   : > { %1313 = vmatpush.bf16.msrb.mxu2 %v2504_v1  ;;  %805 = vmatmul.bf16.vlgmr.msra.gmra.mxu3 %v2037_v17  ;;  %v549_v62 = vshll.u32 %v461_v52, 16  ;;  %v2500_v1 = vld [vmem:[%s3061_s1 + $0x198] sm:$0xff]  ;;  %v2522_v56 = vld [vmem:[%s3061_s1 + $0x228] sm:$0xff] }
  0x2e   : > { %670 = vmatmul.bf16.vlgmr.msra.gmra.mxu2 %v606_v5  ;;  %1448 = vmatpush.bf16.msrb.mxu3 %v2516_v14  ;;  %v547_v5 = vrot.slane %v546_v61, 4  ;;  %v2512_v14 = vld [vmem:[%s3061_s1 + $0x1d8] sm:$0xff] }
  0x2f   : > { %v551_v6 = vrot.slane %v549_v62, 5  ;;  %v2488_v62 = vld [vmem:[%s3061_s1 + $0x158] sm:$0xff] }
  0x30   : > { %422 = vmatpush.bf16.msrb.mxu1 %v2439_v10  ;;  %933 = vmatpush.bf16.msrb.mxu0 %v2483_v15  ;;  %v464_v10 = vld [vmem:[%s2643_s8 + $0x38] sm:$0xf]  ;;  %v2433_v15 = vld [vmem:[%s3061_s1] sm:$0xff] }
  0x31   : > { %1314 = vmatpush.bf16.msrb.mxu2 %v2503_v16  ;;  %v538_v16 = vsel %vm2680_vm2, %v533_v3, %v537_v4  ;;  %v552_v17 = vsel %vm2680_vm2, %v547_v5, %v551_v6  ;;  %v571_v19 = vshll.u32 %v464_v10, 16  ;;  %v2487_v5 = vld [vmem:[%s3061_s1 + $0x150] sm:$0xff] }
  0x32   : > { %1449 = vmatpush.bf16.msrb.mxu3 %v2515_v23  ;;  %v2429_v23 = vld [vmem:[%s2643_s8 + $0x4] sm:$0xf0]  ;;  %v602_v27 = vunpack.c.l.b16 %v538_v16  ;;  %v603_v28 = vunpack.c.l.b16 %v552_v17  ;;  %v2519_v16 = vld [vmem:[%s3061_s1 + $0x210] sm:$0xff]  ;;  %v1924_v17 = vld [vmem:[%s2643_s8 + $0x20] sm:$0xf] }
  0x33   : > { %v573_v32 = vrot.slane %v571_v19, 5  ;;  %v2431_v19 = vld [vmem:[%s2643_s8 + $0x24] sm:$0xf0] }
  0x34   : > { %423 = vmatpush.bf16.msrb.mxu1 %v2438_v18  ;;  %934 = vmatpush.bf16.msrb.mxu0 %v2482_v25  ;;  %v568_v18 = vshrl.u32 %v464_v10, 16  ;;  %v2108_v25 = vld [vmem:[%s2643_s8 + $0xd8] sm:$0xf]  ;;  %v608_v39 = vpack.c.b16 %v603_v28, %v602_v27  ;;  %v2464_v10 = vld [vmem:[%s2643_s8 + $0xc4] sm:$0xf0] }
  0x35   : > { %1315 = vmatpush.bf16.msrb.mxu2 %v2502_v26  ;;  %v2473_v26 = vld [vmem:[%s2643_s8 + $0xdc] sm:$0xf0]  ;;  %v2316_v27 = vld [vmem:[%s2643_s8 + $0x50] sm:$0xf]  ;;  %v2505_v28 = vld [vmem:[%s2643_s8 + $0x54] sm:$0xf0] }
  0x36   : > { %1450 = vmatpush.bf16.msrb.mxu3 %v2514_v35  ;;  %v570_v31 = vrot.slane %v568_v18, 4  ;;  %v465_v35 = vld [vmem:[%s2643_s8 + $0x3c] sm:$0x1]  ;;  %v2518_v18 = vld [vmem:[%s3061_s1 + $0x208] sm:$0xff] }
  0x37   : > { %v577_v46 = vshll.u32 %v465_v35, 16 }
  0x38   : > { %424 = vmatpush.bf16.msrb.mxu1 %v2437_v30  ;;  %935 = vmatpush.bf16.msrb.mxu0 %v2481_v36  ;;  %v559_v30 = vrot.slane %v557_v13, 5  ;;  %v1917_v36 = vor.u32 %v2429_v23, %v1916_v22  ;;  %v574_v45 = vor.u32 %v573_v32, %v570_v31  ;;  %v2509_v13 = vld [vmem:[%s3061_s1 + $0x1c0] sm:$0xff]  ;;  %v2244_v22 = vld [vmem:[%s2643_s8 + $0x8] sm:$0xf]  ;;  %v2493_v23 = vld [vmem:[%s2643_s8 + $0xc] sm:$0xf0] }
  0x39   : > { %1316 = vmatpush.bf16.msrb.mxu2 %v2501_v37  ;;  %v2109_v37 = vor.u32 %v2473_v26, %v2108_v25  ;;  %v2245_v26 = vor.u32 %v2493_v23, %v2244_v22  ;;  %v2154_v31 = vld [vmem:[%s2643_s8 + $0x90] sm:$0xf]  ;;  %v2156_v32 = vld [vmem:[%s2643_s8 + $0x98] sm:$0xf] }
  0x3a   : > { %1451 = vmatpush.bf16.msrb.mxu3 %v2513_v7  ;;  %v560_v42 = vor.u32 %v559_v30, %v556_v29  ;;  %v575_v52 = vrot.slane %v574_v45, 4  ;;  %v2317_v29 = vor.u32 %v2505_v28, %v2316_v27  ;;  %v2517_v30 = vld [vmem:[%s3061_s1 + $0x200] sm:$0xff]  ;;  %v986_v35 = vshrl.u32 %v2154_v31, 16  ;;  %v2432_v45 = vld [vmem:[%s2643_s8 + $0x34] sm:$0xf0] }
  0x3b   : > { %343 = vmatmul.bf16.gmra.mxu1 %v1881_v53  ;;  %333 = vmatmul.bf16.gmra.mxu0 %v1873_v54  ;;  %v579_v53 = vrot.slane %v577_v46, 5  ;;  %v2497_v54 = vld [vmem:[%s3061_s1 + $0x180] sm:$0xff]  ;;  %v2120_v46 = vld [vmem:[%s2643_s8 + $0x108] sm:$0xf] }
  0x3c   : > { %425 = vmatpush.bf16.msrb.mxu1 %v2436_v47  ;;  %936 = vmatpush.bf16.msrb.mxu0 %v2480_v50  ;;  %v2490_v47 = vld [vmem:[%s3061_s1 + $0x168] sm:$0xff]  ;;  %v561_v50 = vrot.slane %v560_v42, 4  ;;  %v1516_v42 = vshrl.u32 %v2364_v34, 16 }
  0x3d   : > { %1317 = vmatpush.bf16.msrb.mxu2 %v2500_v1  ;;  %810 = vmatmul.bf16.gmra.mxu3 %v2041_v0  ;;  %v580_v61 = vsel %vm2680_vm2, %v575_v52, %v579_v53  ;;  %v2430_v0 = vld [vmem:[%s2643_s8 + $0x14] sm:$0xf0]  ;;  %v2112_v1 = vld [vmem:[%s2643_s8 + $0xe8] sm:$0xf] }
  0x3e   : > { %675 = vmatmul.bf16.gmra.mxu2 %v607_v55  ;;  %1452 = vmatpush.bf16.msrb.mxu3 %v2512_v14  ;;  %v2511_v55 = vld [vmem:[%s3061_s1 + $0x1d0] sm:$0xff]  ;;  %v566_v60 = vsel %vm2680_vm2, %v561_v50, %v565_v51  ;;  %v605_v4 = vunpack.c.l.b16 %v580_v61  ;;  %v2520_v14 = vld [vmem:[%s3061_s1 + $0x218] sm:$0xff]  ;;  %v988_v51 = vrot.slane %v986_v35, 4 }
  0x3f   : > { %v604_v3 = vunpack.c.l.b16 %v566_v60  ;;  %v2157_v50 = vld [vmem:[%s2643_s8 + $0x9c] sm:$0x1]  ;;  %v2363_v60 = vld [vmem:[%s2643_s8 + $0xc] sm:$0x1]  ;;  %v2365_v61 = vld [vmem:[%s2643_s8 + $0x14] sm:$0x1] }
  0x40   : > { %426 = vmatpush.bf16.msrb.mxu1 %v2435_v59  ;;  %937 = vmatpush.bf16.msrb.mxu0 %v2479_v63  ;;  %v2521_v59 = vld [vmem:[%s3061_s1 + $0x220] sm:$0xff]  ;;  %v1920_v63 = vld [vmem:[%s2643_s8 + $0x10] sm:$0xf] }
  0x41   : > { %1318 = vmatpush.bf16.msrb.mxu2 %v2499_v11  ;;  %v1921_v6 = vor.u32 %v2430_v0, %v1920_v63  ;;  %v609_v8 = vpack.c.b16 %v605_v4, %v604_v3  ;;  %v1009_v0 = vshll.u32 %v2157_v50, 16 }
  0x42   : > { %1453 = vmatpush.bf16.msrb.mxu3 %v2511_v55  ;;  %v2494_v55 = vld [vmem:[%s2643_s8 + $0x1c] sm:$0xf0] }
  0x44   : > { %427 = vmatpush.bf16.msrb.mxu1 %v2434_v2  ;;  %938 = vmatpush.bf16.msrb.mxu0 %v2478_v9  ;;  %v2474_v2 = vld [vmem:[%s2643_s8 + $0xec] sm:$0xf0]  ;;  %v2048_v9 = vld [vmem:[%s2643_s8 + $0xc0] sm:$0xf] }
  0x45   : > { %1319 = vmatpush.bf16.msrb.mxu2 %v2498_v48  ;;  %v2113_v7 = vor.u32 %v2474_v2, %v2112_v1  ;;  %v2049_v11 = vor.u32 %v2464_v10, %v2048_v9  ;;  %v2248_v48 = vld [vmem:[%s2643_s8 + $0x18] sm:$0xf]  ;;  %v1525_v10 = vshll.u32 %v2365_v61, 16 }
  0x46   : > { %1454 = vmatpush.bf16.msrb.mxu3 %v2510_v58  ;;  %v1518_v58 = vrot.slane %v1516_v42, 4  ;;  %v2249_v2 = vor.u32 %v2494_v55, %v2248_v48  ;;  %v2161_v42 = vld [vmem:[%s2643_s8 + $0xac] sm:$0x1] }
  0x47   : > { %v1527_v23 = vrot.slane %v1525_v10, 5 }
  0x48   : > { %428 = vmatpush.bf16.msrb.mxu1 %v2433_v15  ;;  %939 = vmatpush.bf16.msrb.mxu0 %v2477_v21  ;;  %v2485_v15 = vld [vmem:[%s3061_s1 + $0x140] sm:$0xff] }
  0x49   : > { %1320 = vmatpush.bf16.msrb.mxu2 %v2497_v54  ;;  %v2475_v21 = vld [vmem:[%s2643_s8 + $0xfc] sm:$0xf0] }
  0x4a   : > { %1455 = vmatpush.bf16.msrb.mxu3 %v2509_v13  ;;  %v2158_v13 = vld [vmem:[%s2643_s8 + $0xa0] sm:$0xf] }
  0x4b   : > { %429 = vmatmul.bf16.vlgmr.msrb.gmra.mxu1 %v1917_v36  ;;  %940 = vmatmul.bf16.vlgmr.msrb.gmra.mxu0 %v2109_v37  ;;  %v989_v36 = vshll.u32 %v2154_v31, 16  ;;  %v1000_v37 = vshrl.u32 %v2156_v32, 16 }
  0x4c   : > { %1178 = vmatpush.bf16.msra.mxu1 %v2492_v20  ;;  %1694 = vmatpush.bf16.msra.mxu0 %v2524_v24  ;;  %v2116_v20 = vld [vmem:[%s2643_s8 + $0xf8] sm:$0xf] }
  0x4d   : > { %815 = vmatmul.bf16.gmra.mxu3 %v2045_v49  ;;  %2556 = vmatpush.bf16.msra.mxu2 %v2524_v24  ;;  %v1925_v24 = vor.u32 %v2431_v19, %v1924_v17  ;;  %v2117_v25 = vor.u32 %v2475_v21, %v2116_v20  ;;  %v2155_v49 = vld [vmem:[%s2643_s8 + $0x94] sm:$0x1]  ;;  %v991_v52 = vrot.slane %v989_v36, 5  ;;  %v1002_v53 = vrot.slane %v1000_v37, 4  ;;  %v2368_v19 = vld [vmem:[%s2643_s8 + $0x20] sm:$0xf] }
  0x4e   : > { %680 = vmatmul.bf16.gmra.mxu2 %v608_v39  ;;  %v1003_v39 = vshll.u32 %v2156_v32, 16  ;;  %v995_v63 = vshll.u32 %v2155_v49, 16  ;;  %v1547_v31 = vshll.u32 %v2368_v19, 16  ;;  %v2159_v36 = vld [vmem:[%s2643_s8 + $0xa4] sm:$0x1] }
  0x4f   : > { %v992_v3 = vor.u32 %v991_v52, %v988_v51  ;;  %v2367_v51 = vld [vmem:[%s2643_s8 + $0x1c] sm:$0x1]  ;;  %v2369_v52 = vld [vmem:[%s2643_s8 + $0x24] sm:$0x1] }
  0x50   : > { %1179 = vmatpush.bf16.msra.mxu1 %v2491_v33  ;;  %1695 = vmatpush.bf16.msra.mxu0 %v2523_v43  ;;  %v2362_v33 = vld [vmem:[%s2643_s8 + $0x8] sm:$0xf]  ;;  %v1005_v54 = vrot.slane %v1003_v39, 5 }
  0x51   : > { %2557 = vmatpush.bf16.msra.mxu2 %v2523_v43  ;;  %v1502_v40 = vshrl.u32 %v2362_v33, 16  ;;  %v1505_v41 = vshll.u32 %v2362_v33, 16  ;;  %v1519_v43 = vshll.u32 %v2364_v34, 16 }
  0x52   : > { %v1006_v4 = vor.u32 %v1005_v54, %v1002_v53  ;;  %v2252_v53 = vld [vmem:[%s2643_s8 + $0x28] sm:$0xf]  ;;  %v2495_v54 = vld [vmem:[%s2643_s8 + $0x2c] sm:$0xf0] }
  0x54   : > { %1180 = vmatpush.bf16.msra.mxu1 %v2490_v47  ;;  %1696 = vmatpush.bf16.msra.mxu0 %v2522_v56  ;;  %v2476_v47 = vld [vmem:[%s2643_s8 + $0x10c] sm:$0xf0] }
  0x55   : > { %2558 = vmatpush.bf16.msra.mxu2 %v2522_v56  ;;  %v1504_v56 = vrot.slane %v1502_v40, 4  ;;  %v2121_v1 = vor.u32 %v2476_v47, %v2120_v46  ;;  %v1549_v46 = vrot.slane %v1547_v31, 5 }
  0x58   : > { %1181 = vmatpush.bf16.msra.mxu1 %v2489_v57  ;;  %1697 = vmatpush.bf16.msra.mxu0 %v2521_v59  ;;  %v1507_v57 = vrot.slane %v1505_v41, 5 }
  0x59   : > { %2559 = vmatpush.bf16.msra.mxu2 %v2521_v59  ;;  %v1521_v59 = vrot.slane %v1519_v43, 5 }
  0x5b   : > { %434 = vmatmul.bf16.gmra.mxu1 %v1921_v6  ;;  %945 = vmatmul.bf16.gmra.mxu0 %v2113_v7  ;;  %v2506_v6 = vld [vmem:[%s2643_s8 + $0x64] sm:$0xf0]  ;;  %v1508_v7 = vor.u32 %v1507_v57, %v1504_v56  ;;  %v1522_v9 = vor.u32 %v1521_v59, %v1518_v58  ;;  %v1023_v56 = vshll.u32 %v2159_v36, 16  ;;  %v1037_v58 = vshll.u32 %v2161_v42, 16  ;;  %v2163_v42 = vld [vmem:[%s2643_s8 + $0xb4] sm:$0x1] }
  0x5c   : > { %1182 = vmatpush.bf16.msra.mxu1 %v2488_v62  ;;  %1698 = vmatpush.bf16.msra.mxu0 %v2520_v14  ;;  %v1929_v62 = vor.u32 %v2432_v45, %v1928_v44 }
  0x5d   : > { %820 = vmatmul.bf16.gmra.mxu3 %v2049_v11  ;;  %2560 = vmatpush.bf16.msra.mxu2 %v2520_v14  ;;  %v997_v11 = vrot.slane %v995_v63, 5  ;;  %v2160_v14 = vld [vmem:[%s2643_s8 + $0xa8] sm:$0xf]  ;;  %v1509_v20 = vrot.slane %v1508_v7, 4  ;;  %v1523_v22 = vrot.slane %v1522_v9, 4  ;;  %v1039_v7 = vrot.slane %v1037_v58, 5 }
  0x5e   : > { %685 = vmatmul.bf16.gmra.mxu2 %v609_v8  ;;  %v1511_v8 = vshll.u32 %v2363_v60, 16  ;;  %v1031_v27 = vshll.u32 %v2160_v14, 16  ;;  %v1539_v60 = vshll.u32 %v2367_v51, 16  ;;  %v2256_v51 = vld [vmem:[%s2643_s8 + $0x38] sm:$0xf] }
  0x5f   : > { %v1528_v35 = vsel %vm2680_vm2, %v1523_v22, %v1527_v23  ;;  %v2375_v58 = vld [vmem:[%s2643_s8 + $0x3c] sm:$0x1] }
  0x60   : > { %1183 = vmatpush.bf16.msra.mxu1 %v2487_v5  ;;  %1699 = vmatpush.bf16.msra.mxu0 %v2519_v16  ;;  %v2320_v5 = vld [vmem:[%s2643_s8 + $0x60] sm:$0xf]  ;;  %v1513_v21 = vrot.slane %v1511_v8, 5  ;;  %v1033_v41 = vrot.slane %v1031_v27, 5  ;;  %v1631_v50 = vunpack.c.l.b16 %v1528_v35  ;;  %v1541_v9 = vrot.slane %v1539_v60, 5 }
  0x61   : > { %2561 = vmatpush.bf16.msra.mxu2 %v2519_v16  ;;  %v1007_v16 = vrot.slane %v1006_v4, 4  ;;  %v2321_v17 = vor.u32 %v2506_v6, %v2320_v5  ;;  %v1025_v5 = vrot.slane %v1023_v56, 5  ;;  %v2496_v56 = vld [vmem:[%s2643_s8 + $0x3c] sm:$0xf0] }
  0x62   : > { %v1514_v34 = vsel %vm2680_vm2, %v1509_v20, %v1513_v21  ;;  %v2374_v21 = vld [vmem:[%s2643_s8 + $0x38] sm:$0xf] }
  0x63   : > { %v1630_v49 = vunpack.c.l.b16 %v1514_v34  ;;  %v1589_v34 = vshll.u32 %v2374_v21, 16 }
  0x64   : > { %1184 = vmatpush.bf16.msra.mxu1 %v2486_v12  ;;  %1700 = vmatpush.bf16.msra.mxu0 %v2518_v18  ;;  %v1011_v12 = vrot.slane %v1009_v0, 5 }
  0x65   : > { %2562 = vmatpush.bf16.msra.mxu2 %v2518_v18  ;;  %v2366_v18 = vld [vmem:[%s2643_s8 + $0x18] sm:$0xf]  ;;  %v1638_v0 = vpack.c.b16 %v1631_v50, %v1630_v49 }
  0x66   : > { %v1530_v28 = vshrl.u32 %v2366_v18, 16  ;;  %v1012_v33 = vsel %vm2680_vm2, %v1007_v16, %v1011_v12  ;;  %v2162_v12 = vld [vmem:[%s2643_s8 + $0xb0] sm:$0xf] }
  0x67   : > { %v1115_v48 = vunpack.c.l.b16 %v1012_v33  ;;  %v2372_v16 = vld [vmem:[%s2643_s8 + $0x30] sm:$0xf]  ;;  %v1045_v20 = vshll.u32 %v2162_v12, 16  ;;  %v1586_v33 = vshrl.u32 %v2374_v21, 16 }
  0x68   : > { %1185 = vmatpush.bf16.msra.mxu1 %v2485_v15  ;;  %1701 = vmatpush.bf16.msra.mxu0 %v2517_v30  ;;  %v993_v15 = vrot.slane %v992_v3, 4  ;;  %v1532_v43 = vrot.slane %v1530_v28, 4  ;;  %v2507_v3 = vld [vmem:[%s2643_s8 + $0x74] sm:$0xf0] }
  0x69   : > { %2563 = vmatpush.bf16.msra.mxu2 %v2517_v30  ;;  %v1544_v30 = vshrl.u32 %v2368_v19, 16  ;;  %v1042_v19 = vshrl.u32 %v2162_v12, 16  ;;  %v1047_v36 = vrot.slane %v1045_v20, 5 }
  0x6a   : > { %v998_v32 = vsel %vm2680_vm2, %v993_v15, %v997_v11  ;;  %v2370_v15 = vld [vmem:[%s2643_s8 + $0x28] sm:$0xf] }
  0x6b   : > { %439 = vmatmul.bf16.gmra.mxu1 %v1925_v24  ;;  %950 = vmatmul.bf16.gmra.mxu0 %v2117_v25  ;;  %v1014_v24 = vshrl.u32 %v2158_v13, 16  ;;  %v1017_v25 = vshll.u32 %v2158_v13, 16  ;;  %v1546_v45 = vrot.slane %v1544_v30, 4  ;;  %v1114_v47 = vunpack.c.l.b16 %v998_v32 }
  0x6c   : > { %v1558_v27 = vshrl.u32 %v2370_v15, 16  ;;  %v1561_v28 = vshll.u32 %v2370_v15, 16  ;;  %v1575_v30 = vshll.u32 %v2372_v16, 16  ;;  %v1044_v35 = vrot.slane %v1042_v19, 4 }
  0x6d   : > { %1456 = vmatmul.bf16.vlgmr.msrb.gmra.mxu3 %v2317_v29  ;;  %v1533_v29 = vshll.u32 %v2366_v18, 16  ;;  %v1016_v37 = vrot.slane %v1014_v24, 4  ;;  %v1019_v39 = vrot.slane %v1017_v25, 5  ;;  %v1550_v61 = vor.u32 %v1549_v46, %v1546_v45  ;;  %v2371_v46 = vld [vmem:[%s2643_s8 + $0x2c] sm:$0x1] }
  0x6e   : > { %1321 = vmatmul.bf16.vlgmr.msrb.gmra.mxu2 %v2245_v26  ;;  %v1028_v26 = vshrl.u32 %v2160_v14, 16  ;;  %v1122_v63 = vpack.c.b16 %v1115_v48, %v1114_v47  ;;  %v2164_v14 = vld [vmem:[%s2643_s8 + $0xb8] sm:$0xf]  ;;  %v1560_v47 = vrot.slane %v1558_v27, 4  ;;  %v1563_v48 = vrot.slane %v1561_v28, 5 }
  0x6f   : > { %v1535_v44 = vrot.slane %v1533_v29, 5  ;;  %v1020_v55 = vor.u32 %v1019_v39, %v1016_v37  ;;  %v1551_v10 = vrot.slane %v1550_v61, 4  ;;  %v1056_v24 = vshrl.u32 %v2164_v14, 16  ;;  %v2168_v27 = vld [vmem:[%s2643_s8 + $0xc8] sm:$0xf] }
  0x70   : > { %v1030_v40 = vrot.slane %v1028_v26, 4  ;;  %v1059_v25 = vshll.u32 %v2164_v14, 16  ;;  %v2376_v26 = vld [vmem:[%s2643_s8 + $0x40] sm:$0xf]  ;;  %v1572_v29 = vshrl.u32 %v2372_v16, 16  ;;  %v1577_v50 = vrot.slane %v1575_v30, 5 }
  0x71   : > { %v1536_v59 = vor.u32 %v1535_v44, %v1532_v43  ;;  %v1021_v4 = vrot.slane %v1020_v55, 4  ;;  %v1600_v37 = vshrl.u32 %v2376_v26, 16  ;;  %v1603_v39 = vshll.u32 %v2376_v26, 16  ;;  %v2165_v43 = vld [vmem:[%s2643_s8 + $0xbc] sm:$0x1] }
  0x72   : > { %v1034_v57 = vor.u32 %v1033_v41, %v1030_v40  ;;  %v1058_v44 = vrot.slane %v1056_v24, 4  ;;  %v1061_v45 = vrot.slane %v1059_v25, 5  ;;  %v1574_v49 = vrot.slane %v1572_v29, 4  ;;  %v2166_v24 = vld [vmem:[%s2643_s8 + $0xc0] sm:$0xf] }
  0x73   : > { %v1537_v8 = vrot.slane %v1536_v59, 4  ;;  %v1602_v59 = vrot.slane %v1600_v37, 4  ;;  %v1605_v60 = vrot.slane %v1603_v39, 5  ;;  %v1051_v61 = vshll.u32 %v2163_v42, 16 }
  0x74   : > { %v1035_v6 = vrot.slane %v1034_v57, 4  ;;  %v1048_v57 = vor.u32 %v1047_v36, %v1044_v35  ;;  %v1084_v35 = vshrl.u32 %v2168_v27, 16  ;;  %v1087_v36 = vshll.u32 %v2168_v27, 16 }
  0x75   : > { %v1542_v22 = vsel %vm2680_vm2, %v1537_v8, %v1541_v9  ;;  %v2508_v8 = vld [vmem:[%s2643_s8 + $0x84] sm:$0xf0]  ;;  %v1606_v12 = vor.u32 %v1605_v60, %v1602_v59  ;;  %v1053_v14 = vrot.slane %v1051_v61, 5 }
  0x76   : > { %v1040_v18 = vsel %vm2680_vm2, %v1035_v6, %v1039_v7  ;;  %v1632_v40 = vunpack.c.l.b16 %v1542_v22  ;;  %v2257_v6 = vor.u32 %v2496_v56, %v2256_v51  ;;  %v2328_v7 = vld [vmem:[%s2643_s8 + $0x80] sm:$0xf] }
  0x77   : > { %v1117_v32 = vunpack.c.l.b16 %v1040_v18  ;;  %v2329_v18 = vor.u32 %v2508_v8, %v2328_v7  ;;  %v1607_v25 = vrot.slane %v1606_v12, 4 }
  0x7b   : > { %444 = vmatmul.bf16.gmra.mxu1 %v1929_v62  ;;  %955 = vmatmul.bf16.gmra.mxu0 %v2121_v1  ;;  %v1553_v62 = vshll.u32 %v2369_v52, 16  ;;  %v2253_v1 = vor.u32 %v2495_v54, %v2252_v53  ;;  %v2373_v52 = vld [vmem:[%s2643_s8 + $0x34] sm:$0x1]  ;;  %v1588_v53 = vrot.slane %v1586_v33, 4  ;;  %v1591_v54 = vrot.slane %v1589_v34, 5 }
  0x7c   : > { %v1073_v34 = vshll.u32 %v2166_v24, 16 }
  0x7d   : > { %1461 = vmatmul.bf16.gmra.mxu3 %v2321_v17  ;;  %v1555_v11 = vrot.slane %v1553_v62, 5  ;;  %v1026_v17 = vsel %vm2680_vm2, %v1021_v4, %v1025_v5  ;;  %v1062_v62 = vor.u32 %v1061_v45, %v1058_v44  ;;  %v1578_v4 = vor.u32 %v1577_v50, %v1574_v49  ;;  %v2169_v50 = vld [vmem:[%s2643_s8 + $0xcc] sm:$0x1] }
  0x7e   : > { %1326 = vmatmul.bf16.gmra.mxu2 %v2249_v2  ;;  %v2324_v2 = vld [vmem:[%s2643_s8 + $0x70] sm:$0xf]  ;;  %v1116_v31 = vunpack.c.l.b16 %v1026_v17  ;;  %v1581_v5 = vshll.u32 %v2373_v52, 16  ;;  %v1592_v9 = vor.u32 %v1591_v54, %v1588_v53  ;;  %v1089_v49 = vrot.slane %v1087_v36, 5 }
  0x7f   : > { %v2325_v13 = vor.u32 %v2507_v3, %v2324_v2  ;;  %v1556_v23 = vsel %vm2680_vm2, %v1551_v10, %v1555_v11  ;;  %v1564_v3 = vor.u32 %v1563_v48, %v1560_v47  ;;  %v1595_v10 = vshll.u32 %v2375_v58, 16 }
  0x80   : > { %v1633_v41 = vunpack.c.l.b16 %v1556_v23  ;;  %v1123_v55 = vpack.c.b16 %v1117_v32, %v1116_v31  ;;  %v1049_v11 = vrot.slane %v1048_v57, 4  ;;  %v1063_v15 = vrot.slane %v1062_v62, 4 }
  0x81   : > { %v1565_v19 = vrot.slane %v1564_v3, 4  ;;  %v1579_v20 = vrot.slane %v1578_v4, 4  ;;  %v1583_v21 = vrot.slane %v1581_v5, 5  ;;  %v1593_v22 = vrot.slane %v1592_v9, 4 }
  0x82   : > { %v1639_v2 = vpack.c.b16 %v1633_v41, %v1632_v40  ;;  %v1597_v23 = vrot.slane %v1595_v10, 5  ;;  %v1054_v28 = vsel %vm2680_vm2, %v1049_v11, %v1053_v14  ;;  %v1070_v32 = vshrl.u32 %v2166_v24, 16 }
  0x83   : > { %v1584_v31 = vsel %vm2680_vm2, %v1579_v20, %v1583_v21  ;;  %v1118_v39 = vunpack.c.l.b16 %v1054_v28  ;;  %v1075_v47 = vrot.slane %v1073_v34, 5  ;;  %v1086_v48 = vrot.slane %v1084_v35, 4 }
  0x84   : > { %v1598_v33 = vsel %vm2680_vm2, %v1593_v22, %v1597_v23  ;;  %v1635_v42 = vunpack.c.l.b16 %v1584_v31  ;;  %v1072_v44 = vrot.slane %v1070_v32, 4  ;;  %v1093_v59 = vshll.u32 %v2169_v50, 16 }
  0x85   : > { %v1090_v58 = vor.u32 %v1089_v49, %v1086_v48 }
  0x86   : > { %v1076_v57 = vor.u32 %v1075_v47, %v1072_v44 }
  0x87   : > { %v1091_v62 = vrot.slane %v1090_v58, 4 }
  0x88   : > { %v1077_v60 = vrot.slane %v1076_v57, 4 }
  0x8b   : > { %1186 = vmatmul.bf16.vlgmr.msra.gmra.mxu1 %v1122_v63  ;;  %1702 = vmatmul.bf16.vlgmr.msra.gmra.mxu0 %v1638_v0  ;;  %v1065_v63 = vshll.u32 %v2165_v43, 16  ;;  %v1567_v0 = vshll.u32 %v2371_v46, 16  ;;  %v1636_v43 = vunpack.c.l.b16 %v1598_v33  ;;  %v2167_v46 = vld [vmem:[%s2643_s8 + $0xc4] sm:$0x1] }
  0x8c   : > { %v1079_v53 = vshll.u32 %v2167_v46, 16 }
  0x8d   : > { %1466 = vmatmul.bf16.gmra.mxu3 %v2325_v13  ;;  %v1067_v16 = vrot.slane %v1065_v63, 5  ;;  %v1569_v17 = vrot.slane %v1567_v0, 5  ;;  %v1095_v63 = vrot.slane %v1093_v59, 5 }
  0x8e   : > { %1331 = vmatmul.bf16.gmra.mxu2 %v2253_v1  ;;  %v2377_v1 = vld [vmem:[%s2643_s8 + $0x44] sm:$0x1]  ;;  %v1081_v61 = vrot.slane %v1079_v53, 5 }
  0x8f   : > { %v1609_v13 = vshll.u32 %v2377_v1, 16  ;;  %v1068_v29 = vsel %vm2680_vm2, %v1063_v15, %v1067_v16  ;;  %v1570_v30 = vsel %vm2680_vm2, %v1565_v19, %v1569_v17  ;;  %v1096_v4 = vsel %vm2680_vm2, %v1091_v62, %v1095_v63 }
  0x90   : > { %v1119_v40 = vunpack.c.l.b16 %v1068_v29  ;;  %v1634_v41 = vunpack.c.l.b16 %v1570_v30  ;;  %v1082_v3 = vsel %vm2680_vm2, %v1077_v60, %v1081_v61  ;;  %v1121_v7 = vunpack.c.l.b16 %v1096_v4 }
  0x91   : > { %v1611_v26 = vrot.slane %v1609_v13, 5 }
  0x92   : > { %v1124_v51 = vpack.c.b16 %v1119_v40, %v1118_v39  ;;  %v1640_v52 = vpack.c.b16 %v1635_v42, %v1634_v41 }
  0x93   : > { %v1612_v37 = vsel %vm2680_vm2, %v1607_v25, %v1611_v26 }
  0x94   : > { %v1637_v45 = vunpack.c.l.b16 %v1612_v37 }
  0x96   : > { %v1641_v56 = vpack.c.b16 %v1637_v45, %v1636_v43 }
  0x9b   : > { %1191 = vmatmul.bf16.gmra.mxu1 %v1123_v55  ;;  %1707 = vmatmul.bf16.gmra.mxu0 %v1639_v2 }
  0x9d   : > { %1471 = vmatmul.bf16.gmra.mxu3 %v2329_v18 }
  0x9e   : > { %1336 = vmatmul.bf16.gmra.mxu2 %v2257_v6  ;;  %v1120_v6 = vunpack.c.l.b16 %v1082_v3 }
  0xa0   : > { %v1125_v8 = vpack.c.b16 %v1121_v7, %v1120_v6 }
  0xa8   : > { %v339_v54 = vpop.f32.mrf.mxu1  ;;  %v329_v55 = vpop.f32.mrf.mxu0 }
  0xab   : > { %1196 = vmatmul.bf16.gmra.mxu1 %v1124_v51  ;;  %1712 = vmatmul.bf16.gmra.mxu0 %v1640_v52 }
  0xae   : > { %1717 = vmatmul.bf16.vlgmr.msra.gmra.mxu2 %v1641_v56 }
  0xb0   : > { %v341_v1 = vpop.f32.mrf.mxu1  ;;  %v331_v2 = vpop.f32.mrf.mxu0 }
  0xb1   : > { %v671_v0 = vpop.f32.mrf.mxu2  ;;  %v806_v5 = vpop.f32.mrf.mxu3 }
  0xb8   : > { %v344_v10 = vpop.f32.mrf.mxu1  ;;  %v334_v11 = vpop.f32.mrf.mxu0 }
  0xb9   : > { %v673_v9 = vpop.f32.mrf.mxu2  ;;  %v2988_v12 = vpop.f32.mrf.mxu3 }
  0xbb   : > { %1201 = vmatmul.bf16.gmra.mxu1 %v1125_v8 }
  0xc0   : > { %v346_v14 = vpop.f32.mrf.mxu1  ;;  %v336_v15 = vpop.f32.mrf.mxu0 }
  0xc1   : > { %v676_v13 = vpop.f32.mrf.mxu2  ;;  %v811_v16 = vpop.f32.mrf.mxu3 }
  0xc8   : > { %v430_v18 = vpop.f32.mrf.mxu1  ;;  %v941_v19 = vpop.f32.mrf.mxu0 }
  0xc9   : > { %v678_v17 = vpop.f32.mrf.mxu2  ;;  %v431_v20 = vadd.f32 %v430_v18, %v329_v55  ;;  %v2990_v21 = vpop.f32.mrf.mxu3 }
  0xcb   : > { %v691_v38 = vadd.f32 %v671_v0, %v431_v20 }
  0xcd   : > { %v826_v22 = vadd.f32 %v806_v5, %v691_v38 }
  0xcf   : > { %v961_v23 = vadd.f32 %v941_v19, %v826_v22 }
  0xd0   : > { %v432_v25 = vpop.f32.mrf.mxu1  ;;  %v943_v26 = vpop.f32.mrf.mxu0 }
  0xd1   : > { %v681_v24 = vpop.f32.mrf.mxu2  ;;  %v433_v27 = vadd.f32 %v432_v25, %v331_v2  ;;  %v816_v29 = vpop.f32.mrf.mxu3 }
  0xd3   : > { %v692_v28 = vadd.f32 %v673_v9, %v433_v27 }
  0xd8   : > { %v435_v31 = vpop.f32.mrf.mxu1  ;;  %v946_v32 = vpop.f32.mrf.mxu0 }
  0xd9   : > { %v683_v30 = vpop.f32.mrf.mxu2  ;;  %v436_v33 = vadd.f32 %v435_v31, %v334_v11  ;;  %v2992_v39 = vpop.f32.mrf.mxu3 }
  0xdb   : > { %v693_v34 = vadd.f32 %v676_v13, %v436_v33 }
  0xdd   : > { %v828_v35 = vadd.f32 %v811_v16, %v693_v34 }
  0xdf   : > { %v963_v36 = vadd.f32 %v946_v32, %v828_v35 }
  0xe0   : > { %v437_v40 = vpop.f32.mrf.mxu1  ;;  %v2994_v41 = vpop.f32.mrf.mxu0 }
  0xe1   : > { %v686_v37 = vpop.f32.mrf.mxu2  ;;  %v438_v42 = vadd.f32 %v437_v40, %v336_v15  ;;  %v821_v48 = vpop.f32.mrf.mxu3  ;;  %v827_v15 = vadd.f32 %v2988_v12, %v692_v28  ;;  %v3020_v12 = vld [vmem:[%s3063_s3] ss:$0 sm:$0xff] }
  0xe3   : > { %v694_v43 = vadd.f32 %v678_v17, %v438_v42  ;;  %v962_v17 = vadd.f32 %v943_v26, %v827_v15 }
  0xe5   : > { %v829_v33 = vadd.f32 %v2990_v21, %v694_v43 }
  0xe8   : > { %v440_v45 = vpop.f32.mrf.mxu1  ;;  %v951_v46 = vpop.f32.mrf.mxu0 }
  0xe9   : > { %v688_v44 = vpop.f32.mrf.mxu2  ;;  %v441_v47 = vadd.f32 %v440_v45, %v339_v54  ;;  %v3002_v58 = vpop.f32.mrf.mxu3 }
  0xeb   : > { %v695_v49 = vadd.f32 %v681_v24, %v441_v47 }
  0xed   : > { %v830_v50 = vadd.f32 %v816_v29, %v695_v49 }
  0xef   : > { %v2996_v51 = vadd.f32 %v951_v46, %v830_v50  ;;  %v964_v46 = vadd.f32 %v2994_v41, %v829_v33 }
  0xf0   : > { %v442_v53 = vpop.f32.mrf.mxu1  ;;  %v2998_v55 = vpop.f32.mrf.mxu0 }
  0xf1   : > { %v1322_v52 = vpop.f32.mrf.mxu2  ;;  %v443_v56 = vadd.f32 %v442_v53, %v341_v1  ;;  %v1457_v0 = vpop.f32.mrf.mxu3 }
  0xf3   : > { %v3000_v57 = vadd.f32 %v683_v30, %v443_v56 }
  0xf8   : > { %v445_v60 = vpop.f32.mrf.mxu1  ;;  %v956_v61 = vpop.f32.mrf.mxu0 }
  0xf9   : > { %v1324_v59 = vpop.f32.mrf.mxu2  ;;  %v446_v62 = vadd.f32 %v445_v60, %v344_v10  ;;  %v1459_v1 = vpop.f32.mrf.mxu3 }
  0xfb   : > { %v697_v63 = vadd.f32 %v686_v37, %v446_v62 }
  0xfd   : > { %v832_v54 = vadd.f32 %v821_v48, %v697_v63 }
  0xff   : > { %v3004_v2 = vadd.f32 %v956_v61, %v832_v54  ;;  %v831_v54 = vadd.f32 %v2992_v39, %v3000_v57 }
 0x100   : > { %v447_v4 = vpop.f32.mrf.mxu1  ;;  %v3006_v5 = vpop.f32.mrf.mxu0 }
 0x101   : > { %v1327_v3 = vpop.f32.mrf.mxu2  ;;  %v448_v6 = vadd.f32 %v447_v4, %v346_v14  ;;  %v3014_v14 = vld [vmem:[%s3062_s2] ss:$0 sm:$0xff]  ;;  %v1462_v22 = vpop.f32.mrf.mxu3 }
 0x103   : > { %v3008_v7 = vadd.f32 %v688_v44, %v448_v6 }
 0x108   : > { %v1187_v8 = vpop.f32.mrf.mxu1  ;;  %v1703_v9 = vpop.f32.mrf.mxu0 }
 0x109   : > { %v1207_v11 = vadd.f32 %v1187_v8, %v961_v23  ;;  %v1329_v13 = vpop.f32.mrf.mxu2  ;;  %v1464_v37 = vpop.f32.mrf.mxu3  ;;  %v966_v8 = vadd.f32 %v2998_v55, %v831_v54 }
 0x10b   : > { %v1342_v10 = vadd.f32 %v1322_v52, %v1207_v11 }
 0x10d   : > { %v1477_v16 = vadd.f32 %v1457_v0, %v1342_v10 }
 0x10f   : > { %v1723_v20 = vadd.f32 %v1703_v9, %v1477_v16 }
 0x110   : > { %v1189_v18 = vpop.f32.mrf.mxu1  ;;  %v1705_v19 = vpop.f32.mrf.mxu0 }
 0x111   : > { %v1208_v38 = vadd.f32 %v1189_v18, %v962_v17  ;;  %v1332_v25 = vpop.f32.mrf.mxu2  ;;  %v1735_v23 = vmul.f32 %v3014_v14, %v1723_v20  ;;  %v1467_v53 = vpop.f32.mrf.mxu3 }
 0x113   : > { %v1343_v24 = vadd.f32 %v1324_v59, %v1208_v38  ;;  %v1747_v30 = vadd.f32 %v3020_v12, %v1735_v23 }
 0x115   : > { %v1478_v26 = vadd.f32 %v1459_v1, %v1343_v24  ;;  %v1755_v40 = vmax.f32 %v1747_v30, 0.0  ;;  %v833_v24 = vadd.f32 %v3002_v58, %v3008_v7 }
 0x117   : > { %v1724_v27 = vadd.f32 %v1705_v19, %v1478_v26  ;;  %v968_v30 = vadd.f32 %v3006_v5, %v833_v24 }
 0x118   : > { %v1192_v28 = vpop.f32.mrf.mxu1  ;;  %v1708_v29 = vpop.f32.mrf.mxu0 }
 0x119   : > { %v1736_v31 = vmul.f32 %v3014_v14, %v1724_v27  ;;  %v1209_v32 = vadd.f32 %v1192_v28, %v963_v36  ;;  %v1334_v45 = vpop.f32.mrf.mxu2  ;;  %v1469_v11 = vpop.f32.mrf.mxu3 }
 0x11b   : > { %v1748_v34 = vadd.f32 %v3020_v12, %v1736_v31  ;;  %v1344_v35 = vadd.f32 %v1327_v3, %v1209_v32 }
 0x11d   : > { %v1756_v42 = vmax.f32 %v1748_v34, 0.0  ;;  %v1479_v44 = vadd.f32 %v1462_v22, %v1344_v35 }
 0x11f   : > { %v2528_v36 = vpack.c.bf16 %v1756_v42, %v1755_v40  ;;  %v1725_v43 = vadd.f32 %v1708_v29, %v1479_v44 }
 0x120   : > { %v1194_v47 = vpop.f32.mrf.mxu1  ;;  %v1710_v21 = vpop.f32.mrf.mxu0 }
 0x121   : > { %2529 = vst [vmem:[%s3030_s6] sm:$0xff] %v2528_v36   ;;  %v1210_v48 = vadd.f32 %v1194_v47, %v964_v46  ;;  %v1737_v50 = vmul.f32 %v3014_v14, %v1725_v43  ;;  %v1337_v59 = vpop.f32.mrf.mxu2  ;;  %v1472_v22 = vpop.f32.mrf.mxu3 }
 0x123   : > { %v1345_v49 = vadd.f32 %v1329_v13, %v1210_v48  ;;  %v1749_v61 = vadd.f32 %v3020_v12, %v1737_v50 }
 0x125   : > { %v1480_v52 = vadd.f32 %v1464_v37, %v1345_v49  ;;  %v1757_v4 = vmax.f32 %v1749_v61, 0.0 }
 0x127   : > { %v1726_v56 = vadd.f32 %v1710_v21, %v1480_v52 }
 0x128   : > { %v1197_v60 = vpop.f32.mrf.mxu1  ;;  %v1713_v63 = vpop.f32.mrf.mxu0 }
 0x129   : > { %v1738_v62 = vmul.f32 %v3014_v14, %v1726_v56  ;;  %v1211_v41 = vadd.f32 %v1197_v60, %v2996_v51  ;;  %v1339_v16 = vpop.f32.mrf.mxu2  ;;  %v1474_v35 = vpop.f32.mrf.mxu3 }
 0x12b   : > { %v1750_v0 = vadd.f32 %v3020_v12, %v1738_v62  ;;  %v1346_v3 = vadd.f32 %v1332_v25, %v1211_v41 }
 0x12d   : > { %v1758_v6 = vmax.f32 %v1750_v0, 0.0  ;;  %v1481_v1 = vadd.f32 %v1467_v53, %v1346_v3 }
 0x12f   : > { %v2533_v9 = vpack.c.bf16 %v1758_v6, %v1757_v4  ;;  %v1727_v15 = vadd.f32 %v1713_v63, %v1481_v1 }
 0x130   : > { %v1199_v13 = vpop.f32.mrf.mxu1  ;;  %v1715_v17 = vpop.f32.mrf.mxu0 }
 0x131   : > { %2545 = vst [vmem:[%s3030_s6 + $0x8] sm:$0xff] %v2533_v9   ;;  %v1212_v10 = vadd.f32 %v1199_v13, %v966_v8  ;;  %v1739_v18 = vmul.f32 %v3014_v14, %v1727_v15  ;;  %v1718_v26 = vpop.f32.mrf.mxu2 }
 0x133   : > { %v1347_v51 = vadd.f32 %v1334_v45, %v1212_v10  ;;  %v1751_v20 = vadd.f32 %v3020_v12, %v1739_v18 }
 0x135   : > { %v1482_v39 = vadd.f32 %v1469_v11, %v1347_v51  ;;  %v1759_v27 = vmax.f32 %v1751_v20, 0.0 }
 0x137   : > { %v1728_v57 = vadd.f32 %v1715_v17, %v1482_v39 }
 0x138   : > { %v1202_v19 = vpop.f32.mrf.mxu1 }
 0x139   : > { %v1740_v38 = vmul.f32 %v3014_v14, %v1728_v57  ;;  %v1213_v55 = vadd.f32 %v1202_v19, %v3004_v2  ;;  %v1720_v7 = vpop.f32.mrf.mxu2 }
 0x13b   : > { %v1752_v25 = vadd.f32 %v3020_v12, %v1740_v38  ;;  %v1348_v23 = vadd.f32 %v1337_v59, %v1213_v55 }
 0x13d   : > { %v1760_v28 = vmax.f32 %v1752_v25, 0.0  ;;  %v1483_v29 = vadd.f32 %v1472_v22, %v1348_v23 }
 0x13f   : > { %v2538_v31 = vpack.c.bf16 %v1760_v28, %v1759_v27  ;;  %v1729_v33 = vadd.f32 %v1718_v26, %v1483_v29 }
 0x140   : > { %v1204_v32 = vpop.f32.mrf.mxu1 }
 0x141   : > { %2546 = vst [vmem:[%s3030_s6 + $0x10] sm:$0xff] %v2538_v31   ;;  %v1214_v34 = vadd.f32 %v1204_v32, %v968_v30  ;;  %v1741_v37 = vmul.f32 %v3014_v14, %v1729_v33 }
 0x143   : > { %v1349_v2 = vadd.f32 %v1339_v16, %v1214_v34  ;;  %v1753_v42 = vadd.f32 %v3020_v12, %v1741_v37 }
 0x145   : > { %v1484_v58 = vadd.f32 %v1474_v35, %v1349_v2  ;;  %v1761_v5 = vmax.f32 %v1753_v42, 0.0 }
 0x147   : > { %v1730_v40 = vadd.f32 %v1720_v7, %v1484_v58 }
 0x149   : > { %v1742_v44 = vmul.f32 %v3014_v14, %v1730_v40 }
 0x14b   : > { %v1754_v45 = vadd.f32 %v3020_v12, %v1742_v44 }
 0x14d   : > { %v1762_v46 = vmax.f32 %v1754_v45, 0.0 }
 0x14f   : > { %v2543_v36 = vpack.c.bf16 %v1762_v46, %v1761_v5 }
 0x151   : > { %2547 = vst [vmem:[%s3030_s6 + $0x18] sm:$0xff] %v2543_v36  }
 0x152 PF: > { %s14_s15 = sadd.s32 1, %s2581_s15  }
 0x153   : > { %p11_p4 = scmp.ge.s32.totalorder %s14_s15, 4  }
 0x155   :  { %13 = sbr.rel (!%p11_p4) target bundleno = 1 (0x1), region = 79 }

// kernel: resnet_block_forward.3
= control target key start
LH: loop header
LB: loop body
LE: loop exit
PB: predicated region body
PF: predicated region fallthrough
CT: control target
= control target key end

     0   :  { %s2937_s21 = smov 0   ;;  %s3573_s0 = inlined_call_operand.vmem [shape: bf16[2,1,10,10,128], index: 0, kind: input, shape index: {}]   ;;  %s3574_s1 = inlined_call_operand.vmem [shape: bf16[3,3,128,128], index: 1, kind: input, shape index: {}]   ;;  %s3575_s2 = inlined_call_operand.vmem [shape: f32[1,128], index: 2, kind: input, shape index: {}]   ;;  %s3576_s3 = inlined_call_operand.vmem [shape: f32[1,128], index: 3, kind: input, shape index: {}]   ;;  %s3577_s4 = inlined_call_operand.vmem [shape: bf16[2,8,8,128], index: 4, kind: input, shape index: {}]   ;;  %s3578_s5 = inlined_call_operand.vmem [shape: bf16[128,128], index: 5, kind: input, shape index: {}]   ;;  %s3579_s6 = inlined_call_operand.vmem [shape: f32[2,8,8,128], index: 6, kind: output, shape index: {}]  }
   0x1 LB: > { %s2157_s22 = sadd.s32 4294967295, %s2900_s21   ;;  %p2161_p0 = scmp.ge.s32.totalorder %s2900_s21, 1  ;;  %s2900_s21 = sphi %s2937_s21, %s16_s21  }
   0x2   : > { %p222_p1 = scmp.lt.s32.totalorder %s2900_s21, 3 }
   0x4   : > { %p223_p2 = pnand %p2161_p0, %p222_p1 }
   0x5   : > { %p257_p3 = scmp.lt.s32.totalorder (!%p223_p2), %s2157_s22, 1 }
   0x6   : > { %226 = sbr.rel (%p223_p2) target bundleno = 342 (0x156), region = 44 }
   0xb   : > { %v2790_v0 = vld [vmem:[%s3574_s1 + $0x78] sm:$0xff]  ;;  %v2789_v2 = vld [vmem:[%s3574_s1 + $0x70] sm:$0xff]  ;;  %s3585_s22 = smov (!%p257_p3, %s2157_s22), 1  ;;  %v2788_v4 = vld [vmem:[%s3574_s1 + $0x68] sm:$0xff]  ;;  %vm304_vm0 = vsmask.f32 3328 }
   0xc   : > { %v2782_v1 = vld [vmem:[%s3574_s1 + $0x38] sm:$0xff]  ;;  %2867 = vmatpush.bf16.msra.mxu2 %v2790_v0  ;;  %v2781_v3 = vld [vmem:[%s3574_s1 + $0x30] sm:$0xff]  ;;  %500 = vmatpush.bf16.msra.mxu0 %v2790_v0  ;;  %s2883_s7 = smul.u32 80, %s3585_s22  ;;  %v2780_v5 = vld [vmem:[%s3574_s1 + $0x28] sm:$0xff]  ;;  %vm305_vm1 = vsmask.f32 7440 }
   0xd   : > { %2875 = vmatpush.bf16.msra.mxu3 %v2782_v1  ;;  %601 = vmatpush.bf16.msra.mxu1 %v2782_v1  ;;  %v2787_v12 = vld [vmem:[%s3574_s1 + $0x60] sm:$0xff]  ;;  %v2786_v33 = vld [vmem:[%s3574_s1 + $0x58] sm:$0xff]  ;;  %v2785_v43 = vld [vmem:[%s3574_s1 + $0x50] sm:$0xff]  ;;  %vm654_vm3 = vcmask 1042432   ;;  %vm655_vm4 = vcmask 1046532   ;;  %s2769_s16 = sshll.u32 %s3585_s22, 5 }
   0xe   : > { %s2969_s14 = scalar_lea.vmem %s3573_s0, %s2883_s7  ;;  %v2779_v15 = vld [vmem:[%s3574_s1 + $0x20] sm:$0xff]  ;;  %v2778_v34 = vld [vmem:[%s3574_s1 + $0x18] sm:$0xff]  ;;  %v2777_v48 = vld [vmem:[%s3574_s1 + $0x10] sm:$0xff]  ;;  %s3406_s19 = scalar_lea.vmem %s3577_s4, %s2769_s16 }
   0xf   : > { %v276_v6 = vld [vmem:[%s2969_s14 + $0x20] sm:$0xf]  ;;  %v277_v7 = vld [vmem:[%s2969_s14 + $0x28] sm:$0xf]  ;;  %v2974_v8 = vld [vmem:[%s2969_s14 + $0x24] sm:$0x1] }
  0x10   : > { %2868 = vmatpush.bf16.msra.mxu2 %v2789_v2  ;;  %501 = vmatpush.bf16.msra.mxu0 %v2789_v2  ;;  %v364_v9 = vshrl.u32 %v276_v6, 16  ;;  %v367_v10 = vshll.u32 %v276_v6, 16  ;;  %v378_v11 = vshrl.u32 %v277_v7, 16  ;;  %v2980_v13 = vld [vmem:[%s2969_s14 + $0x2c] sm:$0x1]  ;;  %v381_v14 = vshll.u32 %v277_v7, 16  ;;  %vm3010_vm2 = vmor %vm304_vm0, %vm305_vm1 }
  0x11   : > { %2876 = vmatpush.bf16.msra.mxu3 %v2781_v3  ;;  %602 = vmatpush.bf16.msra.mxu1 %v2781_v3  ;;  %v272_v19 = vld [vmem:[%s2969_s14] sm:$0xf]  ;;  %v373_v20 = vshll.u32 %v2974_v8, 16  ;;  %v273_v22 = vld [vmem:[%s2969_s14 + $0x8] sm:$0xf]  ;;  %v387_v25 = vshll.u32 %v2980_v13, 16  ;;  %vm3147_vm5 = vmor %vm654_vm3, %vm655_vm4 }
  0x12   : > { %v366_v16 = vrot.slane %v364_v9, 4  ;;  %v369_v17 = vrot.slane %v367_v10, 5  ;;  %v380_v18 = vrot.slane %v378_v11, 4  ;;  %v383_v21 = vrot.slane %v381_v14, 5  ;;  %v2989_v23 = vld [vmem:[%s2969_s14 + $0x4] sm:$0x1] }
  0x13   : > { %v2993_v26 = vld [vmem:[%s2969_s14 + $0xc] sm:$0x1]  ;;  %v308_v27 = vshrl.u32 %v272_v19, 16  ;;  %v311_v28 = vshll.u32 %v272_v19, 16  ;;  %v317_v30 = vshll.u32 %v2989_v23, 16  ;;  %v322_v31 = vshrl.u32 %v273_v22, 16 }
  0x14   : > { %2869 = vmatpush.bf16.msra.mxu2 %v2788_v4  ;;  %502 = vmatpush.bf16.msra.mxu0 %v2788_v4  ;;  %v370_v24 = vor.u32 %v369_v17, %v366_v16  ;;  %v384_v29 = vor.u32 %v383_v21, %v380_v18  ;;  %v325_v32 = vshll.u32 %v273_v22, 16  ;;  %v331_v37 = vshll.u32 %v2993_v26, 16  ;;  %v278_v52 = vld [vmem:[%s2969_s14 + $0x30] sm:$0xf]  ;;  %v279_v54 = vld [vmem:[%s2969_s14 + $0x38] sm:$0xf] }
  0x15   : > { %2877 = vmatpush.bf16.msra.mxu3 %v2780_v5  ;;  %603 = vmatpush.bf16.msra.mxu1 %v2780_v5  ;;  %v310_v35 = vrot.slane %v308_v27, 4  ;;  %v313_v36 = vrot.slane %v311_v28, 5  ;;  %v324_v38 = vrot.slane %v322_v31, 4  ;;  %v375_v40 = vrot.slane %v373_v20, 5  ;;  %v2784_v55 = vld [vmem:[%s3574_s1 + $0x48] sm:$0xff]  ;;  %v2783_v3 = vld [vmem:[%s3574_s1 + $0x40] sm:$0xff] }
  0x16   : > { %v327_v39 = vrot.slane %v325_v32, 5  ;;  %v389_v41 = vrot.slane %v387_v25, 5  ;;  %v371_v44 = vrot.slane %v370_v24, 4  ;;  %v385_v45 = vrot.slane %v384_v29, 4  ;;  %v274_v60 = vld [vmem:[%s2969_s14 + $0x10] sm:$0xf] }
  0x17   : > { %v314_v42 = vor.u32 %v313_v36, %v310_v35  ;;  %v319_v46 = vrot.slane %v317_v30, 5  ;;  %v333_v51 = vrot.slane %v331_v37, 5  ;;  %v392_v59 = vshrl.u32 %v278_v52, 16  ;;  %v2776_v61 = vld [vmem:[%s3574_s1 + $0x8] sm:$0xff]  ;;  %v275_v2 = vld [vmem:[%s2969_s14 + $0x18] sm:$0xf] }
  0x18   : > { %2870 = vmatpush.bf16.msra.mxu2 %v2787_v12  ;;  %503 = vmatpush.bf16.msra.mxu0 %v2787_v12  ;;  %v328_v47 = vor.u32 %v327_v39, %v324_v38  ;;  %v376_v56 = vsel %vm3010_vm2, %v371_v44, %v375_v40  ;;  %v390_v57 = vsel %vm3010_vm2, %v385_v45, %v389_v41  ;;  %v395_v63 = vshll.u32 %v278_v52, 16  ;;  %v2225_v6 = vld [vmem:[%s2969_s14 + $0x20] sm:$0xf]  ;;  %v2773_v7 = vld [vmem:[%s2969_s14 + $0x24] sm:$0xf0]  ;;  %v2798_v25 = vld [vmem:[%s3574_s1 + $0xb8] sm:$0xff] }
  0x19   : > { %2878 = vmatpush.bf16.msra.mxu3 %v2779_v15  ;;  %604 = vmatpush.bf16.msra.mxu1 %v2779_v15  ;;  %v315_v50 = vrot.slane %v314_v42, 4  ;;  %v406_v0 = vshrl.u32 %v279_v54, 16  ;;  %v409_v1 = vshll.u32 %v279_v54, 16  ;;  %v440_v4 = vunpack.c.l.b16 %v376_v56  ;;  %v2217_v10 = vld [vmem:[%s2969_s14] sm:$0xf]  ;;  %v2810_v31 = vld [vmem:[%s3574_s1 + $0xf8] sm:$0xff] }
  0x1a   : > { %v329_v53 = vrot.slane %v328_v47, 4  ;;  %v441_v5 = vunpack.c.l.b16 %v390_v57  ;;  %v336_v11 = vshrl.u32 %v274_v60, 16  ;;  %v2775_v12 = vld [vmem:[%s3574_s1] sm:$0xff]  ;;  %v2771_v15 = vld [vmem:[%s2969_s14 + $0x4] sm:$0xf0]  ;;  %v394_v16 = vrot.slane %v392_v59, 4 }
  0x1b   : > { %v320_v58 = vsel %vm3010_vm2, %v315_v50, %v319_v46  ;;  %v339_v17 = vshll.u32 %v274_v60, 16  ;;  %v350_v18 = vshrl.u32 %v275_v2, 16  ;;  %v3043_v19 = vld [vmem:[%s2969_s14 + $0x34] sm:$0x1]  ;;  %v397_v20 = vrot.slane %v395_v63, 5  ;;  %v2826_v44 = vld [vmem:[%s3574_s1 + $0x178] sm:$0xff] }
  0x1c   : > { %2871 = vmatpush.bf16.msra.mxu2 %v2786_v33  ;;  %504 = vmatpush.bf16.msra.mxu0 %v2786_v33  ;;  %v334_v62 = vsel %vm3010_vm2, %v329_v53, %v333_v51  ;;  %v436_v9 = vunpack.c.l.b16 %v320_v58  ;;  %v408_v21 = vrot.slane %v406_v0, 4  ;;  %v411_v22 = vrot.slane %v409_v1, 5  ;;  %v3049_v27 = vld [vmem:[%s2969_s14 + $0x3c] sm:$0x1]  ;;  %v3055_v32 = vld [vmem:[%s2969_s14 + $0x14] sm:$0x1] }
  0x1d   : > { %2879 = vmatpush.bf16.msra.mxu3 %v2778_v34  ;;  %605 = vmatpush.bf16.msra.mxu1 %v2778_v34  ;;  %v437_v14 = vunpack.c.l.b16 %v334_v62  ;;  %v353_v24 = vshll.u32 %v275_v2, 16  ;;  %v338_v28 = vrot.slane %v336_v11, 4  ;;  %v341_v29 = vrot.slane %v339_v17, 5  ;;  %v3058_v33 = vld [vmem:[%s2969_s14 + $0x1c] sm:$0x1]  ;;  %v2797_v50 = vld [vmem:[%s3574_s1 + $0xb0] sm:$0xff] }
  0x1e   : > { %v352_v30 = vrot.slane %v350_v18, 4  ;;  %v446_v35 = vpack.c.b16 %v441_v5, %v440_v4  ;;  %v2226_v36 = vor.u32 %v2773_v7, %v2225_v6  ;;  %v2218_v37 = vor.u32 %v2771_v15, %v2217_v10  ;;  %v2809_v51 = vld [vmem:[%s3574_s1 + $0xf0] sm:$0xff]  ;;  %v2391_v62 = vld [vmem:[%s2969_s14 + $0x8] sm:$0xf]  ;;  %v2807_v15 = vld [vmem:[%s3574_s1 + $0xe0] sm:$0xff]  ;;  %s2770_s25 = sshll.u32 %s3585_s22, 6 }
  0x1f   : > { %v355_v34 = vrot.slane %v353_v24, 5  ;;  %v401_v38 = vshll.u32 %v3043_v19, 16  ;;  %v444_v39 = vpack.c.b16 %v437_v14, %v436_v9  ;;  %v398_v40 = vor.u32 %v397_v20, %v394_v16  ;;  %v2817_v52 = vld [vmem:[%s3574_s1 + $0x130] sm:$0xff]  ;;  %v2796_v63 = vld [vmem:[%s3574_s1 + $0xa8] sm:$0xff]  ;;  %v2795_v14 = vld [vmem:[%s3574_s1 + $0xa0] sm:$0xff]  ;;  %s3525_s28 = scalar_lea.vmem %s3579_s6, %s2770_s25 }
  0x20   : > { %2872 = vmatpush.bf16.msra.mxu2 %v2785_v43  ;;  %505 = vmatpush.bf16.msra.mxu0 %v2785_v43  ;;  %v412_v41 = vor.u32 %v411_v22, %v408_v21  ;;  %v415_v42 = vshll.u32 %v3049_v27, 16  ;;  %v2818_v43 = vld [vmem:[%s3574_s1 + $0x138] sm:$0xff]  ;;  %v342_v45 = vor.u32 %v341_v29, %v338_v28  ;;  %v345_v46 = vshll.u32 %v3055_v32, 16  ;;  %v2825_v53 = vld [vmem:[%s3574_s1 + $0x170] sm:$0xff]  ;;  %v2808_v0 = vld [vmem:[%s3574_s1 + $0xe8] sm:$0xff] }
  0x21   : > { %2880 = vmatpush.bf16.msra.mxu3 %v2777_v48  ;;  %606 = vmatpush.bf16.msra.mxu1 %v2777_v48  ;;  %v356_v47 = vor.u32 %v355_v34, %v352_v30  ;;  %v359_v48 = vshll.u32 %v3058_v33, 16  ;;  %v399_v54 = vrot.slane %v398_v40, 4  ;;  %v2393_v1 = vld [vmem:[%s2969_s14 + $0x10] sm:$0xf]  ;;  %v959_v4 = vshrl.u32 %v2391_v62, 16  ;;  %v2816_v6 = vld [vmem:[%s3574_s1 + $0x128] sm:$0xff] }
  0x22   : > { %v413_v56 = vrot.slane %v412_v41, 4  ;;  %v417_v57 = vrot.slane %v415_v42, 5  ;;  %v343_v58 = vrot.slane %v342_v45, 4  ;;  %v347_v59 = vrot.slane %v345_v46, 5  ;;  %v2824_v7 = vld [vmem:[%s3574_s1 + $0x168] sm:$0xff]  ;;  %v2815_v17 = vld [vmem:[%s3574_s1 + $0x120] sm:$0xff] }
  0x23   : > { %v357_v60 = vrot.slane %v356_v47, 4  ;;  %v962_v5 = vshll.u32 %v2391_v62, 16  ;;  %v973_v11 = vshrl.u32 %v2393_v1, 16  ;;  %v2229_v16 = vld [vmem:[%s2969_s14 + $0x30] sm:$0xf]  ;;  %v961_v29 = vrot.slane %v959_v4, 4 }
  0x24   : > { %2873 = vmatpush.bf16.msra.mxu2 %v2784_v55  ;;  %506 = vmatpush.bf16.msra.mxu0 %v2784_v55  ;;  %v403_v55 = vrot.slane %v401_v38, 5  ;;  %v348_v9 = vsel %vm3010_vm2, %v343_v58, %v347_v59  ;;  %v2774_v21 = vld [vmem:[%s2969_s14 + $0x34] sm:$0xf0]  ;;  %v2221_v22 = vld [vmem:[%s2969_s14 + $0x10] sm:$0xf]  ;;  %v2823_v34 = vld [vmem:[%s3574_s1 + $0x160] sm:$0xff] }
  0x25   : > { %2881 = vmatpush.bf16.msra.mxu3 %v2776_v61  ;;  %607 = vmatpush.bf16.msra.mxu1 %v2776_v61  ;;  %v361_v61 = vrot.slane %v359_v48, 5  ;;  %v2772_v24 = vld [vmem:[%s2969_s14 + $0x14] sm:$0xf0]  ;;  %v964_v30 = vrot.slane %v962_v5, 5  ;;  %v2394_v40 = vld [vmem:[%s2969_s14 + $0x14] sm:$0x1]  ;;  %v2230_v42 = vor.u32 %v2774_v21, %v2229_v16 }
  0x26   : > { %v404_v2 = vsel %vm3010_vm2, %v399_v54, %v403_v55  ;;  %v2806_v38 = vld [vmem:[%s3574_s1 + $0xd8] sm:$0xff]  ;;  %v2222_v46 = vor.u32 %v2772_v24, %v2221_v22  ;;  %v659_v54 = vrot.slane %v2989_v23, 5  ;;  %v2805_v58 = vld [vmem:[%s3574_s1 + $0xd0] sm:$0xff]  ;;  %v675_v16 = vrot.slane %v2974_v8, 5  ;;  %v635_v21 = vld [vmem:[%s2969_s14 + $0x28] sm:$0xe] }
  0x27   : > { %v362_v10 = vsel %vm3010_vm2, %v357_v60, %v361_v61  ;;  %v442_v18 = vunpack.c.l.b16 %v404_v2  ;;  %v965_v47 = vor.u32 %v964_v30, %v961_v29  ;;  %v663_v60 = vrot.slane %v2993_v26, 5  ;;  %v2813_v4 = vld [vmem:[%s3574_s1 + $0x110] sm:$0xff]  ;;  %v2812_v8 = vld [vmem:[%s3574_s1 + $0x108] sm:$0xff] }
  0x28   : > { %2874 = vmatpush.bf16.msra.mxu2 %v2783_v3  ;;  %507 = vmatpush.bf16.msra.mxu0 %v2783_v3  ;;  %v418_v3 = vsel %vm3010_vm2, %v413_v56, %v417_v57  ;;  %v439_v28 = vunpack.c.l.b16 %v362_v10  ;;  %v982_v56 = vshll.u32 %v2394_v40, 16  ;;  %v2793_v57 = vld [vmem:[%s3574_s1 + $0x90] sm:$0xff]  ;;  %v2792_v10 = vld [vmem:[%s3574_s1 + $0x88] sm:$0xff] }
  0x29   : > { %2882 = vmatpush.bf16.msra.mxu3 %v2775_v12  ;;  %608 = vmatpush.bf16.msra.mxu1 %v2775_v12  ;;  %v976_v12 = vshll.u32 %v2393_v1, 16  ;;  %v443_v20 = vunpack.c.l.b16 %v418_v3  ;;  %v966_v1 = vrot.slane %v965_v47, 4  ;;  %v2395_v3 = vld [vmem:[%s2969_s14 + $0x18] sm:$0xf]  ;;  %v2821_v26 = vld [vmem:[%s3574_s1 + $0x150] sm:$0xff]  ;;  %v2820_v30 = vld [vmem:[%s3574_s1 + $0x148] sm:$0xff] }
  0x2b   : > { %518 = vmatmul.bf16.vlgmr.msra.gmra.mxu2 %v446_v35  ;;  %508 = vmatmul.bf16.vlgmr.msra.gmra.mxu0 %v444_v39  ;;  %v2392_v35 = vld [vmem:[%s2969_s14 + $0xc] sm:$0x1]  ;;  %v630_v39 = vld [vmem:[%s2969_s14] sm:$0xe]  ;;  %v447_v41 = vpack.c.b16 %v443_v20, %v442_v18  ;;  %v987_v18 = vshrl.u32 %v2395_v3, 16  ;;  %v990_v20 = vshll.u32 %v2395_v3, 16 }
  0x2c   : > { %770 = vmatpush.bf16.msrb.mxu2 %v2798_v25  ;;  %619 = vmatmul.bf16.vlgmr.msra.gmra.mxu3 %v2226_v36  ;;  %v438_v25 = vunpack.c.l.b16 %v348_v9  ;;  %v975_v36 = vrot.slane %v973_v11, 4  ;;  %v968_v48 = vshll.u32 %v2392_v35, 16  ;;  %v1214_v62 = vrot.slane %v2392_v35, 5  ;;  %v2397_v9 = vld [vmem:[%s2969_s14 + $0x20] sm:$0xf]  ;;  %v2804_v11 = vld [vmem:[%s3574_s1 + $0xc8] sm:$0xff] }
  0x2d   : > { %905 = vmatpush.bf16.msrb.mxu3 %v2810_v31  ;;  %609 = vmatmul.bf16.vlgmr.msra.gmra.mxu1 %v2218_v37  ;;  %v2794_v31 = vld [vmem:[%s3574_s1 + $0x98] sm:$0xff]  ;;  %v978_v37 = vrot.slane %v976_v12, 5  ;;  %v1004_v29 = vshll.u32 %v2397_v9, 16  ;;  %v2268_v35 = vrot.slane %v635_v21, 9  ;;  %v989_v47 = vrot.slane %v987_v18, 4  ;;  %v2865_v21 = vld [vmem:[%s3578_s5 + $0x30] sm:$0xff] }
  0x2e   : > { %1151 = vmatpush.bf16.msrb.mxu0 %v2818_v43  ;;  %1325 = vmatpush.bf16.msrb.mxu1 %v2826_v44  ;;  %v631_v43 = vld [vmem:[%s2969_s14 + $0x8] sm:$0xe]  ;;  %v445_v45 = vpack.c.b16 %v439_v28, %v438_v25  ;;  %v970_v2 = vrot.slane %v968_v48, 5  ;;  %v1001_v28 = vshrl.u32 %v2397_v9, 16  ;;  %v992_v48 = vrot.slane %v990_v20, 5  ;;  %v2853_v20 = vld [vmem:[%s3574_s1 + $0x230] sm:$0xff] }
  0x2f   : > { %v2455_v44 = vld [vmem:[%s2969_s14 + $0x8] sm:$0xe]  ;;  %v979_v55 = vor.u32 %v978_v37, %v975_v36  ;;  %v2264_v23 = vrot.slane %v631_v43, 9  ;;  %v679_v36 = vrot.slane %v2980_v13, 5  ;;  %v2791_v37 = vld [vmem:[%s3574_s1 + $0x80] sm:$0xff]  ;;  %v2838_v13 = vld [vmem:[%s3574_s1 + $0x1b8] sm:$0xff] }
  0x30   : > { %771 = vmatpush.bf16.msrb.mxu2 %v2797_v50  ;;  %v2456_v50 = vld [vmem:[%s2969_s14 + $0x10] sm:$0xe]  ;;  %v2463_v61 = vrot.slane %v2455_v44, 9  ;;  %v971_v25 = vsel %vm3010_vm2, %v966_v1, %v970_v2  ;;  %v993_v3 = vor.u32 %v992_v48, %v989_v47 }
  0x31   : > { %906 = vmatpush.bf16.msrb.mxu3 %v2809_v51  ;;  %v2814_v51 = vld [vmem:[%s3574_s1 + $0x118] sm:$0xff]  ;;  %v664_v12 = vsel %vm3147_vm5, %v2264_v23, %v663_v60  ;;  %v1087_v44 = vunpack.c.l.b16 %v971_v25  ;;  %v3222_v23 = vld [vmem:[%s2969_s14 + $0x10] sm:$0xe] }
  0x32   : > { %1152 = vmatpush.bf16.msrb.mxu0 %v2817_v52  ;;  %1326 = vmatpush.bf16.msrb.mxu1 %v2825_v53  ;;  %v2822_v52 = vld [vmem:[%s3574_s1 + $0x158] sm:$0xff]  ;;  %v2263_v53 = vrot.slane %v630_v39, 9  ;;  %v707_v39 = vunpack.c.l.b16 %v664_v12  ;;  %v2265_v9 = vrot.slane %v3222_v23, 9  ;;  %v667_v12 = vrot.slane %v3055_v32, 5  ;;  %v2863_v23 = vld [vmem:[%s3578_s5 + $0x20] sm:$0xff] }
  0x33   : > { %v2854_v60 = vld [vmem:[%s3574_s1 + $0x238] sm:$0xff]  ;;  %v994_v32 = vrot.slane %v993_v3, 4  ;;  %v2402_v3 = vld [vmem:[%s2969_s14 + $0x34] sm:$0x1] }
  0x34   : > { %772 = vmatpush.bf16.msrb.mxu2 %v2796_v63  ;;  %v2464_v63 = vrot.slane %v2456_v50, 9  ;;  %v3161_v5 = vsel %vm3147_vm5, %v2263_v53, %v659_v54  ;;  %v680_v50 = vsel %vm3147_vm5, %v2268_v35, %v679_v36  ;;  %v3213_v53 = vld [vmem:[%s2969_s14 + $0x24] sm:$0x1]  ;;  %v1003_v54 = vrot.slane %v1001_v28, 4  ;;  %v2852_v35 = vld [vmem:[%s3574_s1 + $0x228] sm:$0xff] }
  0x35   : > { %907 = vmatpush.bf16.msrb.mxu3 %v2808_v0  ;;  %v1218_v0 = vrot.slane %v2394_v40, 5  ;;  %v706_v24 = vunpack.c.l.b16 %v3161_v5  ;;  %v2345_v40 = vld [vmem:[%s2969_s14 + $0x8] sm:$0xf] }
  0x36   : > { %1153 = vmatpush.bf16.msrb.mxu0 %v2816_v6  ;;  %1327 = vmatpush.bf16.msrb.mxu1 %v2824_v7  ;;  %v980_v6 = vrot.slane %v979_v55, 4  ;;  %v984_v7 = vrot.slane %v982_v56, 5  ;;  %v1006_v55 = vrot.slane %v1004_v29, 5  ;;  %v711_v56 = vunpack.c.l.b16 %v680_v50  ;;  %v2835_v50 = vld [vmem:[%s3574_s1 + $0x1a0] sm:$0xff] }
  0x37   : > { %v714_v1 = vpack.c.b16 %v707_v39, %v706_v24  ;;  %v683_v39 = vrot.slane %v3043_v19, 5 }
  0x38   : > { %773 = vmatpush.bf16.msrb.mxu2 %v2795_v14  ;;  %v1215_v14 = vsel %vm3147_vm5, %v2463_v61, %v1214_v62  ;;  %v633_v61 = vld [vmem:[%s2969_s14 + $0x18] sm:$0xe] }
  0x39   : > { %908 = vmatpush.bf16.msrb.mxu3 %v2807_v15  ;;  %v634_v15 = vld [vmem:[%s2969_s14 + $0x20] sm:$0xe]  ;;  %v2866_v62 = vld [vmem:[%s3578_s5 + $0x38] sm:$0xff] }
  0x3a   : > { %1154 = vmatpush.bf16.msrb.mxu0 %v2815_v17  ;;  %1328 = vmatpush.bf16.msrb.mxu1 %v2823_v34  ;;  %v1219_v17 = vsel %vm3147_vm5, %v2464_v63, %v1218_v0  ;;  %v2267_v22 = vrot.slane %v634_v15, 9  ;;  %v2458_v15 = vld [vmem:[%s2969_s14 + $0x20] sm:$0xe] }
  0x3b   : > { %523 = vmatmul.bf16.gmra.mxu2 %v447_v41  ;;  %513 = vmatmul.bf16.gmra.mxu0 %v445_v45  ;;  %v1261_v41 = vunpack.c.l.b16 %v1215_v14  ;;  %v2846_v45 = vld [vmem:[%s3574_s1 + $0x1f8] sm:$0xff]  ;;  %v2266_v14 = vrot.slane %v633_v61, 9 }
  0x3c   : > { %774 = vmatpush.bf16.msrb.mxu2 %v2794_v31  ;;  %624 = vmatmul.bf16.gmra.mxu3 %v2230_v42  ;;  %v985_v31 = vsel %vm3010_vm2, %v980_v6, %v984_v7  ;;  %v676_v34 = vsel %vm3147_vm5, %v2267_v22, %v675_v16  ;;  %v1262_v42 = vunpack.c.l.b16 %v1219_v17  ;;  %v2837_v6 = vld [vmem:[%s3574_s1 + $0x1b0] sm:$0xff]  ;;  %v2399_v16 = vld [vmem:[%s2969_s14 + $0x28] sm:$0xf]  ;;  %v671_v17 = vrot.slane %v3058_v33, 5 }
  0x3d   : > { %909 = vmatpush.bf16.msrb.mxu3 %v2806_v38  ;;  %614 = vmatmul.bf16.gmra.mxu1 %v2222_v46  ;;  %v2803_v38 = vld [vmem:[%s3574_s1 + $0xc0] sm:$0xff]  ;;  %v710_v43 = vunpack.c.l.b16 %v676_v34  ;;  %v3207_v46 = vld [vmem:[%s2969_s14 + $0x1c] sm:$0x1]  ;;  %v2845_v7 = vld [vmem:[%s3574_s1 + $0x1f0] sm:$0xff]  ;;  %v1018_v36 = vshll.u32 %v2399_v16, 16 }
  0x3e   : > { %1155 = vmatpush.bf16.msrb.mxu0 %v2814_v51  ;;  %1329 = vmatpush.bf16.msrb.mxu1 %v2822_v52  ;;  %v2799_v51 = vld [vmem:[%s2969_s14 + $0xc] sm:$0xf0]  ;;  %v1088_v52 = vunpack.c.l.b16 %v985_v31  ;;  %v996_v63 = vshll.u32 %v3207_v46, 16  ;;  %v1269_v5 = vpack.c.b16 %v1262_v42, %v1261_v41  ;;  %v1222_v28 = vrot.slane %v3207_v46, 5  ;;  %v2836_v33 = vld [vmem:[%s3574_s1 + $0x1a8] sm:$0xff] }
  0x3f   : > { %v3232_v0 = vpack.c.b16 %v711_v56, %v710_v43  ;;  %v2346_v2 = vor.u32 %v2799_v51, %v2345_v40  ;;  %v2401_v22 = vld [vmem:[%s2969_s14 + $0x30] sm:$0xf]  ;;  %v1015_v31 = vshrl.u32 %v2399_v16, 16  ;;  %v2844_v34 = vld [vmem:[%s3574_s1 + $0x1e8] sm:$0xff]  ;;  %v637_v42 = vld [vmem:[%s2969_s14 + $0x38] sm:$0xe] }
  0x40   : > { %775 = vmatpush.bf16.msrb.mxu2 %v2793_v57  ;;  %v2811_v57 = vld [vmem:[%s3574_s1 + $0x100] sm:$0xff]  ;;  %v998_v18 = vrot.slane %v996_v63, 5  ;;  %v2864_v40 = vld [vmem:[%s3578_s5 + $0x28] sm:$0xff]  ;;  %v636_v41 = vld [vmem:[%s2969_s14 + $0x30] sm:$0xe]  ;;  %v687_v43 = vrot.slane %v3049_v27, 5 }
  0x41   : > { %910 = vmatpush.bf16.msrb.mxu3 %v2805_v58  ;;  %v2819_v58 = vld [vmem:[%s3574_s1 + $0x140] sm:$0xff]  ;;  %v2270_v46 = vrot.slane %v637_v42, 9  ;;  %v1038_v16 = vshll.u32 %v2402_v3, 16  ;;  %v2840_v42 = vld [vmem:[%s3574_s1 + $0x1c8] sm:$0xff] }
  0x42   : > { %1156 = vmatpush.bf16.msrb.mxu0 %v2813_v4  ;;  %1330 = vmatpush.bf16.msrb.mxu1 %v2821_v26  ;;  %v1010_v4 = vshll.u32 %v3213_v53, 16  ;;  %v1095_v26 = vpack.c.b16 %v1088_v52, %v1087_v44  ;;  %v672_v44 = vsel %vm3147_vm5, %v2266_v14, %v671_v17  ;;  %v999_v19 = vsel %vm3010_vm2, %v994_v32, %v998_v18  ;;  %v2843_v51 = vld [vmem:[%s3574_s1 + $0x1e0] sm:$0xff]  ;;  %v2850_v17 = vld [vmem:[%s3574_s1 + $0x218] sm:$0xff]  ;;  %v2459_v32 = vld [vmem:[%s2969_s14 + $0x28] sm:$0xe] }
  0x43   : > { %v1017_v52 = vrot.slane %v1015_v31, 4  ;;  %v709_v63 = vunpack.c.l.b16 %v672_v44  ;;  %v2467_v31 = vrot.slane %v2459_v32, 9 }
  0x44   : > { %776 = vmatpush.bf16.msrb.mxu2 %v2792_v10  ;;  %v1007_v10 = vor.u32 %v1006_v55, %v1003_v54  ;;  %v1012_v24 = vrot.slane %v1010_v4, 5  ;;  %v688_v55 = vsel %vm3147_vm5, %v2270_v46, %v687_v43  ;;  %v2349_v4 = vld [vmem:[%s2969_s14 + $0x18] sm:$0xf]  ;;  %v2861_v43 = vld [vmem:[%s3578_s5 + $0x10] sm:$0xff] }
  0x45   : > { %911 = vmatpush.bf16.msrb.mxu3 %v2804_v11  ;;  %v2457_v11 = vld [vmem:[%s2969_s14 + $0x18] sm:$0xe]  ;;  %v713_v61 = vunpack.c.l.b16 %v688_v55 }
  0x46   : > { %1157 = vmatpush.bf16.msrb.mxu0 %v2812_v8  ;;  %1331 = vmatpush.bf16.msrb.mxu1 %v2820_v30  ;;  %v2465_v25 = vrot.slane %v2457_v11, 9  ;;  %v1008_v29 = vrot.slane %v1007_v10, 4  ;;  %v2466_v8 = vrot.slane %v2458_v15, 9  ;;  %v1226_v30 = vrot.slane %v3213_v53, 5  ;;  %v2834_v10 = vld [vmem:[%s3574_s1 + $0x198] sm:$0xff] }
  0x47   : > { %v1020_v53 = vrot.slane %v1018_v36, 5  ;;  %v2842_v11 = vld [vmem:[%s3574_s1 + $0x1d8] sm:$0xff]  ;;  %v1234_v36 = vrot.slane %v2402_v3, 5 }
  0x48   : > { %777 = vmatpush.bf16.msrb.mxu2 %v2791_v37  ;;  %v1029_v37 = vshrl.u32 %v2401_v22, 16  ;;  %v1013_v47 = vsel %vm3010_vm2, %v1008_v29, %v1012_v24  ;;  %v1223_v48 = vsel %vm3147_vm5, %v2465_v25, %v1222_v28  ;;  %v1227_v27 = vsel %vm3147_vm5, %v2466_v8, %v1226_v30  ;;  %v2460_v24 = vld [vmem:[%s2969_s14 + $0x30] sm:$0xe] }
  0x49   : > { %912 = vmatpush.bf16.msrb.mxu3 %v2803_v38  ;;  %v1032_v38 = vshll.u32 %v2401_v22, 16  ;;  %v2833_v25 = vld [vmem:[%s3574_s1 + $0x190] sm:$0xff]  ;;  %v1040_v30 = vrot.slane %v1038_v16, 5 }
  0x4a   : > { %1158 = vmatpush.bf16.msrb.mxu0 %v2811_v57  ;;  %1332 = vmatpush.bf16.msrb.mxu1 %v2819_v58  ;;  %v1031_v56 = vrot.slane %v1029_v37, 4  ;;  %v2851_v58 = vld [vmem:[%s3574_s1 + $0x220] sm:$0xff]  ;;  %v2841_v28 = vld [vmem:[%s3574_s1 + $0x1d0] sm:$0xff]  ;;  %v2862_v37 = vld [vmem:[%s3578_s5 + $0x18] sm:$0xff] }
  0x4b   : > { %778 = vmatmul.bf16.vlgmr.msrb.gmra.mxu2 %v714_v1  ;;  %v1034_v57 = vrot.slane %v1032_v38, 5  ;;  %v1089_v1 = vunpack.c.l.b16 %v999_v19  ;;  %v2403_v38 = vld [vmem:[%s2969_s14 + $0x38] sm:$0xf] }
  0x4c   : > { %1460 = vmatpush.bf16.msra.mxu2 %v2838_v13  ;;  %913 = vmatmul.bf16.vlgmr.msrb.gmra.mxu3 %v2346_v2  ;;  %v668_v13 = vsel %vm3147_vm5, %v2265_v9, %v667_v12  ;;  %v2400_v2 = vld [vmem:[%s2969_s14 + $0x2c] sm:$0x1]  ;;  %v1021_v12 = vor.u32 %v1020_v53, %v1017_v52  ;;  %v2839_v52 = vld [vmem:[%s3574_s1 + $0x1c0] sm:$0xff] }
  0x4d   : > { %1706 = vmatpush.bf16.msra.mxu3 %v2846_v45  ;;  %1159 = vmatmul.bf16.vlgmr.msrb.gmra.mxu0 %v1095_v26  ;;  %v2269_v45 = vrot.slane %v636_v41, 9  ;;  %v2800_v26 = vld [vmem:[%s2969_s14 + $0x1c] sm:$0xf0]  ;;  %v1024_v14 = vshll.u32 %v2400_v2, 16  ;;  %v1035_v15 = vor.u32 %v1034_v57, %v1031_v56 }
  0x4e   : > { %1880 = vmatpush.bf16.msra.mxu0 %v2854_v60  ;;  %2037 = vmatpush.bf16.msra.mxu1 %v2866_v62  ;;  %v708_v62 = vunpack.c.l.b16 %v668_v13  ;;  %v2405_v41 = vld [vmem:[%s2969_s14 + $0x40] sm:$0xf]  ;;  %v2848_v13 = vld [vmem:[%s3574_s1 + $0x208] sm:$0xff] }
  0x4f   : > { %1333 = vmatmul.bf16.vlgmr.msrb.gmra.mxu1 %v1269_v5  ;;  %v684_v54 = vsel %vm3147_vm5, %v2269_v45, %v683_v39  ;;  %v1090_v5 = vunpack.c.l.b16 %v1013_v47  ;;  %v1026_v29 = vrot.slane %v1024_v14, 5  ;;  %v1036_v8 = vrot.slane %v1035_v15, 4  ;;  %v2849_v39 = vld [vmem:[%s3574_s1 + $0x210] sm:$0xff]  ;;  %v2847_v53 = vld [vmem:[%s3574_s1 + $0x200] sm:$0xff]  ;;  %v2860_v14 = vld [vmem:[%s3578_s5 + $0x8] sm:$0xff] }
  0x50   : > { %1461 = vmatpush.bf16.msra.mxu2 %v2837_v6  ;;  %v712_v60 = vunpack.c.l.b16 %v684_v54  ;;  %v1263_v6 = vunpack.c.l.b16 %v1223_v48  ;;  %v715_v18 = vpack.c.b16 %v709_v63, %v708_v62  ;;  %v1043_v47 = vshrl.u32 %v2403_v38, 16  ;;  %v2353_v54 = vld [vmem:[%s2969_s14 + $0x28] sm:$0xf]  ;;  %v2591_v15 = vld [vmem:[%s2969_s14 + $0x10] sm:$0xf] }
  0x51   : > { %1707 = vmatpush.bf16.msra.mxu3 %v2845_v7  ;;  %v1264_v7 = vunpack.c.l.b16 %v1227_v27  ;;  %v1041_v45 = vsel %vm3010_vm2, %v1036_v8, %v1040_v30  ;;  %v1046_v48 = vshll.u32 %v2403_v38, 16  ;;  %v1057_v27 = vshrl.u32 %v2405_v41, 16  ;;  %v2592_v38 = vld [vmem:[%s2969_s14 + $0x14] sm:$0x1] }
  0x52   : > { %1881 = vmatpush.bf16.msra.mxu0 %v2853_v20  ;;  %2038 = vmatpush.bf16.msra.mxu1 %v2865_v21  ;;  %v3304_v9 = vpack.c.b16 %v713_v61, %v712_v60  ;;  %v2350_v20 = vor.u32 %v2800_v26, %v2349_v4  ;;  %v1096_v21 = vpack.c.b16 %v1090_v5, %v1089_v1  ;;  %v1092_v56 = vunpack.c.l.b16 %v1041_v45  ;;  %v2404_v1 = vld [vmem:[%s2969_s14 + $0x3c] sm:$0x1] }
  0x53   : > { %v1270_v22 = vpack.c.b16 %v1264_v7, %v1263_v6  ;;  %v1045_v60 = vrot.slane %v1043_v47, 4  ;;  %v1048_v61 = vrot.slane %v1046_v48, 5  ;;  %v1059_v62 = vrot.slane %v1057_v27, 4 }
  0x54   : > { %1462 = vmatpush.bf16.msra.mxu2 %v2836_v33  ;;  %v1022_v33 = vrot.slane %v1021_v12, 4  ;;  %v1052_v6 = vshll.u32 %v2404_v1, 16  ;;  %v2462_v12 = vld [vmem:[%s2969_s14 + $0x40] sm:$0xe]  ;;  %v1238_v32 = vrot.slane %v2404_v1, 5  ;;  %v1523_v47 = vshll.u32 %v2592_v38, 16 }
  0x55   : > { %1708 = vmatpush.bf16.msra.mxu3 %v2844_v34  ;;  %v1230_v34 = vrot.slane %v2400_v2, 5  ;;  %v2406_v2 = vld [vmem:[%s2969_s14 + $0x44] sm:$0x1]  ;;  %v1049_v5 = vor.u32 %v1048_v61, %v1045_v60  ;;  %v1769_v60 = vrot.slane %v2592_v38, 5  ;;  %v2597_v1 = vld [vmem:[%s2969_s14 + $0x28] sm:$0xf] }
  0x56   : > { %1882 = vmatpush.bf16.msra.mxu0 %v2852_v35  ;;  %2039 = vmatpush.bf16.msra.mxu1 %v2864_v40  ;;  %v2468_v35 = vrot.slane %v2460_v24, 9  ;;  %v2832_v40 = vld [vmem:[%s3574_s1 + $0x188] sm:$0xff]  ;;  %v1027_v44 = vsel %vm3010_vm2, %v1022_v33, %v1026_v29  ;;  %v2470_v24 = vrot.slane %v2462_v12, 9  ;;  %v1517_v33 = vshll.u32 %v2591_v15, 16 }
  0x57   : > { %v1231_v46 = vsel %vm3147_vm5, %v2467_v31, %v1230_v34  ;;  %v1091_v55 = vunpack.c.l.b16 %v1027_v44  ;;  %v1050_v16 = vrot.slane %v1049_v5, 4 }
  0x58   : > { %1463 = vmatpush.bf16.msra.mxu2 %v2835_v50  ;;  %v1235_v19 = vsel %vm3147_vm5, %v2468_v35, %v1234_v36  ;;  %v1060_v50 = vshll.u32 %v2405_v41, 16  ;;  %v1265_v57 = vunpack.c.l.b16 %v1231_v46 }
  0x59   : > { %1709 = vmatpush.bf16.msra.mxu3 %v2843_v51  ;;  %v2831_v51 = vld [vmem:[%s3574_s1 + $0x180] sm:$0xff]  ;;  %v1097_v4 = vpack.c.b16 %v1092_v56, %v1091_v55  ;;  %v1525_v56 = vrot.slane %v1523_v47, 5 }
  0x5a   : > { %1883 = vmatpush.bf16.msra.mxu0 %v2851_v58  ;;  %2040 = vmatpush.bf16.msra.mxu1 %v2863_v23  ;;  %v1266_v58 = vunpack.c.l.b16 %v1235_v19  ;;  %v2801_v23 = vld [vmem:[%s2969_s14 + $0x2c] sm:$0xf0]  ;;  %v1062_v63 = vrot.slane %v1060_v50, 5 }
  0x5b   : > { %783 = vmatmul.bf16.gmra.mxu2 %v715_v18  ;;  %v2354_v3 = vor.u32 %v2801_v23, %v2353_v54  ;;  %v2656_v54 = vld [vmem:[%s2969_s14 + $0x18] sm:$0xe] }
  0x5c   : > { %1464 = vmatpush.bf16.msra.mxu2 %v2834_v10  ;;  %918 = vmatmul.bf16.gmra.mxu3 %v2350_v20  ;;  %v1271_v26 = vpack.c.b16 %v1266_v58, %v1265_v57  ;;  %v1063_v7 = vor.u32 %v1062_v63, %v1059_v62  ;;  %v1066_v10 = vshll.u32 %v2406_v2, 16  ;;  %v2664_v61 = vrot.slane %v2656_v54, 9  ;;  %v2595_v63 = vld [vmem:[%s2969_s14 + $0x20] sm:$0xf] }
  0x5d   : > { %1710 = vmatpush.bf16.msra.mxu3 %v2842_v11  ;;  %1164 = vmatmul.bf16.gmra.mxu0 %v1096_v21  ;;  %v2461_v11 = vld [vmem:[%s2969_s14 + $0x38] sm:$0xe]  ;;  %v1545_v5 = vshll.u32 %v2595_v63, 16 }
  0x5e   : > { %1884 = vmatpush.bf16.msra.mxu0 %v2850_v17  ;;  %2041 = vmatpush.bf16.msra.mxu1 %v2862_v37  ;;  %v1054_v17 = vrot.slane %v1052_v6, 5  ;;  %v1064_v18 = vrot.slane %v1063_v7, 4  ;;  %v1068_v20 = vrot.slane %v1066_v10, 5  ;;  %v2593_v21 = vld [vmem:[%s2969_s14 + $0x18] sm:$0xf]  ;;  %v1519_v37 = vrot.slane %v1517_v33, 5 }
  0x5f   : > { %1338 = vmatmul.bf16.gmra.mxu1 %v1270_v22  ;;  %v2469_v22 = vrot.slane %v2461_v11, 9  ;;  %v1528_v29 = vshrl.u32 %v2593_v21, 16  ;;  %v1531_v8 = vshll.u32 %v2593_v21, 16  ;;  %v1556_v6 = vshrl.u32 %v2597_v1, 16  ;;  %v2545_v10 = vld [vmem:[%s2969_s14 + $0x10] sm:$0xf] }
  0x60   : > { %1465 = vmatpush.bf16.msra.mxu2 %v2833_v25  ;;  %v1242_v25 = vrot.slane %v2406_v2, 5  ;;  %v1055_v30 = vsel %vm3010_vm2, %v1050_v16, %v1054_v17  ;;  %v1069_v31 = vsel %vm3010_vm2, %v1064_v18, %v1068_v20  ;;  %v1559_v7 = vshll.u32 %v2597_v1, 16  ;;  %v2827_v16 = vld [vmem:[%s2969_s14 + $0x14] sm:$0xf0] }
  0x61   : > { %1711 = vmatpush.bf16.msra.mxu3 %v2841_v28  ;;  %v1514_v28 = vshrl.u32 %v2591_v15, 16  ;;  %v1239_v34 = vsel %vm3147_vm5, %v2469_v22, %v1238_v32  ;;  %v1533_v41 = vrot.slane %v1531_v8, 5  ;;  %v1094_v44 = vunpack.c.l.b16 %v1069_v31  ;;  %v2596_v22 = vld [vmem:[%s2969_s14 + $0x24] sm:$0x1]  ;;  %v2598_v32 = vld [vmem:[%s2969_s14 + $0x2c] sm:$0x1] }
  0x62   : > { %1885 = vmatpush.bf16.msra.mxu0 %v2849_v39  ;;  %2042 = vmatpush.bf16.msra.mxu1 %v2861_v43  ;;  %v1243_v35 = vsel %vm3147_vm5, %v2470_v24, %v1242_v25  ;;  %v2594_v39 = vld [vmem:[%s2969_s14 + $0x1c] sm:$0x1]  ;;  %v2802_v43 = vld [vmem:[%s2969_s14 + $0x3c] sm:$0xf0]  ;;  %v1267_v45 = vunpack.c.l.b16 %v1239_v34  ;;  %v1547_v18 = vrot.slane %v1545_v5, 5  ;;  %v1558_v20 = vrot.slane %v1556_v6, 4 }
  0x63   : > { %v1516_v36 = vrot.slane %v1514_v28, 4  ;;  %v1268_v46 = vunpack.c.l.b16 %v1243_v35  ;;  %v1537_v48 = vshll.u32 %v2594_v39, 16  ;;  %v1773_v62 = vrot.slane %v2594_v39, 5  ;;  %v2855_v28 = vld [vmem:[%s3406_s19] sm:$0xff]  ;;  %v2658_v34 = vld [vmem:[%s2969_s14 + $0x28] sm:$0xe] }
  0x64   : > { %1466 = vmatpush.bf16.msra.mxu2 %v2832_v40  ;;  %v1530_v40 = vrot.slane %v1528_v29, 4  ;;  %v1561_v21 = vrot.slane %v1559_v7, 5  ;;  %v2546_v24 = vor.u32 %v2827_v16, %v2545_v10  ;;  %v1551_v29 = vshll.u32 %v2596_v22, 16  ;;  %v2657_v31 = vld [vmem:[%s2969_s14 + $0x20] sm:$0xe]  ;;  %v2856_v5 = vld [vmem:[%s3406_s19 + $0x8] sm:$0xff] }
  0x65   : > { %1712 = vmatpush.bf16.msra.mxu3 %v2840_v42  ;;  %v2357_v42 = vld [vmem:[%s2969_s14 + $0x38] sm:$0xf]  ;;  %v1520_v19 = vor.u32 %v1519_v37, %v1516_v36  ;;  %v1539_v57 = vrot.slane %v1537_v48, 5  ;;  %v2599_v35 = vld [vmem:[%s2969_s14 + $0x30] sm:$0xf] }
  0x66   : > { %1886 = vmatpush.bf16.msra.mxu0 %v2848_v13  ;;  %2043 = vmatpush.bf16.msra.mxu1 %v2860_v14  ;;  %v1093_v13 = vunpack.c.l.b16 %v1055_v30  ;;  %v2358_v27 = vor.u32 %v2802_v43, %v2357_v42  ;;  %v1534_v50 = vor.u32 %v1533_v41, %v1530_v40  ;;  %v1562_v8 = vor.u32 %v1561_v21, %v1558_v20  ;;  %v2601_v36 = vld [vmem:[%s2969_s14 + $0x38] sm:$0xf]  ;;  %v2659_v6 = vld [vmem:[%s2969_s14 + $0x30] sm:$0xe]  ;;  %v2603_v20 = vld [vmem:[%s2969_s14 + $0x40] sm:$0xf] }
  0x67   : > { %v1521_v55 = vrot.slane %v1520_v19, 4  ;;  %v1565_v30 = vshll.u32 %v2598_v32, 16  ;;  %v1553_v38 = vrot.slane %v1551_v29, 5  ;;  %v2665_v41 = vrot.slane %v2657_v31, 9  ;;  %v2660_v7 = vld [vmem:[%s2969_s14 + $0x38] sm:$0xe] }
  0x68   : > { %1467 = vmatpush.bf16.msra.mxu2 %v2831_v51  ;;  %v2655_v51 = vld [vmem:[%s2969_s14 + $0x10] sm:$0xe]  ;;  %v1535_v23 = vrot.slane %v1534_v50, 4  ;;  %v1563_v39 = vrot.slane %v1562_v8, 4  ;;  %v1777_v42 = vrot.slane %v2596_v22, 5  ;;  %v2666_v43 = vrot.slane %v2658_v34, 9 }
  0x69   : > { %1713 = vmatpush.bf16.msra.mxu3 %v2839_v52  ;;  %v1098_v52 = vpack.c.b16 %v1094_v44, %v1093_v13  ;;  %v2663_v58 = vrot.slane %v2655_v51, 9  ;;  %v1526_v2 = vsel %vm3010_vm2, %v1521_v55, %v1525_v56  ;;  %v1567_v40 = vrot.slane %v1565_v30, 5  ;;  %v2605_v21 = vld [vmem:[%s2969_s14 + $0x48] sm:$0xf]  ;;  %v2553_v8 = vld [vmem:[%s2969_s14 + $0x30] sm:$0xf] }
  0x6a   : > { %1887 = vmatpush.bf16.msra.mxu0 %v2847_v53  ;;  %v1272_v53 = vpack.c.b16 %v1268_v46, %v1267_v45  ;;  %v1642_v11 = vunpack.c.l.b16 %v1526_v2  ;;  %v1781_v13 = vrot.slane %v2598_v32, 5  ;;  %v1570_v44 = vshrl.u32 %v2599_v35, 16 }
  0x6b   : > { %788 = vmatmul.bf16.gmra.mxu2 %v3232_v0  ;;  %v2859_v0 = vld [vmem:[%s3578_s5] sm:$0xff]  ;;  %v1573_v45 = vshll.u32 %v2599_v35, 16  ;;  %v1584_v46 = vshrl.u32 %v2601_v36, 16  ;;  %v1587_v19 = vshll.u32 %v2601_v36, 16  ;;  %v1568_v48 = vsel %vm3010_vm2, %v1563_v39, %v1567_v40  ;;  %v2829_v36 = vld [vmem:[%s2969_s14 + $0x34] sm:$0xf0] }
  0x6c   : > { %923 = vmatmul.bf16.gmra.mxu3 %v2354_v3  ;;  %2044 = vmatpush.bf16.msra.mxu1 %v2859_v0  ;;  %v1540_v3 = vsel %vm3010_vm2, %v1535_v23, %v1539_v57  ;;  %v1782_v50 = vsel %vm3147_vm5, %v2666_v43, %v1781_v13  ;;  %v1572_v51 = vrot.slane %v1570_v44, 4  ;;  %v1645_v56 = vunpack.c.l.b16 %v1568_v48  ;;  %v2600_v57 = vld [vmem:[%s2969_s14 + $0x34] sm:$0x1]  ;;  %v2549_v23 = vld [vmem:[%s2969_s14 + $0x20] sm:$0xf] }
  0x6d   : > { %1169 = vmatmul.bf16.gmra.mxu0 %v1097_v4  ;;  %v1774_v4 = vsel %vm3147_vm5, %v2664_v61, %v1773_v62  ;;  %v1643_v12 = vunpack.c.l.b16 %v1540_v3  ;;  %v1589_v54 = vrot.slane %v1587_v19, 5  ;;  %v1819_v62 = vunpack.c.l.b16 %v1782_v50 }
  0x6e   : > { %v1817_v15 = vunpack.c.l.b16 %v1774_v4  ;;  %v1579_v1 = vshll.u32 %v2600_v57, 16  ;;  %v1785_v16 = vrot.slane %v2600_v57, 5  ;;  %v1615_v29 = vshll.u32 %v2605_v21, 16 }
  0x6f   : > { %1343 = vmatmul.bf16.gmra.mxu1 %v1271_v26  ;;  %v1542_v26 = vshrl.u32 %v2595_v63, 16  ;;  %v1650_v25 = vpack.c.b16 %v1643_v12, %v1642_v11  ;;  %v2554_v43 = vor.u32 %v2829_v36, %v2553_v8 }
  0x70   : > { %v1581_v11 = vrot.slane %v1579_v1, 5  ;;  %v1617_v40 = vrot.slane %v1615_v29, 5 }
  0x71   : > { %v1544_v17 = vrot.slane %v1542_v26, 4 }
  0x73   : > { %v1548_v33 = vor.u32 %v1547_v18, %v1544_v17  ;;  %v2668_v17 = vrot.slane %v2660_v7, 9 }
  0x75   : > { %v1549_v37 = vrot.slane %v1548_v33, 4  ;;  %v1612_v33 = vshrl.u32 %v2605_v21, 16 }
  0x77   : > { %v1554_v47 = vsel %vm3010_vm2, %v1549_v37, %v1553_v38  ;;  %v1614_v39 = vrot.slane %v1612_v33, 4 }
  0x78   : > { %v1644_v55 = vunpack.c.l.b16 %v1554_v47 }
  0x79   : > { %v1618_v47 = vor.u32 %v1617_v40, %v1614_v39 }
  0x7a   : > { %v1651_v4 = vpack.c.b16 %v1645_v56, %v1644_v55 }
  0x7b   : > { %793 = vmatmul.bf16.gmra.mxu2 %v3304_v9  ;;  %v1770_v9 = vsel %vm3147_vm5, %v2663_v58, %v1769_v60  ;;  %v2602_v58 = vld [vmem:[%s2969_s14 + $0x3c] sm:$0x1]  ;;  %v2828_v60 = vld [vmem:[%s2969_s14 + $0x24] sm:$0xf0]  ;;  %v1619_v56 = vrot.slane %v1618_v47, 4 }
  0x7c   : > { %928 = vmatmul.bf16.gmra.mxu3 %v2358_v27  ;;  %v1816_v14 = vunpack.c.l.b16 %v1770_v9  ;;  %v1778_v27 = vsel %vm3147_vm5, %v2665_v41, %v1777_v42  ;;  %v1593_v3 = vshll.u32 %v2602_v58, 16  ;;  %v2550_v9 = vor.u32 %v2828_v60, %v2549_v23  ;;  %v2604_v41 = vld [vmem:[%s2969_s14 + $0x44] sm:$0x1]  ;;  %v2606_v42 = vld [vmem:[%s2969_s14 + $0x4c] sm:$0x1] }
  0x7d   : > { %1174 = vmatmul.bf16.gmra.mxu0 %v1098_v52  ;;  %v1575_v52 = vrot.slane %v1573_v45, 5  ;;  %v1818_v61 = vunpack.c.l.b16 %v1778_v27  ;;  %v1789_v18 = vrot.slane %v2602_v58, 5  ;;  %v2857_v45 = vld [vmem:[%s3406_s19 + $0x10] sm:$0xff]  ;;  %v1607_v19 = vshll.u32 %v2604_v41, 16 }
  0x7e   : > { %v1824_v0 = vpack.c.b16 %v1817_v15, %v1816_v14  ;;  %v1595_v14 = vrot.slane %v1593_v3, 5  ;;  %v2667_v15 = vrot.slane %v2659_v6, 9  ;;  %v1621_v48 = vshll.u32 %v2606_v42, 16 }
  0x7f   : > { %1348 = vmatmul.bf16.gmra.mxu1 %v1272_v53  ;;  %v1586_v53 = vrot.slane %v1584_v46, 4  ;;  %v1576_v63 = vor.u32 %v1575_v52, %v1572_v51  ;;  %v1825_v26 = vpack.c.b16 %v1819_v62, %v1818_v61  ;;  %v2661_v52 = vld [vmem:[%s2969_s14 + $0x40] sm:$0xe]  ;;  %v1609_v55 = vrot.slane %v1607_v19, 5 }
  0x80   : > { %v1623_v57 = vrot.slane %v1621_v48, 5  ;;  %v2669_v58 = vrot.slane %v2661_v52, 9  ;;  %v1793_v23 = vrot.slane %v2604_v41, 5  ;;  %v1797_v61 = vrot.slane %v2606_v42, 5 }
  0x81   : > { %v1590_v2 = vor.u32 %v1589_v54, %v1586_v53  ;;  %v1577_v10 = vrot.slane %v1576_v63, 4  ;;  %v2662_v53 = vld [vmem:[%s2969_s14 + $0x48] sm:$0xe] }
  0x82   : > { %v2670_v60 = vrot.slane %v2662_v53, 9  ;;  %v1624_v3 = vsel %vm3010_vm2, %v1619_v56, %v1623_v57 }
  0x83   : > { %v1591_v12 = vrot.slane %v1590_v2, 4  ;;  %v1582_v22 = vsel %vm3010_vm2, %v1577_v10, %v1581_v11  ;;  %v1649_v10 = vunpack.c.l.b16 %v1624_v3  ;;  %v2557_v11 = vld [vmem:[%s2969_s14 + $0x40] sm:$0xf] }
  0x84   : > { %v1646_v30 = vunpack.c.l.b16 %v1582_v22  ;;  %v2858_v22 = vld [vmem:[%s3406_s19 + $0x18] sm:$0xff] }
  0x85   : > { %v1596_v32 = vsel %vm3010_vm2, %v1591_v12, %v1595_v14  ;;  %v2830_v12 = vld [vmem:[%s2969_s14 + $0x44] sm:$0xf0] }
  0x86   : > { %v1647_v31 = vunpack.c.l.b16 %v1596_v32 }
  0x88   : > { %v1652_v13 = vpack.c.b16 %v1647_v31, %v1646_v30 }
  0x8b   : > { %1468 = vmatmul.bf16.vlgmr.msra.gmra.mxu2 %v2546_v24  ;;  %v1786_v24 = vsel %vm3147_vm5, %v2667_v15, %v1785_v16 }
  0x8c   : > { %1714 = vmatmul.bf16.vlgmr.msra.gmra.mxu3 %v1650_v25  ;;  %v1790_v25 = vsel %vm3147_vm5, %v2668_v17, %v1789_v18  ;;  %v1820_v34 = vunpack.c.l.b16 %v1786_v24  ;;  %v2558_v18 = vor.u32 %v2830_v12, %v2557_v11 }
  0x8d   : > { %1888 = vmatmul.bf16.vlgmr.msra.gmra.mxu0 %v1824_v0  ;;  %v1598_v0 = vshrl.u32 %v2603_v20, 16  ;;  %v1821_v35 = vunpack.c.l.b16 %v1790_v25 }
  0x8f   : > { %2045 = vmatmul.bf16.vlgmr.msra.gmra.mxu1 %v2855_v28  ;;  %v1601_v28 = vshll.u32 %v2603_v20, 16  ;;  %v1600_v37 = vrot.slane %v1598_v0, 4  ;;  %v1826_v44 = vpack.c.b16 %v1821_v35, %v1820_v34 }
  0x91   : > { %v1603_v38 = vrot.slane %v1601_v28, 5 }
  0x93   : > { %v1604_v46 = vor.u32 %v1603_v38, %v1600_v37 }
  0x95   : > { %v1605_v54 = vrot.slane %v1604_v46, 4 }
  0x97   : > { %v1610_v2 = vsel %vm3010_vm2, %v1605_v54, %v1609_v55 }
  0x98   : > { %v1648_v7 = vunpack.c.l.b16 %v1610_v2 }
  0x9a   : > { %v1653_v20 = vpack.c.b16 %v1649_v10, %v1648_v7 }
  0x9b   : > { %1473 = vmatmul.bf16.gmra.mxu2 %v2550_v9 }
  0x9c   : > { %1719 = vmatmul.bf16.gmra.mxu3 %v1651_v4 }
  0x9d   : > { %1893 = vmatmul.bf16.gmra.mxu0 %v1825_v26  ;;  %v1794_v26 = vsel %vm3147_vm5, %v2669_v58, %v1793_v23 }
  0x9e   : > { %v1822_v14 = vunpack.c.l.b16 %v1794_v26 }
  0x9f   : > { %2050 = vmatmul.bf16.gmra.mxu1 %v2856_v5  ;;  %v1798_v5 = vsel %vm3147_vm5, %v2670_v60, %v1797_v61 }
  0xa0   : > { %v1823_v15 = vunpack.c.l.b16 %v1798_v5 }
  0xa2   : > { %v1827_v21 = vpack.c.b16 %v1823_v15, %v1822_v14 }
  0xa8   : > { %v509_v27 = vpop.f32.mrf.mxu0 }
  0xaa   : > { %v610_v50 = vpop.f32.mrf.mxu1 }
  0xab   : > { %v3445_v51 = vadd.f32 %v610_v50, %v509_v27  ;;  %1478 = vmatmul.bf16.gmra.mxu2 %v2554_v43 }
  0xac   : > { %1724 = vmatmul.bf16.gmra.mxu3 %v1652_v13 }
  0xad   : > { %1898 = vmatmul.bf16.gmra.mxu0 %v1826_v44 }
  0xae   : > { %v519_v62 = vpop.f32.mrf.mxu2 }
  0xaf   : > { %2055 = vmatmul.bf16.gmra.mxu1 %v2857_v45  ;;  %v620_v63 = vpop.f32.mrf.mxu3 }
  0xb0   : > { %v3449_v1 = vadd.f32 %v620_v63, %v519_v62  ;;  %v511_v9 = vpop.f32.mrf.mxu0 }
  0xb2   : > { %v612_v4 = vpop.f32.mrf.mxu1 }
  0xb3   : > { %v3459_v6 = vadd.f32 %v612_v4, %v511_v9 }
  0xb6   : > { %v521_v16 = vpop.f32.mrf.mxu2 }
  0xb7   : > { %v622_v49 = vpop.f32.mrf.mxu3 }
  0xb8   : > { %v3463_v17 = vadd.f32 %v622_v49, %v521_v16  ;;  %v514_v32 = vpop.f32.mrf.mxu0 }
  0xba   : > { %v615_v24 = vpop.f32.mrf.mxu1 }
  0xbb   : > { %v616_v59 = vadd.f32 %v615_v24, %v514_v32  ;;  %1483 = vmatmul.bf16.gmra.mxu2 %v2558_v18 }
  0xbc   : > { %1729 = vmatmul.bf16.gmra.mxu3 %v1653_v20  ;;  %v3511_v20 = vld [vmem:[%s3575_s2] ss:$0 sm:$0xff] }
  0xbd   : > { %1903 = vmatmul.bf16.gmra.mxu0 %v1827_v21 }
  0xbe   : > { %v524_v25 = vpop.f32.mrf.mxu2 }
  0xbf   : > { %2060 = vmatmul.bf16.gmra.mxu1 %v2858_v22  ;;  %v625_v0 = vpop.f32.mrf.mxu3 }
  0xc0   : > { %v3466_v28 = vadd.f32 %v625_v0, %v524_v25  ;;  %v516_v33 = vpop.f32.mrf.mxu0 }
  0xc2   : > { %v617_v29 = vpop.f32.mrf.mxu1 }
  0xc3   : > { %v3468_v8 = vadd.f32 %v617_v29, %v516_v33 }
  0xc6   : > { %v526_v30 = vpop.f32.mrf.mxu2 }
  0xc7   : > { %v627_v31 = vpop.f32.mrf.mxu3 }
  0xc8   : > { %v3470_v34 = vadd.f32 %v627_v31, %v526_v30 }
  0xca   : > { %v1160_v35 = vpop.f32.mrf.mxu0 }
  0xcc   : > { %v1334_v36 = vpop.f32.mrf.mxu1 }
  0xce   : > { %v779_v37 = vpop.f32.mrf.mxu2 }
  0xcf   : > { %v914_v38 = vpop.f32.mrf.mxu3  ;;  %v799_v62 = vadd.f32 %v779_v37, %v3445_v51 }
  0xd1   : > { %v934_v3 = vadd.f32 %v914_v38, %v799_v62 }
  0xd2   : > { %v1162_v39 = vpop.f32.mrf.mxu0 }
  0xd3   : > { %v1180_v26 = vadd.f32 %v1160_v35, %v934_v3 }
  0xd4   : > { %v1336_v40 = vpop.f32.mrf.mxu1 }
  0xd5   : > { %v1354_v11 = vadd.f32 %v1334_v36, %v1180_v26 }
  0xd6   : > { %v781_v41 = vpop.f32.mrf.mxu2 }
  0xd7   : > { %v916_v42 = vpop.f32.mrf.mxu3  ;;  %v800_v5 = vadd.f32 %v781_v41, %v3459_v6  ;;  %v3516_v6 = vld [vmem:[%s3576_s3] ss:$0 sm:$0xff] }
  0xd9   : > { %v935_v12 = vadd.f32 %v916_v42, %v800_v5 }
  0xda   : > { %v1165_v43 = vpop.f32.mrf.mxu0 }
  0xdb   : > { %v1181_v16 = vadd.f32 %v1162_v39, %v935_v12 }
  0xdc   : > { %v1339_v13 = vpop.f32.mrf.mxu1 }
  0xdd   : > { %v1355_v24 = vadd.f32 %v1336_v40, %v1181_v16 }
  0xde   : > { %v784_v44 = vpop.f32.mrf.mxu2 }
  0xdf   : > { %v919_v45 = vpop.f32.mrf.mxu3  ;;  %v801_v49 = vadd.f32 %v784_v44, %v616_v59 }
  0xe1   : > { %v936_v25 = vadd.f32 %v919_v45, %v801_v49 }
  0xe2   : > { %v3472_v46 = vpop.f32.mrf.mxu0 }
  0xe3   : > { %v1182_v31 = vadd.f32 %v1165_v43, %v936_v25 }
  0xe4   : > { %v3474_v19 = vpop.f32.mrf.mxu1 }
  0xe5   : > { %v1356_v41 = vadd.f32 %v1339_v13, %v1182_v31 }
  0xe6   : > { %v786_v47 = vpop.f32.mrf.mxu2 }
  0xe7   : > { %v921_v48 = vpop.f32.mrf.mxu3  ;;  %v802_v35 = vadd.f32 %v786_v47, %v3468_v8 }
  0xe9   : > { %v937_v42 = vadd.f32 %v921_v48, %v802_v35 }
  0xea   : > { %v3476_v27 = vpop.f32.mrf.mxu0 }
  0xeb   : > { %v1183_v3 = vadd.f32 %v3472_v46, %v937_v42 }
  0xec   : > { %v3478_v50 = vpop.f32.mrf.mxu1 }
  0xed   : > { %v1357_v48 = vadd.f32 %v3474_v19, %v1183_v3 }
  0xee   : > { %v789_v52 = vpop.f32.mrf.mxu2 }
  0xef   : > { %v3480_v53 = vpop.f32.mrf.mxu3  ;;  %v803_v26 = vadd.f32 %v789_v52, %v3449_v1 }
  0xf1   : > { %v938_v12 = vadd.f32 %v3480_v53, %v803_v26 }
  0xf2   : > { %v3482_v54 = vpop.f32.mrf.mxu0 }
  0xf3   : > { %v1184_v1 = vadd.f32 %v3476_v27, %v938_v12 }
  0xf4   : > { %v3484_v55 = vpop.f32.mrf.mxu1 }
  0xf6   : > { %v3486_v56 = vpop.f32.mrf.mxu2 }
  0xf7   : > { %v3488_v57 = vpop.f32.mrf.mxu3  ;;  %v804_v52 = vadd.f32 %v3486_v56, %v3463_v17 }
  0xfa   : > { %v3490_v58 = vpop.f32.mrf.mxu0 }
  0xfc   : > { %v3492_v23 = vpop.f32.mrf.mxu1 }
  0xfe   : > { %v3494_v60 = vpop.f32.mrf.mxu2 }
  0xff   : > { %v3496_v61 = vpop.f32.mrf.mxu3  ;;  %v805_v56 = vadd.f32 %v3494_v60, %v3466_v28 }
 0x102   : > { %v3499_v63 = vpop.f32.mrf.mxu0 }
 0x104   : > { %v3501_v2 = vpop.f32.mrf.mxu1 }
 0x106   : > { %v3503_v9 = vpop.f32.mrf.mxu2 }
 0x107   : > { %v3505_v4 = vpop.f32.mrf.mxu3  ;;  %v806_v60 = vadd.f32 %v3503_v9, %v3470_v34 }
 0x10a   : > { %v1889_v7 = vpop.f32.mrf.mxu0 }
 0x10c   : > { %v2046_v10 = vpop.f32.mrf.mxu1 }
 0x10e   : > { %v1469_v14 = vpop.f32.mrf.mxu2 }
 0x10f   : > { %v1715_v15 = vpop.f32.mrf.mxu3  ;;  %v1489_v51 = vadd.f32 %v1469_v14, %v1354_v11 }
 0x111   : > { %v1735_v18 = vadd.f32 %v1715_v15, %v1489_v51 }
 0x112   : > { %v1891_v21 = vpop.f32.mrf.mxu0 }
 0x113   : > { %v1909_v22 = vadd.f32 %v1889_v7, %v1735_v18 }
 0x114   : > { %v2048_v32 = vpop.f32.mrf.mxu1 }
 0x115   : > { %v1921_v0 = vmul.f32 %v3511_v20, %v1909_v22 }
 0x116   : > { %v1471_v33 = vpop.f32.mrf.mxu2 }
 0x117   : > { %v1717_v59 = vpop.f32.mrf.mxu3  ;;  %v1933_v29 = vadd.f32 %v3516_v6, %v1921_v0  ;;  %v1490_v30 = vadd.f32 %v1471_v33, %v1355_v24  ;;  %v939_v24 = vadd.f32 %v3488_v57, %v804_v52 }
 0x119   : > { %v2066_v36 = vadd.f32 %v2046_v10, %v1933_v29  ;;  %v1736_v37 = vadd.f32 %v1717_v59, %v1490_v30  ;;  %v1185_v17 = vadd.f32 %v3482_v54, %v939_v24 }
 0x11a   : > { %v1894_v38 = vpop.f32.mrf.mxu0 }
 0x11b   : > { %v2074_v39 = vmax.f32 %v2066_v36, 0.0  ;;  %v1910_v40 = vadd.f32 %v1891_v21, %v1736_v37  ;;  %v1359_v57 = vadd.f32 %v3484_v55, %v1185_v17  ;;  %v940_v36 = vadd.f32 %v3496_v61, %v805_v56 }
 0x11c   : > { %v2051_v43 = vpop.f32.mrf.mxu1 }
 0x11d   : > { %2082 = vst [vmem:[%s3525_s28] sm:$0xff] %v2074_v39  ;;  %v1922_v44 = vmul.f32 %v3511_v20, %v1910_v40  ;;  %v1186_v28 = vadd.f32 %v3490_v58, %v940_v36 }
 0x11e   : > { %v1474_v45 = vpop.f32.mrf.mxu2 }
 0x11f   : > { %v1720_v8 = vpop.f32.mrf.mxu3  ;;  %v1934_v47 = vadd.f32 %v3516_v6, %v1922_v44  ;;  %v1491_v62 = vadd.f32 %v1474_v45, %v1356_v41  ;;  %v1360_v45 = vadd.f32 %v3492_v23, %v1186_v28 }
 0x121   : > { %v2067_v5 = vadd.f32 %v2048_v32, %v1934_v47  ;;  %v1737_v7 = vadd.f32 %v1720_v8, %v1491_v62  ;;  %v1358_v32 = vadd.f32 %v3478_v50, %v1184_v1  ;;  %v941_v8 = vadd.f32 %v3505_v4, %v806_v60 }
 0x122   : > { %v1896_v10 = vpop.f32.mrf.mxu0 }
 0x123   : > { %v2075_v11 = vmax.f32 %v2067_v5, 0.0  ;;  %v1911_v13 = vadd.f32 %v1894_v38, %v1737_v7  ;;  %v1187_v34 = vadd.f32 %v3499_v63, %v941_v8 }
 0x124   : > { %v2053_v49 = vpop.f32.mrf.mxu1 }
 0x125   : > { %2083 = vst [vmem:[%s3525_s28 + $0x8] sm:$0xff] %v2075_v11  ;;  %v1923_v14 = vmul.f32 %v3511_v20, %v1911_v13  ;;  %v1361_v23 = vadd.f32 %v3501_v2, %v1187_v34 }
 0x126   : > { %v1476_v15 = vpop.f32.mrf.mxu2 }
 0x127   : > { %v1722_v51 = vpop.f32.mrf.mxu3  ;;  %v1935_v16 = vadd.f32 %v3516_v6, %v1923_v14  ;;  %v1492_v46 = vadd.f32 %v1476_v15, %v1357_v48 }
 0x129   : > { %v2068_v18 = vadd.f32 %v2051_v43, %v1935_v16  ;;  %v1738_v21 = vadd.f32 %v1722_v51, %v1492_v46 }
 0x12a   : > { %v1899_v53 = vpop.f32.mrf.mxu0 }
 0x12b   : > { %v2076_v19 = vmax.f32 %v2068_v18, 0.0  ;;  %v1912_v22 = vadd.f32 %v1896_v10, %v1738_v21 }
 0x12c   : > { %v2056_v31 = vpop.f32.mrf.mxu1 }
 0x12d   : > { %2084 = vst [vmem:[%s3525_s28 + $0x10] sm:$0xff] %v2076_v19  ;;  %v1924_v25 = vmul.f32 %v3511_v20, %v1912_v22 }
 0x12e   : > { %v1479_v0 = vpop.f32.mrf.mxu2 }
 0x12f   : > { %v1725_v33 = vpop.f32.mrf.mxu3  ;;  %v1936_v27 = vadd.f32 %v3516_v6, %v1924_v25  ;;  %v1493_v59 = vadd.f32 %v1479_v0, %v1358_v32 }
 0x131   : > { %v2069_v29 = vadd.f32 %v2053_v49, %v1936_v27  ;;  %v1739_v30 = vadd.f32 %v1725_v33, %v1493_v59 }
 0x132   : > { %v1901_v38 = vpop.f32.mrf.mxu0 }
 0x133   : > { %v2077_v50 = vmax.f32 %v2069_v29, 0.0  ;;  %v1913_v35 = vadd.f32 %v1899_v53, %v1739_v30 }
 0x134   : > { %v2058_v61 = vpop.f32.mrf.mxu1 }
 0x135   : > { %2085 = vst [vmem:[%s3525_s28 + $0x18] sm:$0xff] %v2077_v50  ;;  %v1925_v37 = vmul.f32 %v3511_v20, %v1913_v35 }
 0x136   : > { %v1481_v39 = vpop.f32.mrf.mxu2 }
 0x137   : > { %v1727_v40 = vpop.f32.mrf.mxu3  ;;  %v1937_v54 = vadd.f32 %v3516_v6, %v1925_v37  ;;  %v1494_v41 = vadd.f32 %v1481_v39, %v1359_v57 }
 0x139   : > { %v2070_v42 = vadd.f32 %v2056_v31, %v1937_v54  ;;  %v1740_v44 = vadd.f32 %v1727_v40, %v1494_v41 }
 0x13a   : > { %v1904_v5 = vpop.f32.mrf.mxu0 }
 0x13b   : > { %v2078_v55 = vmax.f32 %v2070_v42, 0.0  ;;  %v1914_v43 = vadd.f32 %v1901_v38, %v1740_v44 }
 0x13c   : > { %v2061_v13 = vpop.f32.mrf.mxu1 }
 0x13d   : > { %2086 = vst [vmem:[%s3525_s28 + $0x20] sm:$0xff] %v2078_v55  ;;  %v1926_v47 = vmul.f32 %v3511_v20, %v1914_v43 }
 0x13e   : > { %v1484_v62 = vpop.f32.mrf.mxu2 }
 0x13f   : > { %v1730_v3 = vpop.f32.mrf.mxu3  ;;  %v1938_v58 = vadd.f32 %v3516_v6, %v1926_v47  ;;  %v1495_v26 = vadd.f32 %v1484_v62, %v1360_v45 }
 0x141   : > { %v2071_v9 = vadd.f32 %v2058_v61, %v1938_v58  ;;  %v1741_v7 = vadd.f32 %v1730_v3, %v1495_v26 }
 0x142   : > { %v1906_v63 = vpop.f32.mrf.mxu0 }
 0x143   : > { %v2079_v10 = vmax.f32 %v2071_v9, 0.0  ;;  %v1915_v11 = vadd.f32 %v1904_v5, %v1741_v7 }
 0x144   : > { %v2063_v52 = vpop.f32.mrf.mxu1 }
 0x145   : > { %2087 = vst [vmem:[%s3525_s28 + $0x28] sm:$0xff] %v2079_v10  ;;  %v1927_v4 = vmul.f32 %v3511_v20, %v1915_v11 }
 0x146   : > { %v1486_v48 = vpop.f32.mrf.mxu2 }
 0x147   : > { %v1939_v12 = vadd.f32 %v3516_v6, %v1927_v4  ;;  %v1496_v14 = vadd.f32 %v1486_v48, %v1361_v23  ;;  %v1732_v15 = vpop.f32.mrf.mxu3 }
 0x149   : > { %v2072_v51 = vadd.f32 %v2061_v13, %v1939_v12  ;;  %v1742_v16 = vadd.f32 %v1732_v15, %v1496_v14 }
 0x14b   : > { %v2080_v46 = vmax.f32 %v2072_v51, 0.0  ;;  %v1916_v49 = vadd.f32 %v1906_v63, %v1742_v16 }
 0x14d   : > { %2088 = vst [vmem:[%s3525_s28 + $0x30] sm:$0xff] %v2080_v46  ;;  %v1928_v1 = vmul.f32 %v3511_v20, %v1916_v49 }
 0x14f   : > { %v1940_v2 = vadd.f32 %v3516_v6, %v1928_v1 }
 0x151   : > { %v2073_v18 = vadd.f32 %v2063_v52, %v1940_v2 }
 0x153   : > { %v2081_v21 = vmax.f32 %v2073_v18, 0.0 }
 0x155   : > { %2089 = vst [vmem:[%s3525_s28 + $0x38] sm:$0xff] %v2081_v21 }
 0x156 PF: > { %s16_s21 = sadd.s32 1, %s2900_s21  }
 0x157   : > { %p13_p4 = scmp.ge.s32.totalorder %s16_s21, 4  }
 0x159   :  { %15 = sbr.rel (!%p13_p4) target bundleno = 1 (0x1), region = 87 }

</bundles_post_ra>
